<compile_context>
chip_gen: v7x
topology: tpu7x:2x2x1
jax: 0.10.0
libtpu: 0.0.40
codegen_flags: <defaults>
</compile_context>

<pallas_src>
import jax
import jax.numpy as jnp
from jax.experimental import pallas as pl
from jax.experimental.pallas import tpu as pltpu

KSIZE = 3
K_EXPERTS = 4
TEMPERATURE = 34.0
BN_EPS = 1e-5


# --------------------------------------------------------------------------- #
# parameter construction (mirrors Dynamic_conv2d + BatchNorm2d state)
# --------------------------------------------------------------------------- #
def init_params(key, ch_in, ch_out, ratio=0.25):
    hidden = int(ch_in * ratio) + 1          # attention2d hidden planes
    ks = jax.random.split(key, 4)
    return {
        # attention branch (1x1 convs acting on globally-pooled features)
        "fc1_w": 0.1 * jax.random.normal(ks[0], (hidden, ch_in), jnp.float32),
        "fc2_w": 0.1 * jax.random.normal(ks[1], (K_EXPERTS, hidden), jnp.float32),
        "fc2_b": jnp.zeros((K_EXPERTS,), jnp.float32),
        # K expert conv kernels + biases
        "weight": 0.1 * jax.random.normal(
            ks[2], (K_EXPERTS, ch_out, ch_in, KSIZE, KSIZE), jnp.float32),
        "bias": 0.01 * jax.random.normal(ks[3], (K_EXPERTS, ch_out), jnp.float32),
        # BatchNorm2d params / running stats
        # TODO(synk): training-mode BN (per-batch statistics) not reproduced;
        #             inference-mode running stats are used instead.
        "bn_gamma": jnp.ones((ch_out,), jnp.float32),
        "bn_beta": jnp.zeros((ch_out,), jnp.float32),
        "bn_mean": jnp.zeros((ch_out,), jnp.float32),
        "bn_var": jnp.ones((ch_out,), jnp.float32),
    }


# --------------------------------------------------------------------------- #
# tile selection
# --------------------------------------------------------------------------- #
def _pick_row_tile(H, W, max_rows=512):
    """Largest row tile (divisor of H) whose flattened rows stay sublane-clean."""
    cands = [t for t in range(1, H + 1)
             if H % t == 0 and ((t * W) % 8 == 0 or t == H)]
    fitting = [t for t in cands if t * W <= max_rows]
    return max(fitting) if fitting else min(cands)


def _pick_cout_tile(Cout):
    if Cout <= 256:
        return Cout                      # block equals full dim -> always legal
    for tn in (256, 128):                # keep lane dim a multiple of 128
        if Cout % tn == 0:
            return tn
    return Cout


# --------------------------------------------------------------------------- #
# the Pallas kernel
# --------------------------------------------------------------------------- #
def _make_kernel(row_tile, W, Cin, TN):
    HW_T = row_tile * W

    def kernel(x_ref, w_ref, shift_ref, o_ref):
        # x_ref:     (1, H+2, W+2, Cin)   bf16  zero-padded original input
        #                                        (resident per sample)
        # w_ref:     (1, 16, Cin, TN)     bf16  BN-scaled effective weights,
        #                                        tap index = pr*8+pc*4+ey*2+ex
        # shift_ref: (1, 1, TN)           f32   (agg_bias - bn_mean)*scale + beta
        # o_ref:     (1, 2, 2, HW_T, TN)  f32
        m = pl.program_id(1)
        row0 = pl.multiple_of(m * row_tile, row_tile)

        # 9 shifted views of the halo'd row window, flattened to (HW_T, Cin).
        slabs = {}
        for ro in range(3):
            for co in range(3):
                slabs[(ro, co)] = (
                    x_ref[0, pl.ds(row0 + ro, row_tile), co:co + W, :]
                    .reshape(HW_T, Cin))

        shift = shift_ref[0, 0, :]
        for pr in range(2):
            for pc in range(2):
                acc = None
                for ey in range(2):
                    for ex in range(2):
                        tap = pr * 8 + pc * 4 + ey * 2 + ex
                        part = jnp.dot(slabs[(pr + ey, pc + ex)],
                                       w_ref[0, tap],
                                       preferred_element_type=jnp.float32)
                        acc = part if acc is None else acc + part
                o_ref[0, pr, pc] = jnp.maximum(acc + shift, 0.0).astype(o_ref.dtype)

    return kernel


# --------------------------------------------------------------------------- #
# public forward pass (NCHW in / NCHW out, like the PyTorch module)
# --------------------------------------------------------------------------- #
def up_conv_dcoa_forward(x_nchw, params, row_tile=None):
    B, Cin, H, W = x_nchw.shape
    Cout = params["weight"].shape[1]

    x = jnp.transpose(x_nchw, (0, 2, 3, 1)).astype(jnp.float32)        # NHWC

    # ---- Dynamic_conv2d attention branch (tiny, glue JAX) -------------------
    # Global-avg-pool of the nearest-upsampled image == pool of the original.
    pooled = jnp.mean(x, axis=(1, 2))                                  # (B, Cin)
    hid = jnp.maximum(pooled @ params["fc1_w"].T, 0.0)
    logits = hid @ params["fc2_w"].T + params["fc2_b"]
    attn = jax.nn.softmax(logits / TEMPERATURE, axis=-1)               # (B, K)

    # ---- per-sample aggregated 3x3 weight / bias -----------------------------
    agg_w = jnp.einsum('bk,koiyx->boiyx', attn, params["weight"])      # (B,Co,Ci,3,3)
    agg_w = jnp.transpose(agg_w, (0, 3, 4, 2, 1))                      # (B,3,3,Ci,Co)
    agg_b = attn @ params["bias"]                                      # (B, Cout)

    # ---- fold the 2x nearest upsample into parity-dependent 2x2 weights ------
    # M[parity, e, dy] = 1 iff upsampled tap dy lands on original row h-1+parity+e.
    M = jnp.array([[[1., 0., 0.], [0., 1., 1.]],
                   [[1., 1., 0.], [0., 0., 1.]]], jnp.float32)         # (2,2,3)
    w_eff = jnp.einsum('ped,qfx,bdxio->bpqefio', M, M, agg_w)          # (B,2,2,2,2,Ci,Co)

    # ---- fold inference-mode BatchNorm into weights / shift ------------------
    scale = params["bn_gamma"] / jnp.sqrt(params["bn_var"] + BN_EPS)   # (Cout,)
    w_eff = (w_eff * scale).reshape(B, 16, Cin, Cout).astype(jnp.bfloat16)
    shift = ((agg_b - params["bn_mean"]) * scale
             + params["bn_beta"]).reshape(B, 1, Cout).astype(jnp.float32)

    # ---- zero-padded ORIGINAL-resolution input (bf16 for the MXU) ------------
    x_pad = jnp.pad(x, ((0, 0), (1, 1), (1, 1), (0, 0))).astype(jnp.bfloat16)

    tn = _pick_cout_tile(Cout)
    th = _pick_row_tile(H, W) if row_tile is None else row_tile
    assert H % th == 0 and Cout % tn == 0, (th, tn)
    hw_t = th * W

    out = pl.pallas_call(
        _make_kernel(th, W, Cin, tn),
        out_shape=jax.ShapeDtypeStruct((B, 2, 2, H * W, Cout), jnp.float32),
        grid_spec=pltpu.PrefetchScalarGridSpec(
            num_scalar_prefetch=0,
            grid=(B, H // th, Cout // tn),
            in_specs=[
                # padded input: block index ignores (m, n) -> DMA'd once per b
                pl.BlockSpec((1, H + 2, W + 2, Cin), lambda b, m, n: (b, 0, 0, 0)),
                pl.BlockSpec((1, 16, Cin, tn), lambda b, m, n: (b, 0, 0, n)),
                pl.BlockSpec((1, 1, tn), lambda b, m, n: (b, 0, n)),
            ],
            out_specs=pl.BlockSpec((1, 2, 2, hw_t, tn),
                                   lambda b, m, n: (b, 0, 0, m, n)),
        ),
        compiler_params=pltpu.CompilerParams(
            dimension_semantics=("parallel", "parallel", "parallel"),
            vmem_limit_bytes=48 * 1024 * 1024),
    )(x_pad, w_eff, shift)

    # (B,2,2,H*W,Cout) -> (B,Cout,2H,2W): pure layout reshuffle.
    out = out.reshape(B, 2, 2, H, W, Cout)
    out = jnp.transpose(out, (0, 5, 3, 1, 4, 2))                       # (B,Co,H,2,W,2)
    return out.reshape(B, Cout, 2 * H, 2 * W)


# --------------------------------------------------------------------------- #
# pure-JAX f32 reference (upsample + im2col conv + BN + ReLU), for validation
# --------------------------------------------------------------------------- #
def reference_forward(x_nchw, params):
    B, Cin, H, W = x_nchw.shape
    Cout = params["weight"].shape[1]
    x = jnp.transpose(x_nchw, (0, 2, 3, 1)).astype(jnp.float32)
    x_up = jnp.repeat(jnp.repeat(x, 2, axis=1), 2, axis=2)
    pooled = jnp.mean(x_up, axis=(1, 2))
    hid = jnp.maximum(pooled @ params["fc1_w"].T, 0.0)
    logits = hid @ params["fc2_w"].T + params["fc2_b"]
    attn = jax.nn.softmax(logits / TEMPERATURE, axis=-1)
    agg_w = jnp.einsum('bk,koiyx->boiyx', attn, params["weight"])      # (B,Co,Ci,3,3)
    agg_b = attn @ params["bias"]
    H2, W2 = 2 * H, 2 * W
    xp = jnp.pad(x_up, ((0, 0), (1, 1), (1, 1), (0, 0)))
    taps = [xp[:, dy:dy + H2, dx:dx + W2, :]
            for dy in range(KSIZE) for dx in range(KSIZE)]
    patches = jnp.stack(taps, axis=3)                                   # (B,H2,W2,9,Ci)
    w_flat = jnp.transpose(agg_w, (0, 3, 4, 2, 1)).reshape(B, 9, Cin, Cout)
    conv = jnp.einsum('bhwtc,btco->bhwo', patches, w_flat) + agg_b[:, None, None, :]
    scale = params["bn_gamma"] / jnp.sqrt(params["bn_var"] + BN_EPS)
    out = (conv - params["bn_mean"]) * scale + params["bn_beta"]
    out = jnp.maximum(out, 0.0)
    return jnp.transpose(out, (0, 3, 1, 2))


if __name__ == "__main__":
    key = jax.random.PRNGKey(0)
    kx, kp = jax.random.split(key)

    B, CH_IN, CH_OUT, H, W = 2, 4, 8, 16, 16
    x = jax.random.normal(kx, (B, CH_IN, H, W), jnp.float32)
    params = init_params(kp, CH_IN, CH_OUT)

    ref = reference_forward(x, params)

    # run once with the auto row tile (single tile) and once split into 2 row
    # tiles per sample to exercise the halo'd tiling path.
    for rt in (None, 8):
        out = jax.block_until_ready(up_conv_dcoa_forward(x, params, row_tile=rt))
        assert out.shape == (B, CH_OUT, 2 * H, 2 * W), out.shape
        assert bool(jnp.all(jnp.isfinite(out)))
        assert bool(jnp.all(out >= 0.0))                 # ReLU output
        assert bool(jnp.allclose(out, ref, atol=2e-2, rtol=2e-2)), (
            float(jnp.max(jnp.abs(out - ref))))

    print("KERNEL_OK")
</pallas_src>

<mosaic_0001>
module attributes {stable_mosaic.version = 11 : i64} {
  func.func @kernel(%arg0: i32, %arg1: i32, %arg2: i32, %arg3: memref<1x18x18x4xbf16, #tpu.memory_space<vmem>>, %arg4: memref<1x16x4x8xbf16, #tpu.memory_space<vmem>>, %arg5: memref<1x1x8xf32, #tpu.memory_space<vmem>>, %arg6: memref<1x2x2x256x8xf32, #tpu.memory_space<vmem>>) attributes {dimension_semantics = [#tpu.dimension_semantics<parallel>, #tpu.dimension_semantics<parallel>, #tpu.dimension_semantics<parallel>], iteration_bounds = array<i64: 2, 1, 1>, scalar_prefetch = 0 : i64, scratch_operands = 0 : i64, tpu.core_type = #tpu.core_type<tc>, window_params = [{transform_indices = @transform_0, window_bounds = array<i64: 1, 18, 18, 4>}, {transform_indices = @transform_1, window_bounds = array<i64: 1, 16, 4, 8>}, {transform_indices = @transform_2, window_bounds = array<i64: 1, 1, 8>}, {transform_indices = @transform_3, window_bounds = array<i64: 1, 2, 2, 256, 8>}]} {
    %c16_i32 = arith.constant 16 : i32
    %0 = arith.muli %arg1, %c16_i32 : i32
    %1 = tpu.assume_multiple %0, 16 : i32
    %c0_i32 = arith.constant 0 : i32
    %2 = arith.addi %1, %c0_i32 : i32
    %c0 = arith.constant 0 : index
    %3 = arith.index_cast %2 : i32 to index
    %c0_0 = arith.constant 0 : index
    %c0_1 = arith.constant 0 : index
    %4 = vector.load %arg3[%c0, %3, %c0_0, %c0_1] : memref<1x18x18x4xbf16, #tpu.memory_space<vmem>>, vector<1x16x16x4xbf16>
    %5 = vector.shape_cast %4 : vector<1x16x16x4xbf16> to vector<16x16x4xbf16>
    %6 = vector.shape_cast %5 : vector<16x16x4xbf16> to vector<256x4xbf16>
    %c0_i32_2 = arith.constant 0 : i32
    %7 = arith.addi %1, %c0_i32_2 : i32
    %c0_3 = arith.constant 0 : index
    %8 = arith.index_cast %7 : i32 to index
    %c1 = arith.constant 1 : index
    %c0_4 = arith.constant 0 : index
    %9 = vector.load %arg3[%c0_3, %8, %c1, %c0_4] : memref<1x18x18x4xbf16, #tpu.memory_space<vmem>>, vector<1x16x16x4xbf16>
    %10 = vector.shape_cast %9 : vector<1x16x16x4xbf16> to vector<16x16x4xbf16>
    %11 = vector.shape_cast %10 : vector<16x16x4xbf16> to vector<256x4xbf16>
    %c0_i32_5 = arith.constant 0 : i32
    %12 = arith.addi %1, %c0_i32_5 : i32
    %c0_6 = arith.constant 0 : index
    %13 = arith.index_cast %12 : i32 to index
    %c2 = arith.constant 2 : index
    %c0_7 = arith.constant 0 : index
    %14 = vector.load %arg3[%c0_6, %13, %c2, %c0_7] : memref<1x18x18x4xbf16, #tpu.memory_space<vmem>>, vector<1x16x16x4xbf16>
    %15 = vector.shape_cast %14 : vector<1x16x16x4xbf16> to vector<16x16x4xbf16>
    %16 = vector.shape_cast %15 : vector<16x16x4xbf16> to vector<256x4xbf16>
    %c1_i32 = arith.constant 1 : i32
    %17 = arith.addi %1, %c1_i32 : i32
    %c0_8 = arith.constant 0 : index
    %18 = arith.index_cast %17 : i32 to index
    %c0_9 = arith.constant 0 : index
    %c0_10 = arith.constant 0 : index
    %19 = vector.load %arg3[%c0_8, %18, %c0_9, %c0_10] : memref<1x18x18x4xbf16, #tpu.memory_space<vmem>>, vector<1x16x16x4xbf16>
    %20 = vector.shape_cast %19 : vector<1x16x16x4xbf16> to vector<16x16x4xbf16>
    %21 = vector.shape_cast %20 : vector<16x16x4xbf16> to vector<256x4xbf16>
    %c1_i32_11 = arith.constant 1 : i32
    %22 = arith.addi %1, %c1_i32_11 : i32
    %c0_12 = arith.constant 0 : index
    %23 = arith.index_cast %22 : i32 to index
    %c1_13 = arith.constant 1 : index
    %c0_14 = arith.constant 0 : index
    %24 = vector.load %arg3[%c0_12, %23, %c1_13, %c0_14] : memref<1x18x18x4xbf16, #tpu.memory_space<vmem>>, vector<1x16x16x4xbf16>
    %25 = vector.shape_cast %24 : vector<1x16x16x4xbf16> to vector<16x16x4xbf16>
    %26 = vector.shape_cast %25 : vector<16x16x4xbf16> to vector<256x4xbf16>
    %c1_i32_15 = arith.constant 1 : i32
    %27 = arith.addi %1, %c1_i32_15 : i32
    %c0_16 = arith.constant 0 : index
    %28 = arith.index_cast %27 : i32 to index
    %c2_17 = arith.constant 2 : index
    %c0_18 = arith.constant 0 : index
    %29 = vector.load %arg3[%c0_16, %28, %c2_17, %c0_18] : memref<1x18x18x4xbf16, #tpu.memory_space<vmem>>, vector<1x16x16x4xbf16>
    %30 = vector.shape_cast %29 : vector<1x16x16x4xbf16> to vector<16x16x4xbf16>
    %31 = vector.shape_cast %30 : vector<16x16x4xbf16> to vector<256x4xbf16>
    %c2_i32 = arith.constant 2 : i32
    %32 = arith.addi %1, %c2_i32 : i32
    %c0_19 = arith.constant 0 : index
    %33 = arith.index_cast %32 : i32 to index
    %c0_20 = arith.constant 0 : index
    %c0_21 = arith.constant 0 : index
    %34 = vector.load %arg3[%c0_19, %33, %c0_20, %c0_21] : memref<1x18x18x4xbf16, #tpu.memory_space<vmem>>, vector<1x16x16x4xbf16>
    %35 = vector.shape_cast %34 : vector<1x16x16x4xbf16> to vector<16x16x4xbf16>
    %36 = vector.shape_cast %35 : vector<16x16x4xbf16> to vector<256x4xbf16>
    %c2_i32_22 = arith.constant 2 : i32
    %37 = arith.addi %1, %c2_i32_22 : i32
    %c0_23 = arith.constant 0 : index
    %38 = arith.index_cast %37 : i32 to index
    %c1_24 = arith.constant 1 : index
    %c0_25 = arith.constant 0 : index
    %39 = vector.load %arg3[%c0_23, %38, %c1_24, %c0_25] : memref<1x18x18x4xbf16, #tpu.memory_space<vmem>>, vector<1x16x16x4xbf16>
    %40 = vector.shape_cast %39 : vector<1x16x16x4xbf16> to vector<16x16x4xbf16>
    %41 = vector.shape_cast %40 : vector<16x16x4xbf16> to vector<256x4xbf16>
    %c2_i32_26 = arith.constant 2 : i32
    %42 = arith.addi %1, %c2_i32_26 : i32
    %c0_27 = arith.constant 0 : index
    %43 = arith.index_cast %42 : i32 to index
    %c2_28 = arith.constant 2 : index
    %c0_29 = arith.constant 0 : index
    %44 = vector.load %arg3[%c0_27, %43, %c2_28, %c0_29] : memref<1x18x18x4xbf16, #tpu.memory_space<vmem>>, vector<1x16x16x4xbf16>
    %45 = vector.shape_cast %44 : vector<1x16x16x4xbf16> to vector<16x16x4xbf16>
    %46 = vector.shape_cast %45 : vector<16x16x4xbf16> to vector<256x4xbf16>
    %c0_30 = arith.constant 0 : index
    %c0_31 = arith.constant 0 : index
    %c0_32 = arith.constant 0 : index
    %47 = vector.load %arg5[%c0_30, %c0_31, %c0_32] : memref<1x1x8xf32, #tpu.memory_space<vmem>>, vector<1x1x8xf32>
    %48 = vector.shape_cast %47 : vector<1x1x8xf32> to vector<8xf32>
    %c0_33 = arith.constant 0 : index
    %c0_34 = arith.constant 0 : index
    %c0_35 = arith.constant 0 : index
    %c0_36 = arith.constant 0 : index
    %49 = vector.load %arg4[%c0_33, %c0_34, %c0_35, %c0_36] : memref<1x16x4x8xbf16, #tpu.memory_space<vmem>>, vector<1x1x4x8xbf16>
    %50 = vector.shape_cast %49 : vector<1x1x4x8xbf16> to vector<4x8xbf16>
    %cst = arith.constant dense<0.000000e+00> : vector<256x8xf32>
    %51 = tpu.matmul %6, %50, %cst {dimension_numbers = #tpu.dot_dimension_numbers<[1], [0], [0], [1], [0, 0, 1, 1], [], []>} : vector<256x4xbf16>, vector<4x8xbf16>, vector<256x8xf32> -> vector<256x8xf32>
    %c0_37 = arith.constant 0 : index
    %c1_38 = arith.constant 1 : index
    %c0_39 = arith.constant 0 : index
    %c0_40 = arith.constant 0 : index
    %52 = vector.load %arg4[%c0_37, %c1_38, %c0_39, %c0_40] : memref<1x16x4x8xbf16, #tpu.memory_space<vmem>>, vector<1x1x4x8xbf16>
    %53 = vector.shape_cast %52 : vector<1x1x4x8xbf16> to vector<4x8xbf16>
    %cst_41 = arith.constant dense<0.000000e+00> : vector<256x8xf32>
    %54 = tpu.matmul %11, %53, %cst_41 {dimension_numbers = #tpu.dot_dimension_numbers<[1], [0], [0], [1], [0, 0, 1, 1], [], []>} : vector<256x4xbf16>, vector<4x8xbf16>, vector<256x8xf32> -> vector<256x8xf32>
    %55 = arith.addf %51, %54 : vector<256x8xf32>
    %c0_42 = arith.constant 0 : index
    %c2_43 = arith.constant 2 : index
    %c0_44 = arith.constant 0 : index
    %c0_45 = arith.constant 0 : index
    %56 = vector.load %arg4[%c0_42, %c2_43, %c0_44, %c0_45] : memref<1x16x4x8xbf16, #tpu.memory_space<vmem>>, vector<1x1x4x8xbf16>
    %57 = vector.shape_cast %56 : vector<1x1x4x8xbf16> to vector<4x8xbf16>
    %cst_46 = arith.constant dense<0.000000e+00> : vector<256x8xf32>
    %58 = tpu.matmul %21, %57, %cst_46 {dimension_numbers = #tpu.dot_dimension_numbers<[1], [0], [0], [1], [0, 0, 1, 1], [], []>} : vector<256x4xbf16>, vector<4x8xbf16>, vector<256x8xf32> -> vector<256x8xf32>
    %59 = arith.addf %55, %58 : vector<256x8xf32>
    %c0_47 = arith.constant 0 : index
    %c3 = arith.constant 3 : index
    %c0_48 = arith.constant 0 : index
    %c0_49 = arith.constant 0 : index
    %60 = vector.load %arg4[%c0_47, %c3, %c0_48, %c0_49] : memref<1x16x4x8xbf16, #tpu.memory_space<vmem>>, vector<1x1x4x8xbf16>
    %61 = vector.shape_cast %60 : vector<1x1x4x8xbf16> to vector<4x8xbf16>
    %cst_50 = arith.constant dense<0.000000e+00> : vector<256x8xf32>
    %62 = tpu.matmul %26, %61, %cst_50 {dimension_numbers = #tpu.dot_dimension_numbers<[1], [0], [0], [1], [0, 0, 1, 1], [], []>} : vector<256x4xbf16>, vector<4x8xbf16>, vector<256x8xf32> -> vector<256x8xf32>
    %63 = arith.addf %59, %62 : vector<256x8xf32>
    %64 = vector.shape_cast %48 : vector<8xf32> to vector<1x8xf32>
    %65 = vector.broadcast %64 : vector<1x8xf32> to vector<256x8xf32>
    %66 = arith.addf %63, %65 : vector<256x8xf32>
    %cst_51 = arith.constant 0.000000e+00 : f32
    %67 = vector.broadcast %cst_51 : f32 to vector<256x8xf32>
    %68 = arith.maximumf %66, %67 : vector<256x8xf32>
    %c0_52 = arith.constant 0 : index
    %c0_53 = arith.constant 0 : index
    %c0_54 = arith.constant 0 : index
    %c0_55 = arith.constant 0 : index
    %c0_56 = arith.constant 0 : index
    %69 = vector.load %arg6[%c0_52, %c0_53, %c0_54, %c0_55, %c0_56] : memref<1x2x2x256x8xf32, #tpu.memory_space<vmem>>, vector<1x1x1x256x8xf32>
    %70 = vector.shape_cast %69 : vector<1x1x1x256x8xf32> to vector<256x8xf32>
    %71 = vector.shape_cast %68 : vector<256x8xf32> to vector<1x1x1x256x8xf32>
    tpu.vector_store %arg6[%c0_52, %c0_53, %c0_54, %c0_55, %c0_56], %71 {strides = array<i32>} : memref<1x2x2x256x8xf32, #tpu.memory_space<vmem>>, vector<1x1x1x256x8xf32>,
    %c0_57 = arith.constant 0 : index
    %c4 = arith.constant 4 : index
    %c0_58 = arith.constant 0 : index
    %c0_59 = arith.constant 0 : index
    %72 = vector.load %arg4[%c0_57, %c4, %c0_58, %c0_59] : memref<1x16x4x8xbf16, #tpu.memory_space<vmem>>, vector<1x1x4x8xbf16>
    %73 = vector.shape_cast %72 : vector<1x1x4x8xbf16> to vector<4x8xbf16>
    %cst_60 = arith.constant dense<0.000000e+00> : vector<256x8xf32>
    %74 = tpu.matmul %11, %73, %cst_60 {dimension_numbers = #tpu.dot_dimension_numbers<[1], [0], [0], [1], [0, 0, 1, 1], [], []>} : vector<256x4xbf16>, vector<4x8xbf16>, vector<256x8xf32> -> vector<256x8xf32>
    %c0_61 = arith.constant 0 : index
    %c5 = arith.constant 5 : index
    %c0_62 = arith.constant 0 : index
    %c0_63 = arith.constant 0 : index
    %75 = vector.load %arg4[%c0_61, %c5, %c0_62, %c0_63] : memref<1x16x4x8xbf16, #tpu.memory_space<vmem>>, vector<1x1x4x8xbf16>
    %76 = vector.shape_cast %75 : vector<1x1x4x8xbf16> to vector<4x8xbf16>
    %cst_64 = arith.constant dense<0.000000e+00> : vector<256x8xf32>
    %77 = tpu.matmul %16, %76, %cst_64 {dimension_numbers = #tpu.dot_dimension_numbers<[1], [0], [0], [1], [0, 0, 1, 1], [], []>} : vector<256x4xbf16>, vector<4x8xbf16>, vector<256x8xf32> -> vector<256x8xf32>
    %78 = arith.addf %74, %77 : vector<256x8xf32>
    %c0_65 = arith.constant 0 : index
    %c6 = arith.constant 6 : index
    %c0_66 = arith.constant 0 : index
    %c0_67 = arith.constant 0 : index
    %79 = vector.load %arg4[%c0_65, %c6, %c0_66, %c0_67] : memref<1x16x4x8xbf16, #tpu.memory_space<vmem>>, vector<1x1x4x8xbf16>
    %80 = vector.shape_cast %79 : vector<1x1x4x8xbf16> to vector<4x8xbf16>
    %cst_68 = arith.constant dense<0.000000e+00> : vector<256x8xf32>
    %81 = tpu.matmul %26, %80, %cst_68 {dimension_numbers = #tpu.dot_dimension_numbers<[1], [0], [0], [1], [0, 0, 1, 1], [], []>} : vector<256x4xbf16>, vector<4x8xbf16>, vector<256x8xf32> -> vector<256x8xf32>
    %82 = arith.addf %78, %81 : vector<256x8xf32>
    %c0_69 = arith.constant 0 : index
    %c7 = arith.constant 7 : index
    %c0_70 = arith.constant 0 : index
    %c0_71 = arith.constant 0 : index
    %83 = vector.load %arg4[%c0_69, %c7, %c0_70, %c0_71] : memref<1x16x4x8xbf16, #tpu.memory_space<vmem>>, vector<1x1x4x8xbf16>
    %84 = vector.shape_cast %83 : vector<1x1x4x8xbf16> to vector<4x8xbf16>
    %cst_72 = arith.constant dense<0.000000e+00> : vector<256x8xf32>
    %85 = tpu.matmul %31, %84, %cst_72 {dimension_numbers = #tpu.dot_dimension_numbers<[1], [0], [0], [1], [0, 0, 1, 1], [], []>} : vector<256x4xbf16>, vector<4x8xbf16>, vector<256x8xf32> -> vector<256x8xf32>
    %86 = arith.addf %82, %85 : vector<256x8xf32>
    %87 = vector.shape_cast %48 : vector<8xf32> to vector<1x8xf32>
    %88 = vector.broadcast %87 : vector<1x8xf32> to vector<256x8xf32>
    %89 = arith.addf %86, %88 : vector<256x8xf32>
    %cst_73 = arith.constant 0.000000e+00 : f32
    %90 = vector.broadcast %cst_73 : f32 to vector<256x8xf32>
    %91 = arith.maximumf %89, %90 : vector<256x8xf32>
    %c0_74 = arith.constant 0 : index
    %c0_75 = arith.constant 0 : index
    %c1_76 = arith.constant 1 : index
    %c0_77 = arith.constant 0 : index
    %c0_78 = arith.constant 0 : index
    %92 = vector.load %arg6[%c0_74, %c0_75, %c1_76, %c0_77, %c0_78] : memref<1x2x2x256x8xf32, #tpu.memory_space<vmem>>, vector<1x1x1x256x8xf32>
    %93 = vector.shape_cast %92 : vector<1x1x1x256x8xf32> to vector<256x8xf32>
    %94 = vector.shape_cast %91 : vector<256x8xf32> to vector<1x1x1x256x8xf32>
    tpu.vector_store %arg6[%c0_74, %c0_75, %c1_76, %c0_77, %c0_78], %94 {strides = array<i32>} : memref<1x2x2x256x8xf32, #tpu.memory_space<vmem>>, vector<1x1x1x256x8xf32>,
    %c0_79 = arith.constant 0 : index
    %c8 = arith.constant 8 : index
    %c0_80 = arith.constant 0 : index
    %c0_81 = arith.constant 0 : index
    %95 = vector.load %arg4[%c0_79, %c8, %c0_80, %c0_81] : memref<1x16x4x8xbf16, #tpu.memory_space<vmem>>, vector<1x1x4x8xbf16>
    %96 = vector.shape_cast %95 : vector<1x1x4x8xbf16> to vector<4x8xbf16>
    %cst_82 = arith.constant dense<0.000000e+00> : vector<256x8xf32>
    %97 = tpu.matmul %21, %96, %cst_82 {dimension_numbers = #tpu.dot_dimension_numbers<[1], [0], [0], [1], [0, 0, 1, 1], [], []>} : vector<256x4xbf16>, vector<4x8xbf16>, vector<256x8xf32> -> vector<256x8xf32>
    %c0_83 = arith.constant 0 : index
    %c9 = arith.constant 9 : index
    %c0_84 = arith.constant 0 : index
    %c0_85 = arith.constant 0 : index
    %98 = vector.load %arg4[%c0_83, %c9, %c0_84, %c0_85] : memref<1x16x4x8xbf16, #tpu.memory_space<vmem>>, vector<1x1x4x8xbf16>
    %99 = vector.shape_cast %98 : vector<1x1x4x8xbf16> to vector<4x8xbf16>
    %cst_86 = arith.constant dense<0.000000e+00> : vector<256x8xf32>
    %100 = tpu.matmul %26, %99, %cst_86 {dimension_numbers = #tpu.dot_dimension_numbers<[1], [0], [0], [1], [0, 0, 1, 1], [], []>} : vector<256x4xbf16>, vector<4x8xbf16>, vector<256x8xf32> -> vector<256x8xf32>
    %101 = arith.addf %97, %100 : vector<256x8xf32>
    %c0_87 = arith.constant 0 : index
    %c10 = arith.constant 10 : index
    %c0_88 = arith.constant 0 : index
    %c0_89 = arith.constant 0 : index
    %102 = vector.load %arg4[%c0_87, %c10, %c0_88, %c0_89] : memref<1x16x4x8xbf16, #tpu.memory_space<vmem>>, vector<1x1x4x8xbf16>
    %103 = vector.shape_cast %102 : vector<1x1x4x8xbf16> to vector<4x8xbf16>
    %cst_90 = arith.constant dense<0.000000e+00> : vector<256x8xf32>
    %104 = tpu.matmul %36, %103, %cst_90 {dimension_numbers = #tpu.dot_dimension_numbers<[1], [0], [0], [1], [0, 0, 1, 1], [], []>} : vector<256x4xbf16>, vector<4x8xbf16>, vector<256x8xf32> -> vector<256x8xf32>
    %105 = arith.addf %101, %104 : vector<256x8xf32>
    %c0_91 = arith.constant 0 : index
    %c11 = arith.constant 11 : index
    %c0_92 = arith.constant 0 : index
    %c0_93 = arith.constant 0 : index
    %106 = vector.load %arg4[%c0_91, %c11, %c0_92, %c0_93] : memref<1x16x4x8xbf16, #tpu.memory_space<vmem>>, vector<1x1x4x8xbf16>
    %107 = vector.shape_cast %106 : vector<1x1x4x8xbf16> to vector<4x8xbf16>
    %cst_94 = arith.constant dense<0.000000e+00> : vector<256x8xf32>
    %108 = tpu.matmul %41, %107, %cst_94 {dimension_numbers = #tpu.dot_dimension_numbers<[1], [0], [0], [1], [0, 0, 1, 1], [], []>} : vector<256x4xbf16>, vector<4x8xbf16>, vector<256x8xf32> -> vector<256x8xf32>
    %109 = arith.addf %105, %108 : vector<256x8xf32>
    %110 = vector.shape_cast %48 : vector<8xf32> to vector<1x8xf32>
    %111 = vector.broadcast %110 : vector<1x8xf32> to vector<256x8xf32>
    %112 = arith.addf %109, %111 : vector<256x8xf32>
    %cst_95 = arith.constant 0.000000e+00 : f32
    %113 = vector.broadcast %cst_95 : f32 to vector<256x8xf32>
    %114 = arith.maximumf %112, %113 : vector<256x8xf32>
    %c0_96 = arith.constant 0 : index
    %c1_97 = arith.constant 1 : index
    %c0_98 = arith.constant 0 : index
    %c0_99 = arith.constant 0 : index
    %c0_100 = arith.constant 0 : index
    %115 = vector.load %arg6[%c0_96, %c1_97, %c0_98, %c0_99, %c0_100] : memref<1x2x2x256x8xf32, #tpu.memory_space<vmem>>, vector<1x1x1x256x8xf32>
    %116 = vector.shape_cast %115 : vector<1x1x1x256x8xf32> to vector<256x8xf32>
    %117 = vector.shape_cast %114 : vector<256x8xf32> to vector<1x1x1x256x8xf32>
    tpu.vector_store %arg6[%c0_96, %c1_97, %c0_98, %c0_99, %c0_100], %117 {strides = array<i32>} : memref<1x2x2x256x8xf32, #tpu.memory_space<vmem>>, vector<1x1x1x256x8xf32>,
    %c0_101 = arith.constant 0 : index
    %c12 = arith.constant 12 : index
    %c0_102 = arith.constant 0 : index
    %c0_103 = arith.constant 0 : index
    %118 = vector.load %arg4[%c0_101, %c12, %c0_102, %c0_103] : memref<1x16x4x8xbf16, #tpu.memory_space<vmem>>, vector<1x1x4x8xbf16>
    %119 = vector.shape_cast %118 : vector<1x1x4x8xbf16> to vector<4x8xbf16>
    %cst_104 = arith.constant dense<0.000000e+00> : vector<256x8xf32>
    %120 = tpu.matmul %26, %119, %cst_104 {dimension_numbers = #tpu.dot_dimension_numbers<[1], [0], [0], [1], [0, 0, 1, 1], [], []>} : vector<256x4xbf16>, vector<4x8xbf16>, vector<256x8xf32> -> vector<256x8xf32>
    %c0_105 = arith.constant 0 : index
    %c13 = arith.constant 13 : index
    %c0_106 = arith.constant 0 : index
    %c0_107 = arith.constant 0 : index
    %121 = vector.load %arg4[%c0_105, %c13, %c0_106, %c0_107] : memref<1x16x4x8xbf16, #tpu.memory_space<vmem>>, vector<1x1x4x8xbf16>
    %122 = vector.shape_cast %121 : vector<1x1x4x8xbf16> to vector<4x8xbf16>
    %cst_108 = arith.constant dense<0.000000e+00> : vector<256x8xf32>
    %123 = tpu.matmul %31, %122, %cst_108 {dimension_numbers = #tpu.dot_dimension_numbers<[1], [0], [0], [1], [0, 0, 1, 1], [], []>} : vector<256x4xbf16>, vector<4x8xbf16>, vector<256x8xf32> -> vector<256x8xf32>
    %124 = arith.addf %120, %123 : vector<256x8xf32>
    %c0_109 = arith.constant 0 : index
    %c14 = arith.constant 14 : index
    %c0_110 = arith.constant 0 : index
    %c0_111 = arith.constant 0 : index
    %125 = vector.load %arg4[%c0_109, %c14, %c0_110, %c0_111] : memref<1x16x4x8xbf16, #tpu.memory_space<vmem>>, vector<1x1x4x8xbf16>
    %126 = vector.shape_cast %125 : vector<1x1x4x8xbf16> to vector<4x8xbf16>
    %cst_112 = arith.constant dense<0.000000e+00> : vector<256x8xf32>
    %127 = tpu.matmul %41, %126, %cst_112 {dimension_numbers = #tpu.dot_dimension_numbers<[1], [0], [0], [1], [0, 0, 1, 1], [], []>} : vector<256x4xbf16>, vector<4x8xbf16>, vector<256x8xf32> -> vector<256x8xf32>
    %128 = arith.addf %124, %127 : vector<256x8xf32>
    %c0_113 = arith.constant 0 : index
    %c15 = arith.constant 15 : index
    %c0_114 = arith.constant 0 : index
    %c0_115 = arith.constant 0 : index
    %129 = vector.load %arg4[%c0_113, %c15, %c0_114, %c0_115] : memref<1x16x4x8xbf16, #tpu.memory_space<vmem>>, vector<1x1x4x8xbf16>
    %130 = vector.shape_cast %129 : vector<1x1x4x8xbf16> to vector<4x8xbf16>
    %cst_116 = arith.constant dense<0.000000e+00> : vector<256x8xf32>
    %131 = tpu.matmul %46, %130, %cst_116 {dimension_numbers = #tpu.dot_dimension_numbers<[1], [0], [0], [1], [0, 0, 1, 1], [], []>} : vector<256x4xbf16>, vector<4x8xbf16>, vector<256x8xf32> -> vector<256x8xf32>
    %132 = arith.addf %128, %131 : vector<256x8xf32>
    %133 = vector.shape_cast %48 : vector<8xf32> to vector<1x8xf32>
    %134 = vector.broadcast %133 : vector<1x8xf32> to vector<256x8xf32>
    %135 = arith.addf %132, %134 : vector<256x8xf32>
    %cst_117 = arith.constant 0.000000e+00 : f32
    %136 = vector.broadcast %cst_117 : f32 to vector<256x8xf32>
    %137 = arith.maximumf %135, %136 : vector<256x8xf32>
    %c0_118 = arith.constant 0 : index
    %c1_119 = arith.constant 1 : index
    %c1_120 = arith.constant 1 : index
    %c0_121 = arith.constant 0 : index
    %c0_122 = arith.constant 0 : index
    %138 = vector.load %arg6[%c0_118, %c1_119, %c1_120, %c0_121, %c0_122] : memref<1x2x2x256x8xf32, #tpu.memory_space<vmem>>, vector<1x1x1x256x8xf32>
    %139 = vector.shape_cast %138 : vector<1x1x1x256x8xf32> to vector<256x8xf32>
    %140 = vector.shape_cast %137 : vector<256x8xf32> to vector<1x1x1x256x8xf32>
    tpu.vector_store %arg6[%c0_118, %c1_119, %c1_120, %c0_121, %c0_122], %140 {strides = array<i32>} : memref<1x2x2x256x8xf32, #tpu.memory_space<vmem>>, vector<1x1x1x256x8xf32>,
    return
  }
  func.func @transform_0(%arg0: i32, %arg1: i32, %arg2: i32) -> (i32, i32, i32, i32) {
    %c0_i32 = arith.constant 0 : i32
    %c0_i32_0 = arith.constant 0 : i32
    %c0_i32_1 = arith.constant 0 : i32
    %c0_i32_2 = arith.constant 0 : i32
    return %arg0, %c0_i32, %c0_i32_0, %c0_i32_1 : i32, i32, i32, i32
  }
  func.func @transform_1(%arg0: i32, %arg1: i32, %arg2: i32) -> (i32, i32, i32, i32) {
    %c0_i32 = arith.constant 0 : i32
    %c0_i32_0 = arith.constant 0 : i32
    %c0_i32_1 = arith.constant 0 : i32
    return %arg0, %c0_i32, %c0_i32_0, %arg2 : i32, i32, i32, i32
  }
  func.func @transform_2(%arg0: i32, %arg1: i32, %arg2: i32) -> (i32, i32, i32) {
    %c0_i32 = arith.constant 0 : i32
    %c0_i32_0 = arith.constant 0 : i32
    return %arg0, %c0_i32, %arg2 : i32, i32, i32
  }
  func.func @transform_3(%arg0: i32, %arg1: i32, %arg2: i32) -> (i32, i32, i32, i32, i32) {
    %c0_i32 = arith.constant 0 : i32
    %c0_i32_0 = arith.constant 0 : i32
    %c0_i32_1 = arith.constant 0 : i32
    return %arg0, %c0_i32, %c0_i32_0, %arg1, %arg2 : i32, i32, i32, i32, i32
  }
}

</mosaic_0001>

<bundles_post_ra>
// kernel: tpu_custom_call.1
= control target key start
LH: loop header
LB: loop body
LE: loop exit
PB: predicated region body
PF: predicated region fallthrough
CT: control target
= control target key end

     0   :  { %s8496_s12 = smov 0   ;;  %s8498_s13 = smov 0   ;;  %s11343_s0 = inlined_call_operand.vmem [shape: bf16[2,18,18,4], index: 0, kind: input, shape index: {}]   ;;  %s11344_s1 = inlined_call_operand.vmem [shape: bf16[2,16,4,8], index: 1, kind: input, shape index: {}]   ;;  %s11345_s2 = inlined_call_operand.vmem [shape: f32[2,1,8], index: 2, kind: input, shape index: {}]   ;;  %s11346_s3 = inlined_call_operand.vmem [shape: f32[2,2,2,256,8], index: 3, kind: output, shape index: {}]  }
   0x1   :  { %s8500_s14 = smov 0  }
   0x2 LB: > { %s32_s15 = sadd.s32 1, %s8470_s13  ;;  %p6466_p0 = scmp.ge.s32.totalorder %s8474_s14, 1  ;;  %s8474_s14 = sphi %s8500_s14, %s13_s14   ;;  %s8470_s13 = sphi %s8498_s13, %s11630_s13   ;;  %s8466_s12 = sphi %s8496_s12, %s11629_s12  }
   0x3   : > { %p34_p1 = scmp.ge.s32.totalorder %s32_s15, 2  ;;  %p188_p2 = scmp.lt.s32.totalorder %s8474_s14, 3 }
   0x5   : > { %s11632_s15 = smov (%p34_p1, %s32_s15), 0  ;;  %p189_p3 = pnand %p6466_p0, %p188_p2 }
   0x7   : > { %192 = sbr.rel (%p189_p3) target bundleno = 792 (0x318), region = 32 }
   0xe   : > { %p233_p4 = scmp.lt.s32.totalorder %s8466_s12, 1  ;;  %vm2209_vm0 = vcmask 1041408   ;;  %vm769_vm1 = vcmask 1042432   ;;  %vm770_vm2 = vcmask 1046532   ;;  %vm2160_vm3 = vcmask 31744  }
   0xf   : > { %vm318_vm4 = vsmask.f32 3328  ;;  %vm319_vm5 = vsmask.f32 7440  ;;  %vm8544_vm6 = vmor %vm769_vm1, %vm770_vm2  ;;  %v11428_v8 = vmov 0  ;;  %vm3324_vm8 = vcmask 64512  }
  0x10   : > { %s11634_s12 = smov (!%p233_p4, %s8466_s12), 1  ;;  %v11429_v8 = vsel %vm8544_vm6, 4294967295, %v11428_v8  ;;  %vm8591_vm7 = vmor %vm318_vm4, %vm319_vm5 }
  0x11   : > { %s7162_s16 = sshll.u32 %s11634_s12, 5  ;;  %s8380_s17 = smul.u32 216, %s11634_s12  ;;  %11430 = vst [vmem:[#allocation2_spill] sm:$0xff] %v11429_v8 }
  0x12   : > { %s8521_s20 = scalar_lea.vmem %s11344_s1, %s7162_s16  ;;  %s10617_s26 = scalar_lea.vmem %s11345_s2, %s11634_s12 }
  0x13   : > { %v6781_v0 = vld [vmem:[%s8521_s20 + $0xa] sm:$0x3]  ;;  %v6648_v1 = vld [vmem:[%s8521_s20 + $0x2] sm:$0x3]  ;;  %s8528_s23 = scalar_lea.vmem %s11343_s0, %s8380_s17  ;;  %v8531_v2 = vld [vmem:[%s8521_s20] sm:$0x3] }
  0x14   : > { %8368 = vmatprep.subr.msk.bf16.mxu1 %vm2209_vm0, %v6781_v0  ;;  %v3458_v3 = vsel %vm2209_vm0, %v6781_v0, 0  ;;  %8364 = vmatprep.subr.msk.bf16.mxu0 %vm2209_vm0, %v6648_v1  ;;  %v8537_v4 = vld [vmem:[%s8528_s23 + $0x4] sm:$0xf]  ;;  %v302_v5 = vld [vmem:[%s8528_s23 + $0x8] sm:$0x1]  ;;  %v2211_v6 = vsel %vm2209_vm0, %v6648_v1, 0 }
  0x15   : > { %7573 = vmatpush3.bf16.msra.mxu1 %v3458_v3  ;;  %v705_v7 = vld [vmem:[%s8528_s23] sm:$0xe]  ;;  %v774_v9 = vrot.slane %v8537_v4, 5  ;;  %v777_v10 = vrot.slane %v302_v5, 5  ;;  %7437 = vmatpush3.bf16.msra.mxu0 %v2211_v6  ;;  %v8550_v11 = vld [vmem:[%s8528_s23 + $0x10] sm:$0xf] }
  0x16   : > { %v6472_v12 = vrot.slane %v705_v7, 9  ;;  %v303_v13 = vld [vmem:[%s8528_s23 + $0x14] sm:$0x1]  ;;  %v706_v14 = vld [vmem:[%s8528_s23 + $0xc] sm:$0xe]  ;;  %v781_v15 = vrot.slane %v8550_v11, 5  ;;  %8365 = vmatprep.subr.msk.bf16.mxu0 %vm2209_vm0, %v8531_v2 }
  0x17   : > { %v776_v16 = vrot.slane %v774_v9, 4  ;;  %v6473_v17 = vrot.slane %v706_v14, 9  ;;  %v784_v18 = vrot.slane %v303_v13, 5  ;;  %v8558_v19 = vld [vmem:[%s8528_s23] sm:$0xf]  ;;  %v331_v20 = vshll.u32 %v8537_v4, 16 }
  0x18   : > { %v775_v21 = vsel %vm8544_vm6, %v6472_v12, %v774_v9  ;;  %v783_v22 = vrot.slane %v781_v15, 4  ;;  %v322_v23 = vshrl.u32 %v8558_v19, 16  ;;  %v325_v24 = vshll.u32 %v8558_v19, 16  ;;  %v6780_v25 = vld [vmem:[%s8521_s20 + $0x8] sm:$0x3]  ;;  %s7163_s27 = sshll.u32 %s11634_s12, 10 }
  0x19   : > { %v778_v26 = vsel %vm8544_vm6, %v776_v16, %v777_v10  ;;  %v782_v27 = vsel %vm8544_vm6, %v6473_v17, %v781_v15  ;;  %v333_v28 = vrot.slane %v331_v20, 5  ;;  %v335_v29 = vshrl.u32 %v8537_v4, 16  ;;  %8369 = vmatprep.subr.msk.bf16.mxu1 %vm2209_vm0, %v6780_v25  ;;  %v8573_v30 = vld [vmem:[%s8528_s23 + $0xc] sm:$0xf]  ;;  %v8583_v43 = vld [vmem:[%s8528_s23 + $0x1c] sm:$0xf]  ;;  %s10685_s30 = scalar_lea.vmem %s11346_s3, %s7163_s27 }
  0x1a   : > { %v6782_v31 = vcombine.low %v775_v21, %v778_v26  ;;  %v785_v32 = vsel %vm8544_vm6, %v783_v22, %v784_v18  ;;  %v324_v33 = vrot.slane %v322_v23, 4  ;;  %v327_v34 = vrot.slane %v325_v24, 5  ;;  %v8586_v44 = vld [vmem:[%s8528_s23 + $0x20] sm:$0x1]  ;;  %v707_v50 = vld [vmem:[%s8528_s23 + $0x18] sm:$0xe] }
  0x1b   : > { %v6783_v35 = vcombine.low %v782_v27, %v785_v32  ;;  %v337_v36 = vrot.slane %v335_v29, 4  ;;  %v341_v37 = vshll.u32 %v302_v5, 16  ;;  %v346_v38 = vshrl.u32 %v8573_v30, 16  ;;  %v708_v55 = vld [vmem:[%s8528_s23 + $0x24] sm:$0xe] }
  0x1c   : > { %7574 = vmatprep.mubr.msk.bf16.mxu1 %vm2160_vm3, %v6782_v31  ;;  %v328_v39 = vor.u32 %v327_v34, %v324_v33  ;;  %v349_v40 = vshll.u32 %v8573_v30, 16  ;;  %v355_v41 = vshll.u32 %v8550_v11, 16  ;;  %v359_v42 = vshrl.u32 %v8550_v11, 16  ;;  %v8601_v60 = vld [vmem:[%s8528_s23 + $0x28] sm:$0xf] }
  0x1d   : > { %7575 = vmatmul.mubr.msk.bf16.vlgmr.msra.gmra.mrb[0].mxu1 %vm2160_vm3, %v6783_v35  ;;  %v338_v46 = vor.u32 %v337_v36, %v333_v28  ;;  %v343_v47 = vrot.slane %v341_v37, 5  ;;  %v348_v48 = vrot.slane %v346_v38, 4  ;;  %v365_v49 = vshll.u32 %v303_v13, 16  ;;  %v305_v1 = vld [vmem:[%s8528_s23 + $0x2c] sm:$0x1] }
  0x1e   : > { %v329_v51 = vrot.slane %v328_v39, 4  ;;  %v351_v52 = vrot.slane %v349_v40, 5  ;;  %v357_v53 = vrot.slane %v355_v41, 5  ;;  %v361_v54 = vrot.slane %v359_v42, 4  ;;  %v8607_v3 = vld [vmem:[%s8528_s23 + $0x18] sm:$0xf] }
  0x1f   : > { %v339_v56 = vrot.slane %v338_v46, 4  ;;  %v367_v57 = vrot.slane %v365_v49, 5  ;;  %v2487_v58 = vsel %vm2209_vm0, %v8531_v2, 0  ;;  %v3622_v59 = vsel %vm2209_vm0, %v6780_v25, 0  ;;  %v8628_v23 = vld [vmem:[%s8528_s23 + $0x24] sm:$0xf] }
  0x20   : > { %v334_v61 = vsel %vm8591_vm7, %v329_v51, %v333_v28  ;;  %v352_v62 = vor.u32 %v351_v52, %v348_v48  ;;  %v362_v63 = vor.u32 %v361_v54, %v357_v53  ;;  %7607 = vmatpush3.bf16.msra.mxu1 %v3622_v59  ;;  %v6474_v0 = vrot.slane %v707_v50, 9  ;;  %v8644_v37 = vld [vmem:[%s8528_s23 + $0x34] sm:$0xf]  ;;  %v709_v42 = vld [vmem:[%s8528_s23 + $0x30] sm:$0xe] }
  0x21   : > { %v344_v5 = vsel %vm8591_vm7, %v339_v56, %v343_v47  ;;  %v788_v6 = vrot.slane %v8583_v43, 5  ;;  %v791_v2 = vrot.slane %v8586_v44, 5  ;;  %v6475_v7 = vrot.slane %v708_v55, 9  ;;  %v306_v49 = vld [vmem:[%s8528_s23 + $0x38] sm:$0x1] }
  0x22   : > { %v8613_v9 = vcombine.low %v334_v61, %v344_v5  ;;  %v353_v10 = vrot.slane %v352_v62, 4  ;;  %v363_v12 = vrot.slane %v362_v63, 4  ;;  %v795_v13 = vrot.slane %v8601_v60, 5  ;;  %v8654_v54 = vld [vmem:[%s8528_s23 + $0x40] sm:$0xf] }
  0x23   : > { %v789_v14 = vsel %vm8544_vm6, %v6474_v0, %v788_v6  ;;  %v790_v15 = vrot.slane %v788_v6, 4  ;;  %v798_v16 = vrot.slane %v305_v1, 5  ;;  %v370_v17 = vshrl.u32 %v8607_v3, 16  ;;  %11433 = vst [vmem:[#allocation3_spill] sm:$0xff] %v8654_v54  ;;  %v710_v59 = vld [vmem:[%s8528_s23 + $0x3c] sm:$0xe] }
  0x24   : > { %7438 = vmatprep.mubr.msk.bf16.mxu0 %vm2160_vm3, %v8613_v9  ;;  %v358_v18 = vsel %vm8591_vm7, %v353_v10, %v357_v53  ;;  %v368_v20 = vsel %vm8591_vm7, %v363_v12, %v367_v57  ;;  %v796_v21 = vsel %vm8544_vm6, %v6475_v7, %v795_v13  ;;  %v797_v22 = vrot.slane %v795_v13, 4  ;;  %v307_v5 = vld [vmem:[%s8528_s23 + $0x44] sm:$0x1] }
  0x25   : > { %v8630_v24 = vcombine.low %v358_v18, %v368_v20  ;;  %v792_v25 = vsel %vm8544_vm6, %v790_v15, %v791_v2  ;;  %v372_v26 = vrot.slane %v370_v17, 4  ;;  %v373_v27 = vshll.u32 %v8607_v3, 16  ;;  %v8667_v15 = vld [vmem:[%s8528_s23 + $0x30] sm:$0xf] }
  0x26   : > { %v6784_v28 = vcombine.low %v789_v14, %v792_v25  ;;  %v799_v29 = vsel %vm8544_vm6, %v797_v22, %v798_v16  ;;  %v379_v31 = vshll.u32 %v8583_v43, 16  ;;  %v383_v32 = vshrl.u32 %v8583_v43, 16 }
  0x27   : > { %7439 = vmatmul.mubr.msk.bf16.vlgmr.msra.gmra.mrb[0].mxu0 %vm2160_vm3, %v8630_v24  ;;  %v6785_v33 = vcombine.low %v796_v21, %v799_v29  ;;  %v375_v34 = vrot.slane %v373_v27, 5  ;;  %v389_v35 = vshll.u32 %v8586_v44, 16  ;;  %v394_v36 = vshrl.u32 %v8628_v23, 16 }
  0x28   : > { %7471 = vmatpush3.bf16.msra.mxu0 %v2487_v58  ;;  %7578 = vmatprep.mubr.msk.bf16.mxu1 %vm2160_vm3, %v6784_v28  ;;  %v381_v38 = vrot.slane %v379_v31, 5  ;;  %v385_v39 = vrot.slane %v383_v32, 4  ;;  %v397_v40 = vshll.u32 %v8628_v23, 16  ;;  %v403_v41 = vshll.u32 %v8601_v60, 16  ;;  %v8685_v32 = vld [vmem:[%s8528_s23 + $0x3c] sm:$0xf] }
  0x29   : > { %7579 = vmatmul.mubr.msk.bf16.gmra.mrb[4].mxu1 %vm2160_vm3, %v6785_v33  ;;  %v376_v46 = vor.u32 %v375_v34, %v372_v26  ;;  %v391_v44 = vrot.slane %v389_v35, 5  ;;  %v396_v47 = vrot.slane %v394_v36, 4  ;;  %v407_v48 = vshrl.u32 %v8601_v60, 16  ;;  %11434 = vst [vmem:[#allocation4_spill] sm:$0xff] %v8685_v32 }
  0x2a   : > { %v386_v50 = vor.u32 %v385_v39, %v381_v38  ;;  %v399_v51 = vrot.slane %v397_v40, 5  ;;  %v405_v52 = vrot.slane %v403_v41, 5  ;;  %v413_v53 = vshll.u32 %v305_v1, 16 }
  0x2b   : > { %v377_v55 = vrot.slane %v376_v46, 4  ;;  %v409_v56 = vrot.slane %v407_v48, 4  ;;  %v6476_v57 = vrot.slane %v709_v42, 9  ;;  %v802_v58 = vrot.slane %v8644_v37, 5  ;;  %v8694_v42 = vld [vmem:[%s8528_s23 + $0x4c] sm:$0xf] }
  0x2c   : > { %v387_v61 = vrot.slane %v386_v50, 4  ;;  %v400_v62 = vor.u32 %v399_v51, %v396_v47  ;;  %v415_v63 = vrot.slane %v413_v53, 5  ;;  %v805_v0 = vrot.slane %v306_v49, 5  ;;  %v711_v46 = vld [vmem:[%s8528_s23 + $0x48] sm:$0xe] }
  0x2d   : > { %v382_v6 = vsel %vm8591_vm7, %v377_v55, %v381_v38  ;;  %v410_v2 = vor.u32 %v409_v56, %v405_v52  ;;  %v803_v1 = vsel %vm8544_vm6, %v6476_v57, %v802_v58  ;;  %v804_v7 = vrot.slane %v802_v58, 4  ;;  %v8702_v51 = vld [vmem:[%s8528_s23 + $0x50] sm:$0x1]  ;;  %v8708_v56 = vld [vmem:[%s8528_s23 + $0x58] sm:$0xf] }
  0x2e   : > { %v392_v10 = vsel %vm8591_vm7, %v387_v61, %v391_v44  ;;  %v401_v12 = vrot.slane %v400_v62, 4  ;;  %v6477_v13 = vrot.slane %v710_v59, 9  ;;  %v809_v14 = vrot.slane %v8654_v54, 5  ;;  %v712_v62 = vld [vmem:[%s8528_s23 + $0x54] sm:$0xe] }
  0x2f   : > { %v8669_v16 = vcombine.low %v382_v6, %v392_v10  ;;  %v411_v17 = vrot.slane %v410_v2, 4  ;;  %v806_v18 = vsel %vm8544_vm6, %v804_v7, %v805_v0  ;;  %v812_v20 = vrot.slane %v307_v5, 5 }
  0x30   : > { %v406_v21 = vsel %vm8591_vm7, %v401_v12, %v405_v52  ;;  %v6786_v22 = vcombine.low %v803_v1, %v806_v18  ;;  %v810_v25 = vsel %vm8544_vm6, %v6477_v13, %v809_v14  ;;  %v811_v26 = vrot.slane %v809_v14, 4  ;;  %v309_v14 = vld [vmem:[%s8528_s23 + $0x5c] sm:$0x1] }
  0x31   : > { %7442 = vmatprep.mubr.msk.bf16.mxu0 %vm2160_vm3, %v8669_v16  ;;  %v416_v27 = vsel %vm8591_vm7, %v411_v17, %v415_v63  ;;  %v418_v28 = vshrl.u32 %v8667_v15, 16  ;;  %v421_v29 = vshll.u32 %v8667_v15, 16  ;;  %v427_v31 = vshll.u32 %v8644_v37, 16 }
  0x32   : > { %v8687_v33 = vcombine.low %v406_v21, %v416_v27  ;;  %7582 = vmatprep.mubr.msk.bf16.mxu1 %vm2160_vm3, %v6786_v22  ;;  %v813_v34 = vsel %vm8544_vm6, %v811_v26, %v812_v20  ;;  %v431_v35 = vshrl.u32 %v8644_v37, 16  ;;  %v437_v36 = vshll.u32 %v306_v49, 16  ;;  %v8718_v20 = vld [vmem:[%s8528_s23 + $0x48] sm:$0xf] }
  0x33   : > { %v6787_v38 = vcombine.low %v810_v25, %v813_v34  ;;  %v420_v39 = vrot.slane %v418_v28, 4  ;;  %v423_v40 = vrot.slane %v421_v29, 5  ;;  %v429_v41 = vrot.slane %v427_v31, 5 }
  0x34   : > { %7443 = vmatmul.mubr.msk.bf16.gmra.mrb[4].mxu0 %vm2160_vm3, %v8687_v33  ;;  %v433_v44 = vrot.slane %v431_v35, 4  ;;  %v439_v47 = vrot.slane %v437_v36, 5  ;;  %v442_v48 = vshrl.u32 %v8685_v32, 16  ;;  %v445_v50 = vshll.u32 %v8685_v32, 16 }
  0x35   : > { %7583 = vmatmul.mubr.msk.bf16.gmra.mrb[8].mxu1 %vm2160_vm3, %v6787_v38  ;;  %v424_v49 = vor.u32 %v423_v40, %v420_v39  ;;  %v451_v52 = vshll.u32 %v8654_v54, 16  ;;  %v455_v53 = vshrl.u32 %v8654_v54, 16  ;;  %v461_v55 = vshll.u32 %v307_v5, 16 }
  0x36   : > { %v434_v57 = vor.u32 %v433_v44, %v429_v41  ;;  %v444_v58 = vrot.slane %v442_v48, 4  ;;  %v447_v59 = vrot.slane %v445_v50, 5  ;;  %v6478_v61 = vrot.slane %v711_v46, 9  ;;  %v8740_v44 = vld [vmem:[%s8528_s23 + $0x54] sm:$0xf] }
  0x37   : > { %v425_v63 = vrot.slane %v424_v49, 4  ;;  %v453_v0 = vrot.slane %v451_v52, 5  ;;  %v457_v6 = vrot.slane %v455_v53, 4  ;;  %v463_v2 = vrot.slane %v461_v55, 5 }
  0x38   : > { %v435_v1 = vrot.slane %v434_v57, 4  ;;  %v448_v7 = vor.u32 %v447_v59, %v444_v58  ;;  %v816_v10 = vrot.slane %v8694_v42, 5  ;;  %v819_v12 = vrot.slane %v8702_v51, 5  ;;  %v8750_v58 = vld [vmem:[%s8528_s23 + $0x64] sm:$0xf] }
  0x39   : > { %v430_v5 = vsel %vm8591_vm7, %v425_v63, %v429_v41  ;;  %v458_v13 = vor.u32 %v457_v6, %v453_v0  ;;  %v6479_v17 = vrot.slane %v712_v62, 9  ;;  %v823_v18 = vrot.slane %v8708_v56, 5  ;;  %v8753_v59 = vld [vmem:[%s8528_s23 + $0x68] sm:$0x1] }
  0x3a   : > { %v440_v21 = vsel %vm8591_vm7, %v435_v1, %v439_v47  ;;  %v449_v22 = vrot.slane %v448_v7, 4  ;;  %v817_v25 = vsel %vm8544_vm6, %v6478_v61, %v816_v10  ;;  %v818_v26 = vrot.slane %v816_v10, 4  ;;  %v713_v61 = vld [vmem:[%s8528_s23 + $0x60] sm:$0xe] }
  0x3b   : > { %v8724_v27 = vcombine.low %v430_v5, %v440_v21  ;;  %v459_v28 = vrot.slane %v458_v13, 4  ;;  %v824_v29 = vsel %vm8544_vm6, %v6479_v17, %v823_v18  ;;  %v825_v31 = vrot.slane %v823_v18, 4  ;;  %v8768_v21 = vld [vmem:[%s8521_s20 + $0x4] sm:$0x3] }
  0x3c   : > { %v454_v34 = vsel %vm8591_vm7, %v449_v22, %v453_v0  ;;  %v820_v35 = vsel %vm8544_vm6, %v818_v26, %v819_v12  ;;  %v826_v36 = vrot.slane %v309_v14, 5  ;;  %v466_v38 = vshrl.u32 %v8718_v20, 16  ;;  %v714_v12 = vld [vmem:[%s8528_s23 + $0x6c] sm:$0xe]  ;;  %8366 = vmatprep.subr.msk.bf16.mxu0 %vm2209_vm0, %v8768_v21 }
  0x3d   : > { %7446 = vmatprep.mubr.msk.bf16.mxu0 %vm2160_vm3, %v8724_v27  ;;  %v464_v39 = vsel %vm8591_vm7, %v459_v28, %v463_v2  ;;  %v6788_v40 = vcombine.low %v817_v25, %v820_v35  ;;  %v469_v41 = vshll.u32 %v8718_v20, 16  ;;  %v475_v46 = vshll.u32 %v8694_v42, 16  ;;  %v8762_v2 = vld [vmem:[%s8528_s23 + $0x70] sm:$0xf] }
  0x3e   : > { %v8742_v47 = vcombine.low %v454_v34, %v464_v39  ;;  %v827_v48 = vsel %vm8544_vm6, %v825_v31, %v826_v36  ;;  %v468_v50 = vrot.slane %v466_v38, 4  ;;  %v479_v49 = vshrl.u32 %v8694_v42, 16  ;;  %v311_v39 = vld [vmem:[%s8528_s23 + $0x74] sm:$0x1] }
  0x3f   : > { %7586 = vmatprep.mubr.msk.bf16.mxu1 %vm2160_vm3, %v6788_v40  ;;  %v6789_v52 = vcombine.low %v824_v29, %v827_v48  ;;  %v471_v53 = vrot.slane %v469_v41, 5  ;;  %v477_v55 = vrot.slane %v475_v46, 5  ;;  %v485_v57 = vshll.u32 %v8702_v51, 16  ;;  %v8773_v29 = vld [vmem:[%s8521_s20 + $0xc] sm:$0x3] }
  0x40   : > { %7447 = vmatmul.mubr.msk.bf16.gmra.mrb[8].mxu0 %vm2160_vm3, %v8742_v47  ;;  %v481_v62 = vrot.slane %v479_v49, 4  ;;  %v490_v63 = vshrl.u32 %v8740_v44, 16  ;;  %v493_v0 = vshll.u32 %v8740_v44, 16  ;;  %v499_v6 = vshll.u32 %v8708_v56, 16  ;;  %8370 = vmatprep.subr.msk.bf16.mxu1 %vm2209_vm0, %v8773_v29  ;;  %v8784_v46 = vld [vmem:[%s8528_s23 + $0x60] sm:$0xf] }
  0x41   : > { %7587 = vmatmul.mubr.msk.bf16.gmra.mrb[12].mxu1 %vm2160_vm3, %v6789_v52  ;;  %v472_v51 = vor.u32 %v471_v53, %v468_v50  ;;  %v487_v1 = vrot.slane %v485_v57, 5  ;;  %v503_v7 = vshrl.u32 %v8708_v56, 16  ;;  %v509_v10 = vshll.u32 %v309_v14, 16 }
  0x42   : > { %v482_v5 = vor.u32 %v481_v62, %v477_v55  ;;  %v492_v13 = vrot.slane %v490_v63, 4  ;;  %v495_v17 = vrot.slane %v493_v0, 5  ;;  %v501_v18 = vrot.slane %v499_v6, 5 }
  0x43   : > { %v473_v22 = vrot.slane %v472_v51, 4  ;;  %v505_v25 = vrot.slane %v503_v7, 4  ;;  %v511_v26 = vrot.slane %v509_v10, 5  ;;  %v6480_v28 = vrot.slane %v713_v61, 9 }
  0x44   : > { %v483_v31 = vrot.slane %v482_v5, 4  ;;  %v496_v14 = vor.u32 %v495_v17, %v492_v13  ;;  %v830_v34 = vrot.slane %v8750_v58, 5  ;;  %v833_v35 = vrot.slane %v8753_v59, 5 }
  0x45   : > { %v478_v36 = vsel %vm8591_vm7, %v473_v22, %v477_v55  ;;  %v506_v38 = vor.u32 %v505_v25, %v501_v18  ;;  %v6481_v40 = vrot.slane %v714_v12, 9  ;;  %v837_v41 = vrot.slane %v8762_v2, 5  ;;  %v8806_v12 = vld [vmem:[%s8528_s23 + $0x6c] sm:$0xf] }
  0x46   : > { %v488_v48 = vsel %vm8591_vm7, %v483_v31, %v487_v1  ;;  %v497_v50 = vrot.slane %v496_v14, 4  ;;  %v831_v49 = vsel %vm8544_vm6, %v6480_v28, %v830_v34  ;;  %v832_v52 = vrot.slane %v830_v34, 4  ;;  %v8816_v31 = vld [vmem:[%s8528_s23 + $0x7c] sm:$0xf]  ;;  %v8819_v14 = vld [vmem:[%s8528_s23 + $0x80] sm:$0x1] }
  0x47   : > { %v8790_v53 = vcombine.low %v478_v36, %v488_v48  ;;  %v507_v57 = vrot.slane %v506_v38, 4  ;;  %v838_v55 = vsel %vm8544_vm6, %v6481_v40, %v837_v41  ;;  %v839_v61 = vrot.slane %v837_v41, 4  ;;  %v715_v40 = vld [vmem:[%s8528_s23 + $0x78] sm:$0xe] }
  0x48   : > { %v502_v62 = vsel %vm8591_vm7, %v497_v50, %v501_v18  ;;  %v834_v63 = vsel %vm8544_vm6, %v832_v52, %v833_v35  ;;  %v840_v0 = vrot.slane %v311_v39, 5  ;;  %v514_v6 = vshrl.u32 %v8784_v46, 16 }
  0x49   : > { %11435 = vst [vmem:[#allocation5_spill] sm:$0xff] %v8790_v53  ;;  %7450 = vmatprep.mubr.msk.bf16.mxu0 %vm2160_vm3, %v8790_v53  ;;  %v512_v51 = vsel %vm8591_vm7, %v507_v57, %v511_v26  ;;  %v6790_v1 = vcombine.low %v831_v49, %v834_v63  ;;  %v517_v7 = vshll.u32 %v8784_v46, 16  ;;  %v523_v10 = vshll.u32 %v8750_v58, 16  ;;  %v8830_v49 = vld [vmem:[%s8528_s23 + $0x88] sm:$0xf] }
  0x4a   : > { %v8808_v5 = vcombine.low %v502_v62, %v512_v51  ;;  %v841_v13 = vsel %vm8544_vm6, %v839_v61, %v840_v0  ;;  %v516_v17 = vrot.slane %v514_v6, 4  ;;  %v527_v18 = vshrl.u32 %v8750_v58, 16  ;;  %v716_v62 = vld [vmem:[%s8528_s23 + $0x84] sm:$0xe] }
  0x4b   : > { %7590 = vmatprep.mubr.msk.bf16.mxu1 %vm2160_vm3, %v6790_v1  ;;  %v6791_v22 = vcombine.low %v838_v55, %v841_v13  ;;  %v519_v25 = vrot.slane %v517_v7, 5  ;;  %v525_v26 = vrot.slane %v523_v10, 5  ;;  %v533_v28 = vshll.u32 %v8753_v59, 16 }
  0x4c   : > { %11436 = vst [vmem:[#allocation6_spill] sm:$0xff] %v8808_v5  ;;  %7451 = vmatmul.mubr.msk.bf16.gmra.mrb[12].mxu0 %vm2160_vm3, %v8808_v5  ;;  %v529_v34 = vrot.slane %v527_v18, 4  ;;  %v538_v35 = vshrl.u32 %v8806_v12, 16  ;;  %v541_v36 = vshll.u32 %v8806_v12, 16  ;;  %v547_v38 = vshll.u32 %v8762_v2, 16 }
  0x4d   : > { %7591 = vmatmul.mubr.msk.bf16.gmra.mrb[16].mxu1 %vm2160_vm3, %v6791_v22  ;;  %v520_v41 = vor.u32 %v519_v25, %v516_v17  ;;  %v535_v59 = vrot.slane %v533_v28, 5  ;;  %v551_v48 = vshrl.u32 %v8762_v2, 16  ;;  %v557_v50 = vshll.u32 %v311_v39, 16  ;;  %v313_v18 = vld [vmem:[%s8528_s23 + $0x8c] sm:$0x1] }
  0x4e   : > { %v530_v52 = vor.u32 %v529_v34, %v525_v26  ;;  %v540_v57 = vrot.slane %v538_v35, 4  ;;  %v543_v55 = vrot.slane %v541_v36, 5  ;;  %v549_v61 = vrot.slane %v547_v38, 5  ;;  %v8840_v28 = vld [vmem:[%s8528_s23 + $0x78] sm:$0xf] }
  0x4f   : > { %v521_v63 = vrot.slane %v520_v41, 4  ;;  %v553_v0 = vrot.slane %v551_v48, 4  ;;  %v559_v6 = vrot.slane %v557_v50, 5  ;;  %v6482_v51 = vrot.slane %v715_v40, 9 }
  0x50   : > { %v531_v1 = vrot.slane %v530_v52, 4  ;;  %v544_v7 = vor.u32 %v543_v55, %v540_v57  ;;  %v844_v10 = vrot.slane %v8816_v31, 5  ;;  %v847_v13 = vrot.slane %v8819_v14, 5 }
  0x51   : > { %v526_v39 = vsel %vm8591_vm7, %v521_v63, %v525_v26  ;;  %v554_v17 = vor.u32 %v553_v0, %v549_v61  ;;  %v6483_v22 = vrot.slane %v716_v62, 9  ;;  %v851_v25 = vrot.slane %v8830_v49, 5 }
  0x52   : > { %v536_v34 = vsel %vm8591_vm7, %v531_v1, %v535_v59  ;;  %v545_v35 = vrot.slane %v544_v7, 4  ;;  %v845_v36 = vsel %vm8544_vm6, %v6482_v51, %v844_v10  ;;  %v846_v38 = vrot.slane %v844_v10, 4 }
  0x53   : > { %v8846_v40 = vcombine.low %v526_v39, %v536_v34  ;;  %v555_v41 = vrot.slane %v554_v17, 4  ;;  %v852_v26 = vsel %vm8544_vm6, %v6483_v22, %v851_v25  ;;  %v853_v48 = vrot.slane %v851_v25, 4  ;;  %v8872_v22 = vld [vmem:[%s8528_s23 + $0x94] sm:$0xf]  ;;  %v8875_v25 = vld [vmem:[%s8528_s23 + $0x98] sm:$0x1] }
  0x54   : > { %v550_v50 = vsel %vm8591_vm7, %v545_v35, %v549_v61  ;;  %v848_v52 = vsel %vm8544_vm6, %v846_v38, %v847_v13  ;;  %v854_v59 = vrot.slane %v313_v18, 5  ;;  %v562_v57 = vshrl.u32 %v8840_v28, 16  ;;  %v8862_v61 = vld [vmem:[%s8528_s23 + $0x84] sm:$0xf] }
  0x55   : > { %11437 = vst [vmem:[#allocation7_spill] sm:$0xff] %v8846_v40  ;;  %7454 = vmatprep.mubr.msk.bf16.mxu0 %vm2160_vm3, %v8846_v40  ;;  %v560_v55 = vsel %vm8591_vm7, %v555_v41, %v559_v6  ;;  %v6792_v62 = vcombine.low %v845_v36, %v848_v52  ;;  %v565_v63 = vshll.u32 %v8840_v28, 16  ;;  %v571_v0 = vshll.u32 %v8816_v31, 16  ;;  %v717_v41 = vld [vmem:[%s8528_s23 + $0x90] sm:$0xe] }
  0x56   : > { %v8864_v51 = vcombine.low %v550_v50, %v560_v55  ;;  %v855_v1 = vsel %vm8544_vm6, %v853_v48, %v854_v59  ;;  %v564_v7 = vrot.slane %v562_v57, 4  ;;  %v575_v10 = vshrl.u32 %v8816_v31, 16  ;;  %v8886_v52 = vld [vmem:[%s8528_s23 + $0xa0] sm:$0xf] }
  0x57   : > { %7594 = vmatprep.mubr.msk.bf16.mxu1 %vm2160_vm3, %v6792_v62  ;;  %v6793_v13 = vcombine.low %v852_v26, %v855_v1  ;;  %v567_v6 = vrot.slane %v565_v63, 5  ;;  %v573_v39 = vrot.slane %v571_v0, 5  ;;  %v581_v17 = vshll.u32 %v8819_v14, 16  ;;  %v718_v63 = vld [vmem:[%s8528_s23 + $0x9c] sm:$0xe] }
  0x58   : > { %11438 = vst [vmem:[#allocation8_spill] sm:$0xff] %v8864_v51  ;;  %7455 = vmatmul.mubr.msk.bf16.gmra.mrb[16].mxu0 %vm2160_vm3, %v8864_v51  ;;  %v577_v34 = vrot.slane %v575_v10, 4  ;;  %v586_v35 = vshrl.u32 %v8862_v61, 16  ;;  %v589_v36 = vshll.u32 %v8862_v61, 16  ;;  %v595_v38 = vshll.u32 %v8830_v49, 16 }
  0x59   : > { %7595 = vmatmul.mubr.msk.bf16.gmra.mrb[20].mxu1 %vm2160_vm3, %v6793_v13  ;;  %v568_v26 = vor.u32 %v567_v6, %v564_v7  ;;  %v583_v14 = vrot.slane %v581_v17, 5  ;;  %v599_v48 = vshrl.u32 %v8830_v49, 16  ;;  %v605_v50 = vshll.u32 %v313_v18, 16 }
  0x5a   : > { %v578_v59 = vor.u32 %v577_v34, %v573_v39  ;;  %v588_v57 = vrot.slane %v586_v35, 4  ;;  %v591_v55 = vrot.slane %v589_v36, 5  ;;  %v597_v62 = vrot.slane %v595_v38, 5  ;;  %v315_v34 = vld [vmem:[%s8528_s23 + $0xa4] sm:$0x1] }
  0x5b   : > { %v569_v0 = vrot.slane %v568_v26, 4  ;;  %v601_v1 = vrot.slane %v599_v48, 4  ;;  %v607_v10 = vrot.slane %v605_v50, 5  ;;  %v6484_v51 = vrot.slane %v717_v41, 9  ;;  %v8896_v38 = vld [vmem:[%s8528_s23 + $0x90] sm:$0xf] }
  0x5c   : > { %v579_v40 = vrot.slane %v578_v59, 4  ;;  %v592_v13 = vor.u32 %v591_v55, %v588_v57  ;;  %v858_v7 = vrot.slane %v8872_v22, 5  ;;  %v861_v6 = vrot.slane %v8875_v25, 5 }
  0x5d   : > { %v574_v18 = vsel %vm8591_vm7, %v569_v0, %v573_v39  ;;  %v602_v17 = vor.u32 %v601_v1, %v597_v62  ;;  %v6485_v35 = vrot.slane %v718_v63, 9  ;;  %v865_v36 = vrot.slane %v8886_v52, 5 }
  0x5e   : > { %v584_v26 = vsel %vm8591_vm7, %v579_v40, %v583_v14  ;;  %v593_v41 = vrot.slane %v592_v13, 4  ;;  %v859_v48 = vsel %vm8544_vm6, %v6484_v51, %v858_v7  ;;  %v860_v50 = vrot.slane %v858_v7, 4 }
  0x5f   : > { %v8902_v59 = vcombine.low %v574_v18, %v584_v26  ;;  %v603_v57 = vrot.slane %v602_v17, 4  ;;  %v866_v39 = vsel %vm8544_vm6, %v6485_v35, %v865_v36  ;;  %v867_v55 = vrot.slane %v865_v36, 4 }
  0x60   : > { %v598_v63 = vsel %vm8591_vm7, %v593_v41, %v597_v62  ;;  %v862_v0 = vsel %vm8544_vm6, %v860_v50, %v861_v6  ;;  %v868_v40 = vrot.slane %v315_v34, 5  ;;  %v610_v14 = vshrl.u32 %v8896_v38, 16  ;;  %v8918_v62 = vld [vmem:[%s8528_s23 + $0x9c] sm:$0xf]  ;;  %v8931_v50 = vld [vmem:[%s8528_s23 + $0xb0] sm:$0x1] }
  0x61   : > { %11439 = vst [vmem:[#allocation9_spill] sm:$0xff] %v8902_v59  ;;  %7458 = vmatprep.mubr.msk.bf16.mxu0 %vm2160_vm3, %v8902_v59  ;;  %v608_v51 = vsel %vm8591_vm7, %v603_v57, %v607_v10  ;;  %v6794_v1 = vcombine.low %v859_v48, %v862_v0  ;;  %v613_v13 = vshll.u32 %v8896_v38, 16  ;;  %v619_v7 = vshll.u32 %v8872_v22, 16  ;;  %v8928_v48 = vld [vmem:[%s8528_s23 + $0xac] sm:$0xf] }
  0x62   : > { %v8920_v18 = vcombine.low %v598_v63, %v608_v51  ;;  %v869_v6 = vsel %vm8544_vm6, %v867_v55, %v868_v40  ;;  %v612_v17 = vrot.slane %v610_v14, 4  ;;  %v623_v35 = vshrl.u32 %v8872_v22, 16  ;;  %11441 = vst [vmem:[#allocation11_spill] sm:$0xff] %v8928_v48  ;;  %v719_v0 = vld [vmem:[%s8528_s23 + $0xa8] sm:$0xe] }
  0x63   : > { %7598 = vmatprep.mubr.msk.bf16.mxu1 %vm2160_vm3, %v6794_v1  ;;  %v6795_v36 = vcombine.low %v866_v39, %v869_v6  ;;  %v615_v10 = vrot.slane %v613_v13, 5  ;;  %v621_v26 = vrot.slane %v619_v7, 5  ;;  %v629_v41 = vshll.u32 %v8875_v25, 16  ;;  %v8942_v1 = vld [vmem:[%s8528_s23 + $0xb8] sm:$0xf] }
  0x64   : > { %11440 = vst [vmem:[#allocation10_spill] sm:$0xff] %v8920_v18  ;;  %7459 = vmatmul.mubr.msk.bf16.gmra.mrb[20].mxu0 %vm2160_vm3, %v8920_v18  ;;  %v625_v57 = vrot.slane %v623_v35, 4  ;;  %v634_v55 = vshrl.u32 %v8918_v62, 16  ;;  %v637_v63 = vshll.u32 %v8918_v62, 16  ;;  %v643_v39 = vshll.u32 %v8886_v52, 16  ;;  %11442 = vst [vmem:[#allocation12_spill] sm:$0xff] %v8942_v1 }
  0x65   : > { %7599 = vmatmul.mubr.msk.bf16.gmra.mrb[24].mxu1 %vm2160_vm3, %v6795_v36  ;;  %v616_v40 = vor.u32 %v615_v10, %v612_v17  ;;  %v631_v25 = vrot.slane %v629_v41, 5  ;;  %v647_v14 = vshrl.u32 %v8886_v52, 16  ;;  %v653_v51 = vshll.u32 %v315_v34, 16  ;;  %v720_v18 = vld [vmem:[%s8528_s23 + $0xb4] sm:$0xe] }
  0x66   : > { %v626_v13 = vor.u32 %v625_v57, %v621_v26  ;;  %v636_v7 = vrot.slane %v634_v55, 4  ;;  %v639_v6 = vrot.slane %v637_v63, 5  ;;  %v645_v35 = vrot.slane %v643_v39, 5  ;;  %v317_v57 = vld [vmem:[%s8528_s23 + $0xbc] sm:$0x1] }
  0x67   : > { %v617_v59 = vrot.slane %v616_v40, 4  ;;  %v649_v5 = vrot.slane %v647_v14, 4  ;;  %v655_v32 = vrot.slane %v653_v51, 5  ;;  %v6486_v54 = vrot.slane %v719_v0, 9  ;;  %v8952_v39 = vld [vmem:[%s8528_s23 + $0xa8] sm:$0xf] }
  0x68   : > { %v627_v53 = vrot.slane %v626_v13, 4  ;;  %v640_v36 = vor.u32 %v639_v6, %v636_v7  ;;  %v872_v17 = vrot.slane %v8928_v48, 5  ;;  %v875_v10 = vrot.slane %v8931_v50, 5 }
  0x69   : > { %v622_v34 = vsel %vm8591_vm7, %v617_v59, %v621_v26  ;;  %v650_v41 = vor.u32 %v649_v5, %v645_v35  ;;  %v6487_v55 = vrot.slane %v720_v18, 9  ;;  %v879_v63 = vrot.slane %v8942_v1, 5 }
  0x6a   : > { %v632_v40 = vsel %vm8591_vm7, %v627_v53, %v631_v25  ;;  %v641_v0 = vrot.slane %v640_v36, 4  ;;  %v873_v14 = vsel %vm8544_vm6, %v6486_v54, %v872_v17  ;;  %v874_v51 = vrot.slane %v872_v17, 4 }
  0x6b   : > { %v8958_v13 = vcombine.low %v622_v34, %v632_v40  ;;  %v651_v7 = vrot.slane %v650_v41, 4  ;;  %v880_v5 = vsel %vm8544_vm6, %v6487_v55, %v879_v63  ;;  %v881_v59 = vrot.slane %v879_v63, 4  ;;  %v8974_v34 = vld [vmem:[%s8528_s23 + $0xb4] sm:$0xf] }
  0x6c   : > { %v646_v18 = vsel %vm8591_vm7, %v641_v0, %v645_v35  ;;  %v876_v26 = vsel %vm8544_vm6, %v874_v51, %v875_v10  ;;  %v882_v53 = vrot.slane %v317_v57, 5  ;;  %v658_v25 = vshrl.u32 %v8952_v39, 16  ;;  %11443 = vst [vmem:[#allocation13_spill] sm:$0xff] %v8974_v34 }
  0x6d   : > { %7462 = vmatprep.mubr.msk.bf16.mxu0 %vm2160_vm3, %v8958_v13  ;;  %v656_v54 = vsel %vm8591_vm7, %v651_v7, %v655_v32  ;;  %v6796_v6 = vcombine.low %v873_v14, %v876_v26  ;;  %v661_v36 = vshll.u32 %v8952_v39, 16  ;;  %v667_v17 = vshll.u32 %v8928_v48, 16 }
  0x6e   : > { %v8976_v35 = vcombine.low %v646_v18, %v656_v54  ;;  %v883_v10 = vsel %vm8544_vm6, %v881_v59, %v882_v53  ;;  %v660_v41 = vrot.slane %v658_v25, 4  ;;  %v671_v55 = vshrl.u32 %v8928_v48, 16  ;;  %v11470_v48 = vld [vmem:[#allocation10_spill] sm:$0xff] }
  0x6f   : > { %7602 = vmatprep.mubr.msk.bf16.mxu1 %vm2160_vm3, %v6796_v6  ;;  %v6797_v63 = vcombine.low %v880_v5, %v883_v10  ;;  %v663_v40 = vrot.slane %v661_v36, 5  ;;  %v669_v32 = vrot.slane %v667_v17, 5  ;;  %v677_v0 = vshll.u32 %v8931_v50, 16 }
  0x70   : > { %7463 = vmatmul.mubr.msk.bf16.gmra.mrb[24].mxu0 %vm2160_vm3, %v8976_v35  ;;  %v673_v14 = vrot.slane %v671_v55, 4  ;;  %v682_v51 = vshrl.u32 %v8974_v34, 16  ;;  %v685_v7 = vshll.u32 %v8974_v34, 16  ;;  %v691_v59 = vshll.u32 %v8942_v1, 16 }
  0x71   : > { %7603 = vmatmul.mubr.msk.bf16.gmra.mrb[28].mxu1 %vm2160_vm3, %v6797_v63  ;;  %v664_v18 = vor.u32 %v663_v40, %v660_v41  ;;  %v679_v26 = vrot.slane %v677_v0, 5  ;;  %v695_v5 = vshrl.u32 %v8942_v1, 16  ;;  %v701_v53 = vshll.u32 %v317_v57, 16  ;;  %v9251_v1 = vld [vmem:[%s8528_s23 + $0x50] sm:$0x1] }
  0x72   : > { %v674_v25 = vor.u32 %v673_v14, %v669_v32  ;;  %v684_v54 = vrot.slane %v682_v51, 4  ;;  %v687_v50 = vrot.slane %v685_v7, 5  ;;  %v693_v6 = vrot.slane %v691_v59, 5  ;;  %7608 = vmatprep.mubr.msk.bf16.mxu1 %vm2160_vm3, %v8613_v9 }
  0x73   : > { %v665_v36 = vrot.slane %v664_v18, 4  ;;  %v697_v17 = vrot.slane %v695_v5, 4  ;;  %v703_v40 = vrot.slane %v701_v53, 5  ;;  %v6681_v14 = vcombine.low %v8558_v19, %v8537_v4  ;;  %v9013_v19 = vld [vmem:[%s8521_s20 + $0xe] sm:$0x3] }
  0x74   : > { %v675_v10 = vrot.slane %v674_v25, 4  ;;  %v688_v55 = vor.u32 %v687_v50, %v684_v54  ;;  %v3788_v7 = vsel %vm2209_vm0, %v8773_v29, 0  ;;  %v9116_v4 = vld [vmem:[%s8528_s23 + $0x2c] sm:$0x1] }
  0x75   : > { %v670_v63 = vsel %vm8591_vm7, %v665_v36, %v669_v32  ;;  %v698_v41 = vor.u32 %v697_v17, %v693_v6  ;;  %v9046_v36 = vld [vmem:[%s8528_s23 + $0x10] sm:$0xf]  ;;  %v6682_v17 = vcombine.low %v8573_v30, %v8550_v11 }
  0x76   : > { %v680_v57 = vsel %vm8591_vm7, %v675_v10, %v679_v26  ;;  %v689_v0 = vrot.slane %v688_v55, 4  ;;  %11444 = vst [vmem:[#allocation14_spill] sm:$0xff] %v9046_v36  ;;  %v9051_v10 = vld [vmem:[%s8528_s23 + $0x18] sm:$0xf]  ;;  %v9054_v55 = vld [vmem:[%s8528_s23 + $0x1c] sm:$0xf] }
  0x77   : > { %v8998_v51 = vcombine.low %v670_v63, %v680_v57  ;;  %v699_v9 = vrot.slane %v698_v41, 4  ;;  %11445 = vst [vmem:[#allocation15_spill] sm:$0xff] %v9054_v55  ;;  %v2765_v63 = vsel %vm2209_vm0, %v8768_v21, 0  ;;  %v6683_v41 = vcombine.low %v8607_v3, %v8583_v43  ;;  %v9073_v3 = vld [vmem:[%s8521_s20 + $0x6] sm:$0x3] }
  0x78   : > { %v694_v32 = vsel %vm8591_vm7, %v689_v0, %v693_v6  ;;  %v946_v30 = vshll.u32 %v9046_v36, 16  ;;  %v950_v57 = vshrl.u32 %v9046_v36, 16  ;;  %v961_v21 = vshrl.u32 %v9051_v10, 16 }
  0x79   : > { %7466 = vmatprep.mubr.msk.bf16.mxu0 %vm2160_vm3, %v8998_v51  ;;  %v704_v29 = vsel %vm8591_vm7, %v699_v9, %v703_v40  ;;  %7609 = vmatmul.mubr.msk.bf16.vlgmr.msra.gmra.mrb[0].mxu1 %vm2160_vm3, %v8630_v24  ;;  %v964_v0 = vshll.u32 %v9051_v10, 16  ;;  %v974_v43 = vshrl.u32 %v9054_v55, 16  ;;  %v9113_v24 = vld [vmem:[%s8528_s23 + $0x34] sm:$0xf] }
  0x7a   : > { %v9025_v25 = vcombine.low %v694_v32, %v704_v29  ;;  %7641 = vmatpush3.bf16.msra.mxu1 %v3788_v7  ;;  %7612 = vmatprep.mubr.msk.bf16.mxu1 %vm2160_vm3, %v8669_v16  ;;  %v9043_v16 = vld [vmem:[%s8528_s23 + $0xc] sm:$0xf]  ;;  %v9077_v9 = vrot.slane %v946_v30, 5  ;;  %v952_v7 = vrot.slane %v950_v57, 4  ;;  %v9082_v32 = vld [vmem:[%s8528_s23 + $0x14] sm:$0x1] }
  0x7b   : > { %8371 = vmatprep.subr.msk.bf16.mxu1 %vm2209_vm0, %v9013_v19  ;;  %v937_v40 = vshrl.u32 %v9043_v16, 16  ;;  %v940_v11 = vshll.u32 %v9043_v16, 16  ;;  %11446 = vst [vmem:[#allocation16_spill] sm:$0xff] %v9082_v32  ;;  %v963_v29 = vrot.slane %v961_v21, 4  ;;  %v966_v6 = vrot.slane %v964_v0, 5  ;;  %v11449_v57 = vld [vmem:[#allocation5_spill] sm:$0xff] }
  0x7c   : > { %7467 = vmatmul.mubr.msk.bf16.gmra.mrb[28].mxu0 %vm2160_vm3, %v9025_v25  ;;  %v9097_v30 = vld [vmem:[%s8528_s23 + $0x28] sm:$0xf]  ;;  %v956_v0 = vshll.u32 %v9082_v32, 16  ;;  %11452 = vst [vmem:[#allocation5_spill] sm:$0xff] %v9113_v24 }
  0x7d   : > { %7472 = vmatprep.mubr.msk.bf16.mxu0 %vm2160_vm3, %v6681_v14  ;;  %v942_v14 = vrot.slane %v940_v11, 5  ;;  %v6492_v11 = vld [vmem:[%s8528_s23 + $0x24] sm:$0xf]  ;;  %11448 = vst [vmem:[#allocation18_spill] sm:$0xff] %v9097_v30 }
  0x81   : > { %7613 = vmatmul.mubr.msk.bf16.gmra.mrb[4].mxu1 %vm2160_vm3, %v8687_v33  ;;  %v970_v33 = vshll.u32 %v9054_v55, 16 }
  0x82   : > { %7616 = vmatprep.mubr.msk.bf16.mxu1 %vm2160_vm3, %v8724_v27  ;;  %v939_v27 = vrot.slane %v937_v40, 4  ;;  %v6685_v40 = vcombine.low %v8667_v15, %v8644_v37  ;;  %v985_v37 = vshrl.u32 %v6492_v11, 16  ;;  %v988_v15 = vshll.u32 %v6492_v11, 16 }
  0x83   : > { %v9084_v50 = vrot.slane %v970_v33, 5 }
  0x84   : > { %7473 = vmatmul.mubr.msk.bf16.vlgmr.msra.gmra.mrb[0].mxu0 %vm2160_vm3, %v6682_v17  ;;  %v976_v17 = vrot.slane %v974_v43, 4  ;;  %v943_v21 = vor.u32 %v942_v14, %v939_v27  ;;  %v994_v43 = vshll.u32 %v9097_v30, 16  ;;  %v11450_v27 = vld [vmem:[#allocation3_spill] sm:$0xff]  ;;  %v11451_v14 = vld [vmem:[#allocation4_spill] sm:$0xff]  ;;  %v987_v26 = vrot.slane %v985_v37, 4 }
  0x85   : > { %7505 = vmatpush3.bf16.msra.mxu0 %v2765_v63  ;;  %7476 = vmatprep.mubr.msk.bf16.mxu0 %vm2160_vm3, %v6683_v41  ;;  %v6684_v63 = vcombine.low %v8628_v23, %v8601_v60  ;;  %v9089_v41 = vld [vmem:[%s8528_s23 + $0x20] sm:$0x1]  ;;  %v953_v60 = vor.u32 %v952_v7, %v9077_v9  ;;  %v967_v23 = vor.u32 %v966_v6, %v963_v29  ;;  %v958_v29 = vrot.slane %v956_v0, 5 }
  0x86   : > { %8367 = vmatprep.subr.msk.bf16.mxu0 %vm2209_vm0, %v9073_v3  ;;  %11447 = vst [vmem:[#allocation17_spill] sm:$0xff] %v9089_v41  ;;  %v977_v33 = vor.u32 %v976_v17, %v9084_v50  ;;  %v6686_v7 = vcombine.low %v11451_v14, %v11450_v27  ;;  %v944_v6 = vrot.slane %v943_v21, 4  ;;  %v6494_v17 = vld [vmem:[%s8528_s23 + $0x30] sm:$0xf]  ;;  %11453 = vst [vmem:[#allocation3_spill] sm:$0xff] %v9116_v4  ;;  %v990_v18 = vrot.slane %v988_v15, 5 }
  0x87   : > { %v954_v54 = vrot.slane %v953_v60, 4  ;;  %v968_v53 = vrot.slane %v967_v23, 4  ;;  %v9118_v59 = vrot.slane %v994_v43, 5  ;;  %v9123_v27 = vld [vmem:[%s8528_s23 + $0x38] sm:$0x1]  ;;  %v1009_v21 = vshrl.u32 %v6494_v17, 16 }
  0x88   : > { %11455 = vst [vmem:[#allocation4_spill] sm:$0xff] %v9123_v27  ;;  %v1012_v0 = vshll.u32 %v6494_v17, 16  ;;  %v1018_v14 = vshll.u32 %v9113_v24, 16  ;;  %v1022_v60 = vshrl.u32 %v9113_v24, 16  ;;  %v11456_v23 = vld [vmem:[#allocation7_spill] sm:$0xff]  ;;  %v1004_v37 = vshll.u32 %v9116_v4, 16 }
  0x89   : > { %7617 = vmatmul.mubr.msk.bf16.gmra.mrb[8].mxu1 %vm2160_vm3, %v8742_v47  ;;  %v980_v47 = vshll.u32 %v9089_v41, 16  ;;  %v11454_v41 = vld [vmem:[#allocation6_spill] sm:$0xff]  ;;  %v991_v43 = vor.u32 %v990_v18, %v987_v26  ;;  %v9157_v18 = vcombine.low %v9043_v16, %v9046_v36  ;;  %v9169_v26 = vsel %vm2209_vm0, %v9013_v19, 0 }
  0x8a   : > { %7620 = vmatprep.mubr.msk.bf16.mxu1 %vm2160_vm3, %v11449_v57  ;;  %v998_v57 = vshrl.u32 %v9097_v30, 16  ;;  %11461 = vst [vmem:[#allocation20_spill] sm:$0xff] %v9169_v26  ;;  %v11469_v36 = vcombine.low %v8784_v46, %v8750_v58 }
  0x8b   : > { %v982_v5 = vrot.slane %v980_v47, 5  ;;  %v959_v47 = vsel %vm8591_vm7, %v954_v54, %v958_v29  ;;  %v11457_v54 = vcombine.low %v8718_v20, %v8694_v42  ;;  %11458 = vst [vmem:[#allocation6_spill] sm:$0xff] %v9157_v18  ;;  %v9161_v42 = vcombine.low %v9051_v10, %v9054_v55  ;;  %v9175_v29 = vld [vmem:[%s8528_s23 + $0x40] sm:$0xf] }
  0x8c   : > { %7477 = vmatmul.mubr.msk.bf16.gmra.mrb[4].mxu0 %vm2160_vm3, %v6684_v63  ;;  %v978_v63 = vrot.slane %v977_v33, 4  ;;  %v949_v33 = vsel %vm8591_vm7, %v944_v6, %v9077_v9  ;;  %v1028_v9 = vshll.u32 %v9123_v27, 16  ;;  %v9153_v6 = vrot.slane %v1022_v60, 4 }
  0x8d   : > { %7480 = vmatprep.mubr.msk.bf16.mxu0 %vm2160_vm3, %v6685_v40  ;;  %v1000_v40 = vrot.slane %v998_v57, 4  ;;  %11459 = vst [vmem:[#allocation7_spill] sm:$0xff] %v9161_v42  ;;  %v9165_v20 = vsel %vm2209_vm0, %v9073_v3, 0  ;;  %v9181_v10 = vrot.slane %v1004_v37, 5  ;;  %v9187_v3 = vld [vmem:[%s8528_s23 + $0x48] sm:$0xf]  ;;  %v9199_v60 = vcombine.low %v6494_v17, %v9113_v24 }
  0x8e   : > { %v983_v15 = vsel %vm8591_vm7, %v978_v63, %v982_v5  ;;  %11460 = vst [vmem:[#allocation19_spill] sm:$0xff] %v9165_v20  ;;  %v9172_v5 = vld [vmem:[%s8528_s23 + $0x3c] sm:$0xf]  ;;  %v9177_v63 = vcombine.low %v949_v33, %v959_v47  ;;  %v9192_v19 = vrot.slane %v991_v43, 4  ;;  %v11466_v33 = vld [vmem:[#allocation8_spill] sm:$0xff] }
  0x8f   : > { %v1001_v57 = vor.u32 %v1000_v40, %v9118_v59  ;;  %v9184_v40 = vcombine.low %v6492_v11, %v9097_v30  ;;  %11465 = vst [vmem:[#allocation24_spill] sm:$0xff] %v9199_v60  ;;  %v1036_v37 = vshll.u32 %v9172_v5, 16  ;;  %v9216_v43 = vld [vmem:[%s8528_s23 + $0x60] sm:$0xf]  ;;  %v11467_v17 = vld [vmem:[#allocation9_spill] sm:$0xff] }
  0x90   : > { %11462 = vst [vmem:[#allocation21_spill] sm:$0xff] %v9177_v63  ;;  %v1105_v55 = vshrl.u32 %v9216_v43, 16  ;;  %v1108_v32 = vshll.u32 %v9216_v43, 16 }
  0x91   : > { %7621 = vmatmul.mubr.msk.bf16.gmra.mrb[12].mxu1 %vm2160_vm3, %v11454_v41  ;;  %v973_v41 = vsel %vm8591_vm7, %v968_v53, %v9084_v50  ;;  %v9147_v53 = vrot.slane %v1009_v21, 4  ;;  %v9149_v50 = vrot.slane %v1012_v0, 5  ;;  %11464 = vst [vmem:[#allocation23_spill] sm:$0xff] %v9184_v40  ;;  %v9190_v21 = vld [vmem:[%s8528_s23 + $0x4c] sm:$0xf]  ;;  %v9194_v0 = vrot.slane %v1001_v57, 4 }
  0x92   : > { %7624 = vmatprep.mubr.msk.bf16.mxu1 %vm2160_vm3, %v11456_v23  ;;  %v9179_v16 = vcombine.low %v973_v41, %v983_v15  ;;  %v9202_v23 = vld [vmem:[%s8528_s23 + $0x54] sm:$0xf]  ;;  %v1033_v41 = vshrl.u32 %v9172_v5, 16  ;;  %v9213_v15 = vld [vmem:[%s8528_s23 + $0x58] sm:$0xf]  ;;  %v1042_v57 = vshll.u32 %v9175_v29, 16 }
  0x93   : > { %v1015_v11 = vor.u32 %v9149_v50, %v9147_v53  ;;  %v1060_v53 = vshll.u32 %v9187_v3, 16  ;;  %v9225_v50 = vld [vmem:[%s8528_s23 + $0x64] sm:$0xf]  ;;  %v1081_v27 = vshrl.u32 %v9202_v23, 16  ;;  %v1084_v24 = vshll.u32 %v9202_v23, 16 }
  0x94   : > { %7481 = vmatmul.mubr.msk.bf16.gmra.mrb[8].mxu0 %vm2160_vm3, %v6686_v7  ;;  %v9151_v7 = vrot.slane %v1018_v14, 5  ;;  %11463 = vst [vmem:[#allocation22_spill] sm:$0xff] %v9179_v16  ;;  %v9196_v14 = vrot.slane %v1028_v9, 5  ;;  %v1046_v9 = vshrl.u32 %v9175_v29, 16  ;;  %v1090_v4 = vshll.u32 %v9213_v15, 16 }
  0x95   : > { %7484 = vmatprep.mubr.msk.bf16.mxu0 %vm2160_vm3, %v11457_v54  ;;  %v1057_v54 = vshrl.u32 %v9187_v3, 16  ;;  %v1094_v30 = vshrl.u32 %v9213_v15, 16  ;;  %v1035_v60 = vrot.slane %v1033_v41, 4  ;;  %v1038_v8 = vrot.slane %v1036_v37, 5  ;;  %v9256_v41 = vld [vmem:[%s8528_s23 + $0x5c] sm:$0x1] }
  0x96   : > { %v1025_v47 = vor.u32 %v9153_v6, %v9151_v7  ;;  %v1066_v6 = vshll.u32 %v9190_v21, 16  ;;  %v9248_v40 = vrot.slane %v1042_v57, 5  ;;  %v1048_v20 = vrot.slane %v1046_v9, 4 }
  0x97   : > { %v1059_v42 = vrot.slane %v1057_v54, 4  ;;  %v1062_v18 = vrot.slane %v1060_v53, 5  ;;  %v1083_v46 = vrot.slane %v1081_v27, 4  ;;  %v9258_v37 = vrot.slane %v1090_v4, 5 }
  0x98   : > { %v9253_v34 = vrot.slane %v1066_v6, 5  ;;  %v1096_v26 = vrot.slane %v1094_v30, 4  ;;  %v1107_v16 = vrot.slane %v1105_v55, 4  ;;  %v1110_v57 = vrot.slane %v1108_v32, 5 }
  0x99   : > { %7625 = vmatmul.mubr.msk.bf16.gmra.mrb[16].mxu1 %vm2160_vm3, %v11466_v33  ;;  %v1070_v33 = vshrl.u32 %v9190_v21, 16  ;;  %v997_v9 = vsel %vm8591_vm7, %v9192_v19, %v9118_v59  ;;  %v1039_v55 = vor.u32 %v1038_v8, %v1035_v60  ;;  %v1049_v32 = vor.u32 %v1048_v20, %v9248_v40  ;;  %v9278_v59 = vld [vmem:[%s8528_s23 + $0x68] sm:$0x1]  ;;  %v9281_v19 = vld [vmem:[%s8528_s23 + $0x6c] sm:$0xf] }
  0x9a   : > { %7628 = vmatprep.mubr.msk.bf16.mxu1 %vm2160_vm3, %v11467_v17  ;;  %v11468_v17 = vcombine.low %v8740_v44, %v8708_v56  ;;  %v1114_v56 = vshll.u32 %v9225_v50, 16  ;;  %v1118_v44 = vshrl.u32 %v9225_v50, 16  ;;  %v1076_v30 = vshll.u32 %v9251_v1, 16 }
  0x9b   : > { %v1072_v58 = vrot.slane %v1070_v33, 4  ;;  %v1063_v54 = vor.u32 %v1062_v18, %v1059_v42  ;;  %v1100_v53 = vshll.u32 %v9256_v41, 16  ;;  %v11471_v8 = vcombine.low %v8806_v12, %v8762_v2 }
  0x9c   : > { %7485 = vmatmul.mubr.msk.bf16.gmra.mrb[12].mxu0 %vm2160_vm3, %v11468_v17  ;;  %v9246_v17 = vld [vmem:[%s8528_s23 + $0x44] sm:$0x1]  ;;  %v9270_v27 = vrot.slane %v1114_v56, 5  ;;  %v1120_v4 = vrot.slane %v1118_v44, 4  ;;  %v1026_v20 = vrot.slane %v1025_v47, 4  ;;  %v1097_v60 = vor.u32 %v1096_v26, %v9258_v37 }
  0x9d   : > { %7488 = vmatprep.mubr.msk.bf16.mxu0 %vm2160_vm3, %v11469_v36  ;;  %v1086_v36 = vrot.slane %v1084_v24, 5  ;;  %v1007_v24 = vsel %vm8591_vm7, %v9194_v0, %v9181_v10  ;;  %v1073_v10 = vor.u32 %v1072_v58, %v9253_v34  ;;  %v1111_v6 = vor.u32 %v1110_v57, %v1107_v16  ;;  %v9297_v56 = vld [vmem:[%s8528_s23 + $0x70] sm:$0xf] }
  0x9e   : > { %v11472_v33 = vcombine.low %v8840_v28, %v8816_v31  ;;  %v1121_v18 = vor.u32 %v1120_v4, %v9270_v27  ;;  %v1124_v42 = vshll.u32 %v9278_v59, 16  ;;  %v1129_v2 = vshrl.u32 %v9281_v19, 16 }
  0x9f   : > { %v1087_v0 = vor.u32 %v1086_v36, %v1083_v46  ;;  %v1132_v12 = vshll.u32 %v9281_v19, 16  ;;  %v1050_v47 = vrot.slane %v1049_v32, 4  ;;  %v1078_v26 = vrot.slane %v1076_v30, 5 }
  0xa0   : > { %v1064_v16 = vrot.slane %v1063_v54, 4  ;;  %v1074_v58 = vrot.slane %v1073_v10, 4  ;;  %v1102_v31 = vrot.slane %v1100_v53, 5  ;;  %v1098_v28 = vrot.slane %v1097_v60, 4  ;;  %v9319_v10 = vld [vmem:[%s8528_s23 + $0x78] sm:$0xf] }
  0xa1   : > { %7629 = vmatmul.mubr.msk.bf16.gmra.mrb[20].mxu1 %vm2160_vm3, %v11470_v48  ;;  %v1052_v48 = vshll.u32 %v9246_v17, 16  ;;  %v1088_v46 = vrot.slane %v1087_v0, 4  ;;  %v1112_v36 = vrot.slane %v1111_v6, 4  ;;  %v1138_v57 = vshll.u32 %v9297_v56, 16  ;;  %11474 = vst [vmem:[#allocation9_spill] sm:$0xff] %v9319_v10 }
  0xa2   : > { %7632 = vmatprep.mubr.msk.bf16.mxu1 %vm2160_vm3, %v8958_v13  ;;  %v1016_v13 = vrot.slane %v1015_v11, 4  ;;  %v1040_v11 = vrot.slane %v1039_v55, 4  ;;  %v1142_v4 = vshrl.u32 %v9297_v56, 16  ;;  %v1131_v55 = vrot.slane %v1129_v2, 4 }
  0xa3   : > { %v1054_v44 = vrot.slane %v1052_v48, 5  ;;  %v1134_v32 = vrot.slane %v1132_v12, 5  ;;  %v9307_v48 = vcombine.low %v997_v9, %v1007_v24  ;;  %v1031_v54 = vsel %vm8591_vm7, %v1026_v20, %v9196_v14  ;;  %v9354_v20 = vld [vmem:[%s8528_s23 + $0x7c] sm:$0xf] }
  0xa4   : > { %7489 = vmatmul.mubr.msk.bf16.gmra.mrb[16].mxu0 %vm2160_vm3, %v11471_v8  ;;  %v1122_v8 = vrot.slane %v1121_v18, 4  ;;  %v1021_v30 = vsel %vm8591_vm7, %v1016_v13, %v9151_v7  ;;  %v1069_v9 = vsel %vm8591_vm7, %v1064_v16, %v9253_v34  ;;  %v1079_v7 = vsel %vm8591_vm7, %v1074_v58, %v1078_v26  ;;  %v9398_v58 = vld [vmem:[%s8528_s23 + $0x94] sm:$0xf] }
  0xa5   : > { %7492 = vmatprep.mubr.msk.bf16.mxu0 %vm2160_vm3, %v11472_v33  ;;  %v1126_v33 = vrot.slane %v1124_v42, 5  ;;  %11473 = vst [vmem:[#allocation8_spill] sm:$0xff] %v9307_v48  ;;  %v1093_v14 = vsel %vm8591_vm7, %v1088_v46, %v9258_v37  ;;  %v11475_v24 = vcombine.low %v8862_v61, %v8830_v49  ;;  %v1117_v0 = vsel %vm8591_vm7, %v1112_v36, %v9270_v27  ;;  %v9351_v61 = vld [vmem:[%s8528_s23 + $0x74] sm:$0x1] }
  0xa6   : > { %v9340_v34 = vrot.slane %v1138_v57, 5  ;;  %v9342_v53 = vrot.slane %v1142_v4, 4  ;;  %v11476_v13 = vcombine.low %v8896_v38, %v8872_v22  ;;  %v1135_v37 = vor.u32 %v1134_v32, %v1131_v55  ;;  %v9409_v57 = vld [vmem:[%s8528_s23 + $0xa0] sm:$0xf] }
  0xa7   : > { %v1127_v49 = vsel %vm8591_vm7, %v1122_v8, %v1126_v33  ;;  %v1153_v27 = vshrl.u32 %v9319_v10, 16  ;;  %v1156_v60 = vshll.u32 %v9319_v10, 16  ;;  %v9358_v6 = vcombine.low %v1021_v30, %v1031_v54  ;;  %v9414_v4 = vld [vmem:[%s8528_s23 + $0x80] sm:$0x1] }
  0xa8   : > { %v9364_v38 = vcombine.low %v9172_v5, %v9175_v29  ;;  %v9368_v18 = vcombine.low %v9187_v3, %v9190_v21  ;;  %v9370_v42 = vcombine.low %v1069_v9, %v1079_v7  ;;  %v9376_v12 = vcombine.low %v9202_v23, %v9213_v15  ;;  %v9386_v5 = vld [vmem:[%s8528_s23 + $0x88] sm:$0xf]  ;;  %v9389_v3 = vld [vmem:[%s8528_s23 + $0x90] sm:$0xf] }
  0xa9   : > { %7633 = vmatmul.mubr.msk.bf16.gmra.mrb[24].mxu1 %vm2160_vm3, %v8976_v35  ;;  %v1045_v35 = vsel %vm8591_vm7, %v1040_v11, %v9248_v40  ;;  %v1103_v40 = vsel %vm8591_vm7, %v1098_v28, %v1102_v31  ;;  %v9380_v11 = vcombine.low %v9216_v43, %v9225_v50  ;;  %11481 = vst [vmem:[#allocation28_spill] sm:$0xff] %v9389_v3  ;;  %v1148_v23 = vshll.u32 %v9351_v61, 16  ;;  %v9401_v43 = vld [vmem:[%s8528_s23 + $0x9c] sm:$0xf] }
  0xaa   : > { %7636 = vmatprep.mubr.msk.bf16.mxu1 %vm2160_vm3, %v8998_v51  ;;  %v1055_v51 = vsel %vm8591_vm7, %v1050_v47, %v1054_v44  ;;  %11477 = vst [vmem:[#allocation10_spill] sm:$0xff] %v9364_v38  ;;  %v9372_v2 = vcombine.low %v1093_v14, %v1103_v40  ;;  %v9383_v47 = vld [vmem:[%s8528_s23 + $0x84] sm:$0xf]  ;;  %v9391_v44 = vcombine.low %v1117_v0, %v1127_v49  ;;  %v1162_v16 = vshll.u32 %v9354_v20, 16  ;;  %v11484_v40 = vld [vmem:[#allocation11_spill] sm:$0xff] }
  0xab   : > { %v9360_v22 = vcombine.low %v1045_v35, %v1055_v51  ;;  %11479 = vst [vmem:[#allocation26_spill] sm:$0xff] %v9380_v11  ;;  %11480 = vst [vmem:[#allocation27_spill] sm:$0xff] %v9383_v47  ;;  %v1145_v26 = vor.u32 %v9342_v53, %v9340_v34  ;;  %v9405_v46 = vrot.slane %v1135_v37, 4  ;;  %v1155_v31 = vrot.slane %v1153_v27, 4  ;;  %v9440_v49 = vld [vmem:[%s8528_s23 + $0x8c] sm:$0x1] }
  0xac   : > { %7493 = vmatmul.mubr.msk.bf16.gmra.mrb[20].mxu0 %vm2160_vm3, %v11475_v24  ;;  %11478 = vst [vmem:[#allocation25_spill] sm:$0xff] %v9372_v2  ;;  %11482 = vst [vmem:[#allocation29_spill] sm:$0xff] %v9401_v43  ;;  %v1158_v28 = vrot.slane %v1156_v60, 5  ;;  %v1166_v36 = vshrl.u32 %v9354_v20, 16  ;;  %v1177_v8 = vshrl.u32 %v9383_v47, 16  ;;  %v1180_v33 = vshll.u32 %v9383_v47, 16 }
  0xad   : > { %7496 = vmatprep.mubr.msk.bf16.mxu0 %vm2160_vm3, %v11476_v13  ;;  %v1186_v55 = vshll.u32 %v9386_v5, 16  ;;  %v1201_v32 = vshrl.u32 %v9389_v3, 16  ;;  %v1204_v30 = vshll.u32 %v9389_v3, 16  ;;  %v1210_v54 = vshll.u32 %v9398_v58, 16 }
  0xae   : > { %v1214_v35 = vshrl.u32 %v9398_v58, 16  ;;  %v11483_v51 = vcombine.low %v8918_v62, %v8886_v52  ;;  %v1225_v9 = vshrl.u32 %v9401_v43, 16  ;;  %v1228_v7 = vshll.u32 %v9401_v43, 16 }
  0xaf   : > { %v1234_v14 = vshll.u32 %v9409_v57, 16  ;;  %v1238_v24 = vshrl.u32 %v9409_v57, 16  ;;  %v11485_v0 = vcombine.low %v8952_v39, %v11484_v40  ;;  %v1159_v53 = vor.u32 %v1158_v28, %v1155_v31 }
  0xb0   : > { %v9436_v13 = vrot.slane %v1162_v16, 5  ;;  %v1168_v52 = vrot.slane %v1166_v36, 4  ;;  %v1172_v62 = vshll.u32 %v9414_v4, 16  ;;  %v1179_v37 = vrot.slane %v1177_v8, 4  ;;  %v9452_v8 = vld [vmem:[%s8521_s20 + $0x1a] sm:$0x3] }
  0xb1   : > { %7637 = vmatmul.mubr.msk.bf16.gmra.mrb[28].mxu1 %vm2160_vm3, %v9025_v25  ;;  %v1190_v25 = vshrl.u32 %v9386_v5, 16  ;;  %v1182_v27 = vrot.slane %v1180_v33, 5  ;;  %v9442_v60 = vrot.slane %v1186_v55, 5  ;;  %v1203_v39 = vrot.slane %v1201_v32, 4  ;;  %11486 = vst [vmem:[#allocation11_spill] sm:$0xff] %v9452_v8  ;;  %v11487_v33 = vld [vmem:[#allocation22_spill] sm:$0xff] }
  0xb2   : > { %7642 = vmatprep.mubr.msk.bf16.mxu1 %vm2160_vm3, %v9177_v63  ;;  %v9445_v63 = vld [vmem:[%s8528_s23 + $0x98] sm:$0x1]  ;;  %v1206_v40 = vrot.slane %v1204_v30, 5  ;;  %v1216_v16 = vrot.slane %v1214_v35, 4  ;;  %v1227_v31 = vrot.slane %v1225_v9, 4  ;;  %v1230_v28 = vrot.slane %v1228_v7, 5 }
  0xb3   : > { %v9449_v36 = vrot.slane %v1234_v14, 5  ;;  %v1240_v43 = vrot.slane %v1238_v24, 4  ;;  %v9462_v32 = vrot.slane %v1148_v23, 5  ;;  %v9466_v30 = vcombine.low %v9281_v19, %v9297_v56  ;;  %v11490_v35 = vld [vmem:[#allocation20_spill] sm:$0xff]  ;;  %v9479_v23 = vld [vmem:[%s8528_s23 + $0xa8] sm:$0xf] }
  0xb4   : > { %7497 = vmatmul.mubr.msk.bf16.gmra.mrb[24].mxu0 %vm2160_vm3, %v11483_v51  ;;  %v1192_v51 = vrot.slane %v1190_v25, 4  ;;  %v9460_v25 = vrot.slane %v1145_v26, 4  ;;  %v1169_v9 = vor.u32 %v1168_v52, %v9436_v13  ;;  %v9475_v7 = vrot.slane %v1172_v62, 5  ;;  %11491 = vst [vmem:[#allocation20_spill] sm:$0xff] %v9479_v23  ;;  %v9482_v24 = vld [vmem:[%s8528_s23 + $0xac] sm:$0xf] }
  0xb5   : > { %7500 = vmatprep.mubr.msk.bf16.mxu0 %vm2160_vm3, %v11485_v0  ;;  %v9447_v0 = vrot.slane %v1210_v54, 5  ;;  %11488 = vst [vmem:[#allocation30_spill] sm:$0xff] %v9466_v30  ;;  %v9469_v54 = vld [vmem:[%s8528_s23 + $0xa4] sm:$0x1]  ;;  %v1183_v14 = vor.u32 %v1182_v27, %v1179_v37  ;;  %v1196_v26 = vshll.u32 %v9440_v49, 16  ;;  %11492 = vst [vmem:[#allocation32_spill] sm:$0xff] %v9482_v24  ;;  %v1207_v55 = vor.u32 %v1206_v40, %v1203_v39 }
  0xb6   : > { %11489 = vst [vmem:[#allocation31_spill] sm:$0xff] %v9469_v54  ;;  %v1193_v19 = vor.u32 %v1192_v51, %v9442_v60  ;;  %v11493_v52 = vld [vmem:[#allocation13_spill] sm:$0xff]  ;;  %v11494_v62 = vld [vmem:[#allocation12_spill] sm:$0xff]  ;;  %v1160_v37 = vrot.slane %v1159_v53, 4  ;;  %v1231_v27 = vor.u32 %v1230_v28, %v1227_v31  ;;  %v1241_v3 = vor.u32 %v1240_v43, %v9449_v36  ;;  %v11496_v39 = vld [vmem:[#allocation6_spill] sm:$0xff] }
  0xb7   : > { %v1244_v51 = vshll.u32 %v9469_v54, 16  ;;  %v1249_v40 = vshrl.u32 %v9479_v23, 16  ;;  %v1170_v43 = vrot.slane %v1169_v9, 4  ;;  %v1184_v53 = vrot.slane %v1183_v14, 4  ;;  %v9512_v54 = vld [vmem:[%s8528_s23 + $0xb0] sm:$0x1] }
  0xb8   : > { %v1198_v31 = vrot.slane %v1196_v26, 5  ;;  %v1194_v28 = vrot.slane %v1193_v19, 4  ;;  %v1165_v10 = vsel %vm8591_vm7, %v1160_v37, %v9436_v13  ;;  %v1232_v30 = vrot.slane %v1231_v27, 4  ;;  %v9519_v9 = vld [vmem:[%s8528_s23 + $0xb8] sm:$0xf] }
  0xb9   : > { %7643 = vmatmul.mubr.msk.bf16.vlgmr.msra.gmra.mrb[0].mxu1 %vm2160_vm3, %v11487_v33  ;;  %v1217_v33 = vor.u32 %v1216_v16, %v9447_v0  ;;  %v1252_v16 = vshll.u32 %v9479_v23, 16  ;;  %v9506_v23 = vld [vmem:[%s8528_s23 + $0xb4] sm:$0xf]  ;;  %v1242_v11 = vrot.slane %v1241_v3, 4  ;;  %v1175_v3 = vsel %vm8591_vm7, %v1170_v43, %v9475_v7  ;;  %v9530_v14 = vld [vmem:[%s8528_s23 + $0xbc] sm:$0x1] }
  0xba   : > { %7675 = vmatpush3.bf16.msra.mxu1 %v11490_v35  ;;  %7646 = vmatprep.mubr.msk.bf16.mxu1 %vm2160_vm3, %v9307_v48  ;;  %v1220_v35 = vshll.u32 %v9445_v63, 16  ;;  %v11495_v48 = vcombine.low %v11493_v52, %v11494_v62  ;;  %v1262_v52 = vshrl.u32 %v9482_v24, 16  ;;  %v1208_v62 = vrot.slane %v1207_v55, 4  ;;  %v9546_v27 = vld [vmem:[%s8521_s20 + $0x12] sm:$0x3] }
  0xbb   : > { %8376 = vmatprep.subr.msk.bf16.mxu1 %vm2209_vm0, %v9452_v8  ;;  %v1258_v8 = vshll.u32 %v9482_v24, 16  ;;  %v1246_v24 = vrot.slane %v1244_v51, 5  ;;  %v1189_v13 = vsel %vm8591_vm7, %v1184_v53, %v9442_v60  ;;  %v1273_v26 = vshrl.u32 %v9506_v23, 16  ;;  %v9543_v60 = vld [vmem:[%s8528_s23 + $0xc0] sm:$0xf]  ;;  %v11497_v51 = vld [vmem:[#allocation7_spill] sm:$0xff] }
  0xbc   : > { %7501 = vmatmul.mubr.msk.bf16.gmra.mrb[28].mxu0 %vm2160_vm3, %v11495_v48  ;;  %v1151_v48 = vsel %vm8591_vm7, %v9460_v25, %v9462_v32  ;;  %v1222_v47 = vrot.slane %v1220_v35, 5  ;;  %v1251_v25 = vrot.slane %v1249_v40, 4  ;;  %v1264_v32 = vrot.slane %v1262_v52, 4  ;;  %v11499_v52 = vld [vmem:[#allocation23_spill] sm:$0xff] }
  0xbd   : > { %7506 = vmatprep.mubr.msk.bf16.mxu0 %vm2160_vm3, %v11496_v39  ;;  %v1218_v39 = vrot.slane %v1217_v33, 4  ;;  %v1254_v33 = vrot.slane %v1252_v16, 5  ;;  %v9516_v55 = vrot.slane %v1258_v8, 5  ;;  %v1276_v8 = vshll.u32 %v9506_v23, 16 }
  0xbe   : > { %v1199_v19 = vsel %vm8591_vm7, %v1194_v28, %v1198_v31  ;;  %v1213_v35 = vsel %vm8591_vm7, %v1208_v62, %v9447_v0  ;;  %v1268_v37 = vshll.u32 %v9512_v54, 16  ;;  %v1237_v40 = vsel %vm8591_vm7, %v1232_v30, %v9449_v36 }
  0xbf   : > { %v1223_v7 = vsel %vm8591_vm7, %v1218_v39, %v1222_v47  ;;  %v1247_v0 = vsel %vm8591_vm7, %v1242_v11, %v1246_v24  ;;  %v1282_v16 = vshll.u32 %v9519_v9, 16  ;;  %v1286_v47 = vshrl.u32 %v9519_v9, 16  ;;  %v11498_v39 = vld [vmem:[#allocation19_spill] sm:$0xff]  ;;  %v6540_v24 = vld [vmem:[%s8528_s23 + $0x3c] sm:$0xe] }
  0xc0   : > { %v11500_v43 = vsel %vm8591_vm7, %v9405_v46, %v9340_v34  ;;  %v1255_v36 = vor.u32 %v1254_v33, %v1251_v25  ;;  %v1265_v11 = vor.u32 %v1264_v32, %v9516_v55  ;;  %v1292_v30 = vshll.u32 %v9530_v14, 16 }
  0xc1   : > { %7647 = vmatmul.mubr.msk.bf16.gmra.mrb[4].mxu1 %vm2160_vm3, %v9358_v6  ;;  %v9565_v53 = vcombine.low %v11500_v43, %v1151_v48  ;;  %v9570_v31 = vcombine.low %v1165_v10, %v1175_v3  ;;  %v9572_v28 = vrot.slane %v1273_v26, 4  ;;  %v9574_v62 = vrot.slane %v1276_v8, 5  ;;  %v6541_v10 = vld [vmem:[%s8528_s23 + $0x48] sm:$0xe]  ;;  %v9593_v3 = vld [vmem:[%s8528_s23 + $0xc4] sm:$0xf] }
  0xc2   : > { %7650 = vmatprep.mubr.msk.bf16.mxu1 %vm2160_vm3, %v9360_v22  ;;  %v9579_v34 = vcombine.low %v1189_v13, %v1199_v19  ;;  %v9581_v46 = vcombine.low %v1213_v35, %v1223_v7  ;;  %v9583_v48 = vcombine.low %v1237_v40, %v1247_v0  ;;  %v9585_v25 = vrot.slane %v1268_v37, 5  ;;  %v6542_v37 = vld [vmem:[%s8528_s23 + $0x54] sm:$0xe]  ;;  %v6544_v43 = vld [vmem:[%s8528_s23 + $0x6c] sm:$0xe] }
  0xc3   : > { %v9588_v33 = vrot.slane %v1282_v16, 5  ;;  %v9590_v32 = vrot.slane %v1286_v47, 4  ;;  %v1300_v26 = vshll.u32 %v9543_v60, 16  ;;  %v6556_v8 = vrot.slane %v6540_v24, 9  ;;  %v6543_v24 = vld [vmem:[%s8528_s23 + $0x60] sm:$0xe] }
  0xc4   : > { %7507 = vmatmul.mubr.msk.bf16.vlgmr.msra.gmra.mrb[0].mxu0 %vm2160_vm3, %v11497_v51  ;;  %v9598_v13 = vrot.slane %v1255_v36, 4  ;;  %v9600_v19 = vrot.slane %v1265_v11, 4  ;;  %v9602_v35 = vrot.slane %v1292_v30, 5  ;;  %v1414_v7 = vrot.slane %v9175_v29, 5  ;;  %v6545_v51 = vld [vmem:[%s8528_s23 + $0x78] sm:$0xe] }
  0xc5   : > { %7539 = vmatpush3.bf16.msra.mxu0 %v11498_v39  ;;  %7510 = vmatprep.mubr.msk.bf16.mxu0 %vm2160_vm3, %v11499_v52  ;;  %v1297_v39 = vshrl.u32 %v9543_v60, 16  ;;  %v1417_v16 = vrot.slane %v9246_v17, 5  ;;  %v6557_v47 = vrot.slane %v6541_v10, 9  ;;  %v1421_v29 = vrot.slane %v9190_v21, 5  ;;  %v11502_v52 = vld [vmem:[#allocation24_spill] sm:$0xff] }
  0xc6   : > { %8372 = vmatprep.subr.msk.bf16.mxu0 %vm2209_vm0, %v9546_v27  ;;  %v1415_v11 = vsel %vm8544_vm6, %v6556_v8, %v1414_v7  ;;  %v1416_v30 = vrot.slane %v1414_v7, 4  ;;  %v9622_v40 = vrot.slane %v1300_v26, 5  ;;  %v1424_v17 = vrot.slane %v9251_v1, 5 }
  0xc7   : > { %v9610_v0 = vrot.slane %v1297_v39, 4  ;;  %v6558_v10 = vrot.slane %v6542_v37, 9  ;;  %v1422_v7 = vsel %vm8544_vm6, %v6557_v47, %v1421_v29  ;;  %v1428_v26 = vrot.slane %v9213_v15, 5 }
  0xc8   : > { %v1418_v21 = vsel %vm8544_vm6, %v1416_v30, %v1417_v16  ;;  %v1431_v1 = vrot.slane %v9256_v41, 5  ;;  %v6559_v37 = vrot.slane %v6543_v24, 9  ;;  %v1435_v8 = vrot.slane %v9225_v50, 5  ;;  %v6546_v41 = vld [vmem:[%s8528_s23 + $0x84] sm:$0xe] }
  0xc9   : > { %7651 = vmatmul.mubr.msk.bf16.gmra.mrb[8].mxu1 %vm2160_vm3, %v9370_v42  ;;  %v9633_v39 = vcombine.low %v1415_v11, %v1418_v21  ;;  %v1438_v16 = vrot.slane %v9278_v59, 5  ;;  %v6560_v30 = vrot.slane %v6544_v43, 9  ;;  %v1429_v47 = vsel %vm8544_vm6, %v6558_v10, %v1428_v26  ;;  %v6548_v21 = vld [vmem:[%s8528_s23 + $0x9c] sm:$0xe] }
  0xca   : > { %7654 = vmatprep.mubr.msk.bf16.mxu1 %vm2160_vm3, %v9372_v2  ;;  %v1430_v11 = vrot.slane %v1428_v26, 4  ;;  %v1442_v15 = vrot.slane %v9297_v56, 5  ;;  %v1436_v50 = vsel %vm8544_vm6, %v6559_v37, %v1435_v8  ;;  %v1445_v59 = vrot.slane %v9351_v61, 5 }
  0xcb   : > { %v6561_v43 = vrot.slane %v6545_v51, 9  ;;  %v1449_v24 = vrot.slane %v9354_v20, 5  ;;  %v1452_v51 = vrot.slane %v9414_v4, 5  ;;  %v1456_v4 = vrot.slane %v9386_v5, 5 }
  0xcc   : > { %7511 = vmatmul.mubr.msk.bf16.gmra.mrb[4].mxu0 %vm2160_vm3, %v11502_v52  ;;  %v1423_v52 = vrot.slane %v1421_v29, 4  ;;  %v1443_v56 = vsel %vm8544_vm6, %v6560_v30, %v1442_v15  ;;  %v1444_v29 = vrot.slane %v1442_v15, 4  ;;  %v1459_v30 = vrot.slane %v9440_v49, 5  ;;  %v6550_v49 = vld [vmem:[%s8528_s23 + $0xb4] sm:$0xe] }
  0xcd   : > { %7514 = vmatprep.mubr.msk.bf16.mxu0 %vm2160_vm3, %v9364_v38  ;;  %v1451_v37 = vrot.slane %v1449_v24, 4 }
  0xce   : > { %v1425_v38 = vsel %vm8544_vm6, %v1423_v52, %v1424_v17  ;;  %v1437_v52 = vrot.slane %v1435_v8, 4  ;;  %v6547_v17 = vld [vmem:[%s8528_s23 + $0x90] sm:$0xe]  ;;  %v6562_v8 = vrot.slane %v6546_v41, 9  ;;  %v1446_v26 = vsel %vm8544_vm6, %v1444_v29, %v1445_v59 }
  0xcf   : > { %v9642_v2 = vcombine.low %v1422_v7, %v1425_v38  ;;  %v1432_v38 = vsel %vm8544_vm6, %v1430_v11, %v1431_v1  ;;  %v1450_v1 = vsel %vm8544_vm6, %v6561_v43, %v1449_v24  ;;  %v6549_v11 = vld [vmem:[%s8528_s23 + $0xa8] sm:$0xe]  ;;  %v1453_v15 = vsel %vm8544_vm6, %v1451_v37, %v1452_v51  ;;  %v6551_v37 = vld [vmem:[%s8528_s23 + $0xc0] sm:$0xe] }
  0xd0   : > { %v9661_v10 = vcombine.low %v1429_v47, %v1432_v38  ;;  %v1439_v61 = vsel %vm8544_vm6, %v1437_v52, %v1438_v16  ;;  %v9677_v16 = vcombine.low %v1443_v56, %v1446_v26  ;;  %v6563_v47 = vrot.slane %v6547_v17, 9  ;;  %v11503_v17 = vld [vmem:[#allocation31_spill] sm:$0xff]  ;;  %v11504_v26 = vld [vmem:[#allocation32_spill] sm:$0xff] }
  0xd1   : > { %7655 = vmatmul.mubr.msk.bf16.gmra.mrb[12].mxu1 %vm2160_vm3, %v9391_v44  ;;  %v9669_v7 = vcombine.low %v1436_v50, %v1439_v61  ;;  %v1463_v41 = vrot.slane %v9398_v58, 5  ;;  %v1466_v50 = vrot.slane %v9445_v63, 5  ;;  %v6564_v52 = vrot.slane %v6548_v21, 9 }
  0xd2   : > { %7658 = vmatprep.mubr.msk.bf16.mxu1 %vm2160_vm3, %v9565_v53  ;;  %v9686_v59 = vcombine.low %v1450_v1, %v1453_v15  ;;  %v1457_v43 = vsel %vm8544_vm6, %v6562_v8, %v1456_v4  ;;  %v1458_v38 = vrot.slane %v1456_v4, 4  ;;  %v1470_v56 = vrot.slane %v9409_v57, 5 }
  0xd3   : > { %v1464_v29 = vsel %vm8544_vm6, %v6563_v47, %v1463_v41  ;;  %v1465_v24 = vrot.slane %v1463_v41, 4  ;;  %v1473_v61 = vrot.slane %v11503_v17, 5  ;;  %v6565_v51 = vrot.slane %v6549_v11, 9 }
  0xd4   : > { %7515 = vmatmul.mubr.msk.bf16.gmra.mrb[8].mxu0 %vm2160_vm3, %v9368_v18  ;;  %v1460_v63 = vsel %vm8544_vm6, %v1458_v38, %v1459_v30  ;;  %v1471_v8 = vsel %vm8544_vm6, %v6564_v52, %v1470_v56  ;;  %v1472_v21 = vrot.slane %v1470_v56, 4  ;;  %v1477_v1 = vrot.slane %v11504_v26, 5  ;;  %v11505_v56 = vld [vmem:[#allocation26_spill] sm:$0xff] }
  0xd5   : > { %7518 = vmatprep.mubr.msk.bf16.mxu0 %vm2160_vm3, %v9376_v12  ;;  %v9705_v4 = vcombine.low %v1457_v43, %v1460_v63  ;;  %v1467_v47 = vsel %vm8544_vm6, %v1465_v24, %v1466_v50  ;;  %v1480_v11 = vrot.slane %v9512_v54, 5  ;;  %v6566_v15 = vrot.slane %v6550_v49, 9  ;;  %v6535_v43 = vld [vmem:[%s8528_s23 + $0xc8] sm:$0x1] }
  0xd6   : > { %v9710_v41 = vcombine.low %v1464_v29, %v1467_v47  ;;  %v1474_v30 = vsel %vm8544_vm6, %v1472_v21, %v1473_v61  ;;  %v1478_v52 = vsel %vm8544_vm6, %v6565_v51, %v1477_v1  ;;  %v1479_v38 = vrot.slane %v1477_v1, 4  ;;  %v11506_v29 = vld [vmem:[#allocation30_spill] sm:$0xff] }
  0xd7   : > { %v9719_v17 = vcombine.low %v1471_v8, %v1474_v30  ;;  %v1484_v50 = vrot.slane %v9519_v9, 5  ;;  %v1487_v54 = vrot.slane %v9530_v14, 5  ;;  %v6567_v49 = vrot.slane %v6551_v37, 9 }
  0xd8   : > { %v11507_v24 = vshll.u32 %v9593_v3, 16  ;;  %v1481_v51 = vsel %vm8544_vm6, %v1479_v38, %v1480_v11  ;;  %v1491_v63 = vrot.slane %v9593_v3, 5  ;;  %v1494_v21 = vrot.slane %v6535_v43, 5 }
  0xd9   : > { %7659 = vmatmul.mubr.msk.bf16.gmra.mrb[16].mxu1 %vm2160_vm3, %v9570_v31  ;;  %v11508_v8 = vshrl.u32 %v9593_v3, 16  ;;  %v9732_v47 = vcombine.low %v1478_v52, %v1481_v51  ;;  %v1485_v14 = vsel %vm8544_vm6, %v6566_v15, %v1484_v50  ;;  %v1486_v37 = vrot.slane %v1484_v50, 4  ;;  %v11512_v51 = vld [vmem:[#allocation27_spill] sm:$0xff] }
  0xda   : > { %7662 = vmatprep.mubr.msk.bf16.mxu1 %vm2160_vm3, %v9579_v34  ;;  %v1308_v61 = vrot.slane %v11507_v24, 5  ;;  %v11509_v30 = vor.u32 %v9574_v62, %v9572_v28  ;;  %v11510_v24 = vor.u32 %v9590_v32, %v9588_v33  ;;  %v1492_v38 = vsel %vm8544_vm6, %v6567_v49, %v1491_v63 }
  0xdb   : > { %v1312_v1 = vrot.slane %v11508_v8, 4  ;;  %v11511_v8 = vld [vmem:[#allocation9_spill] sm:$0xff]  ;;  %v9750_v15 = vcombine.low %v11512_v51, %v9386_v5  ;;  %v1488_v28 = vsel %vm8544_vm6, %v1486_v37, %v1487_v54  ;;  %v1261_v62 = vsel %vm8591_vm7, %v9598_v13, %v9516_v55  ;;  %v11513_v13 = vld [vmem:[#allocation14_spill] sm:$0xff]  ;;  %v11515_v37 = vld [vmem:[#allocation28_spill] sm:$0xff] }
  0xdc   : > { %7519 = vmatmul.mubr.msk.bf16.gmra.mrb[12].mxu0 %vm2160_vm3, %v11505_v56  ;;  %v1290_v11 = vrot.slane %v11510_v24, 4  ;;  %v1493_v56 = vrot.slane %v1491_v63, 4  ;;  %v9746_v52 = vcombine.low %v11511_v8, %v9354_v20  ;;  %v1271_v20 = vsel %vm8591_vm7, %v9600_v19, %v9585_v25  ;;  %v11516_v24 = vld [vmem:[#allocation29_spill] sm:$0xff]  ;;  %v11517_v51 = vld [vmem:[#allocation15_spill] sm:$0xff] }
  0xdd   : > { %7522 = vmatprep.mubr.msk.bf16.mxu0 %vm2160_vm3, %v11506_v29  ;;  %v1280_v29 = vrot.slane %v11509_v30, 4  ;;  %v9764_v32 = vcombine.low %v1485_v14, %v1488_v28  ;;  %v1303_v50 = vor.u32 %v9622_v40, %v9610_v0  ;;  %v1313_v54 = vor.u32 %v1312_v1, %v1308_v61  ;;  %v11514_v1 = vld [vmem:[#allocation16_spill] sm:$0xff] }
  0xde   : > { %v1495_v5 = vsel %vm8544_vm6, %v1493_v56, %v1494_v21  ;;  %v1316_v49 = vshll.u32 %v6535_v43, 16  ;;  %v1295_v25 = vsel %vm8591_vm7, %v1290_v11, %v9602_v35  ;;  %v1386_v19 = vrot.slane %v11513_v13, 5  ;;  %v6536_v56 = vld [vmem:[%s8528_s23 + $0xc] sm:$0xe] }
  0xdf   : > { %v9772_v63 = vcombine.low %v1492_v38, %v1495_v5  ;;  %v1285_v55 = vsel %vm8591_vm7, %v1280_v29, %v9588_v33  ;;  %v9786_v40 = vcombine.low %v1261_v62, %v1271_v20  ;;  %v1304_v43 = vrot.slane %v1303_v50, 4  ;;  %v6537_v20 = vld [vmem:[%s8528_s23 + $0x18] sm:$0xe]  ;;  %v6538_v50 = vld [vmem:[%s8528_s23 + $0x24] sm:$0xe] }
  0xe0   : > { %v9788_v0 = vcombine.low %v1285_v55, %v1295_v25  ;;  %v1314_v33 = vrot.slane %v1313_v54, 4  ;;  %v1318_v29 = vrot.slane %v1316_v49, 5  ;;  %v6552_v21 = vrot.slane %v6536_v56, 9  ;;  %v11519_v25 = vld [vmem:[#allocation17_spill] sm:$0xff] }
  0xe1   : > { %7663 = vmatmul.mubr.msk.bf16.gmra.mrb[20].mxu1 %vm2160_vm3, %v9581_v46  ;;  %v1388_v35 = vrot.slane %v1386_v19, 4  ;;  %v1389_v14 = vrot.slane %v11514_v1, 5  ;;  %v9793_v30 = vcombine.low %v11515_v37, %v9398_v58  ;;  %v9799_v11 = vcombine.low %v11516_v24, %v9409_v57  ;;  %v11518_v57 = vld [vmem:[#allocation18_spill] sm:$0xff]  ;;  %v11522_v37 = vld [vmem:[#allocation5_spill] sm:$0xff] }
  0xe2   : > { %7666 = vmatprep.mubr.msk.bf16.mxu1 %vm2160_vm3, %v9583_v48  ;;  %v1309_v38 = vsel %vm8591_vm7, %v1304_v43, %v1308_v61  ;;  %v1319_v8 = vsel %vm8591_vm7, %v1314_v33, %v1318_v29  ;;  %v1393_v28 = vrot.slane %v11517_v51, 5  ;;  %v1387_v58 = vsel %vm8544_vm6, %v6552_v21, %v1386_v19  ;;  %v11520_v43 = vld [vmem:[#allocation3_spill] sm:$0xff]  ;;  %v11521_v29 = vld [vmem:[#allocation20_spill] sm:$0xff] }
  0xe3   : > { %v1390_v62 = vsel %vm8544_vm6, %v1388_v35, %v1389_v14  ;;  %v1400_v5 = vrot.slane %v11518_v57, 5  ;;  %v9819_v61 = vcombine.low %v1309_v38, %v1319_v8  ;;  %v6553_v49 = vrot.slane %v6537_v20, 9  ;;  %v11524_v20 = vld [vmem:[#allocation11_spill] sm:$0xff] }
  0xe4   : > { %7523 = vmatmul.mubr.msk.bf16.gmra.mrb[16].mxu0 %vm2160_vm3, %v9746_v52  ;;  %v9821_v54 = vcombine.low %v1387_v58, %v1390_v62  ;;  %v1395_v55 = vrot.slane %v1393_v28, 4  ;;  %v1396_v13 = vrot.slane %v11519_v25, 5  ;;  %v6554_v19 = vrot.slane %v6538_v50, 9  ;;  %v11523_v58 = vld [vmem:[#allocation4_spill] sm:$0xff]  ;;  %v7044_v50 = vld [vmem:[%s8521_s20 + $0x18] sm:$0x3] }
  0xe5   : > { %7526 = vmatprep.mubr.msk.bf16.mxu0 %vm2160_vm3, %v9750_v15  ;;  %v1402_v56 = vrot.slane %v1400_v5, 4  ;;  %v1403_v33 = vrot.slane %v11520_v43, 5  ;;  %v9827_v21 = vcombine.low %v11521_v29, %v11504_v26  ;;  %v9833_v35 = vcombine.low %v9506_v23, %v9519_v9  ;;  %v6539_v23 = vld [vmem:[%s8528_s23 + $0x30] sm:$0xe]  ;;  %v11526_v25 = vld [vmem:[#allocation21_spill] sm:$0xff] }
  0xe6   : > { %v1394_v1 = vsel %vm8544_vm6, %v6553_v49, %v1393_v28  ;;  %v1397_v14 = vsel %vm8544_vm6, %v1395_v55, %v1396_v13  ;;  %v1407_v26 = vrot.slane %v11522_v37, 5  ;;  %v1401_v24 = vsel %vm8544_vm6, %v6554_v19, %v1400_v5  ;;  %v6912_v13 = vld [vmem:[%s8521_s20 + $0x10] sm:$0x3]  ;;  %v11527_v19 = vld [vmem:[#allocation22_spill] sm:$0xff]  ;;  %v6946_v29 = vld [vmem:[%s8521_s20 + $0x14] sm:$0x3] }
  0xe7   : > { %v1404_v38 = vsel %vm8544_vm6, %v1402_v56, %v1403_v33  ;;  %v6849_v9 = vcombine.low %v1394_v1, %v1397_v14  ;;  %v6555_v51 = vrot.slane %v6539_v23, 9  ;;  %v1410_v62 = vrot.slane %v11523_v58, 5  ;;  %v11528_v56 = vld [vmem:[#allocation8_spill] sm:$0xff]  ;;  %v7078_v33 = vld [vmem:[%s8521_s20 + $0x1c] sm:$0x3] }
  0xe8   : > { %v6850_v8 = vcombine.low %v1401_v24, %v1404_v38  ;;  %v1409_v28 = vrot.slane %v1407_v26, 4  ;;  %v5412_v57 = vsel %vm2209_vm0, %v11524_v20, 0  ;;  %v9856_v5 = vcombine.low %v9543_v60, %v9593_v3  ;;  %v10028_v24 = vld [vmem:[%s8528_s23 + $0x28] sm:$0xf]  ;;  %v6600_v38 = vld [vmem:[%s8528_s23 + $0x20] sm:$0x1] }
  0xe9   : > { %7667 = vmatmul.mubr.msk.bf16.gmra.mrb[24].mxu1 %vm2160_vm3, %v9786_v40  ;;  %v1408_v49 = vsel %vm8544_vm6, %v6555_v51, %v1407_v26  ;;  %v4379_v3 = vsel %vm2209_vm0, %v9546_v27, 0  ;;  %v11529_v27 = vld [vmem:[#allocation25_spill] sm:$0xff]  ;;  %v5576_v43 = vsel %vm2209_vm0, %v7044_v50, 0  ;;  %11534 = vst [vmem:[#allocation32_spill] sm:$0xff] %v10028_v24  ;;  %v1586_v51 = vshrl.u32 %v10028_v24, 16 }
  0xea   : > { %7670 = vmatprep.mubr.msk.bf16.mxu1 %vm2160_vm3, %v9788_v0  ;;  %11525 = vst [vmem:[#allocation13_spill] sm:$0xff] %v9856_v5  ;;  %v1411_v55 = vsel %vm8544_vm6, %v1409_v28, %v1410_v62  ;;  %v4821_v28 = vsel %vm2209_vm0, %v6946_v29, 0  ;;  %v1568_v20 = vshll.u32 %v6600_v38, 16 }
  0xeb   : > { %v6851_v60 = vcombine.low %v1408_v49, %v1411_v55  ;;  %v6979_v49 = vld [vmem:[%s8521_s20 + $0x16] sm:$0x3]  ;;  %v11535_v55 = vld [vmem:[#allocation7_spill] sm:$0xff] }
  0xec   : > { %7527 = vmatmul.mubr.msk.bf16.gmra.mrb[20].mxu0 %vm2160_vm3, %v9793_v30 }
  0xed   : > { %7530 = vmatprep.mubr.msk.bf16.mxu0 %vm2160_vm3, %v9799_v11 }
  0xf1   : > { %7671 = vmatmul.mubr.msk.bf16.gmra.mrb[28].mxu1 %vm2160_vm3, %v9819_v61 }
  0xf2   : > { %7676 = vmatprep.mubr.msk.bf16.mxu1 %vm2160_vm3, %v9821_v54 }
  0xf4   : > { %7531 = vmatmul.mubr.msk.bf16.gmra.mrb[24].mxu0 %vm2160_vm3, %v9827_v21 }
  0xf5   : > { %7534 = vmatprep.mubr.msk.bf16.mxu0 %vm2160_vm3, %v9833_v35 }
  0xf9   : > { %7677 = vmatmul.mubr.msk.bf16.vlgmr.msra.gmra.mrb[0].mxu1 %vm2160_vm3, %v6849_v9 }
  0xfa   : > { %7845 = vmatpush3.bf16.msra.mxu1 %v5412_v57  ;;  %7680 = vmatprep.mubr.msk.bf16.mxu1 %vm2160_vm3, %v6850_v8  ;;  %v6601_v57 = vld [vmem:[%s8528_s23 + $0x2c] sm:$0x1] }
  0xfb   : > { %8377 = vmatprep.subr.msk.bf16.mxu1 %vm2209_vm0, %v7044_v50 }
  0xfc   : > { %7535 = vmatmul.mubr.msk.bf16.gmra.mrb[28].mxu0 %vm2160_vm3, %v9856_v5  ;;  %v6604_v5 = vld [vmem:[%s8528_s23 + $0x50] sm:$0x1] }
  0xfd   : > { %7540 = vmatprep.mubr.msk.bf16.mxu0 %vm2160_vm3, %v11526_v25 }
 0x101   : > { %7681 = vmatmul.mubr.msk.bf16.gmra.mrb[4].mxu1 %vm2160_vm3, %v6851_v60 }
 0x102   : > { %7684 = vmatprep.mubr.msk.bf16.mxu1 %vm2160_vm3, %v9633_v39 }
 0x104   : > { %7541 = vmatmul.mubr.msk.bf16.vlgmr.msra.gmra.mrb[0].mxu0 %vm2160_vm3, %v11527_v19 }
 0x105   : > { %7709 = vmatpush3.bf16.msra.mxu0 %v4379_v3  ;;  %7544 = vmatprep.mubr.msk.bf16.mxu0 %vm2160_vm3, %v11528_v56  ;;  %v1592_v3 = vshll.u32 %v6601_v57, 16 }
 0x106   : > { %8373 = vmatprep.subr.msk.bf16.mxu0 %vm2209_vm0, %v6912_v13 }
 0x109   : > { %7685 = vmatmul.mubr.msk.bf16.gmra.mrb[8].mxu1 %vm2160_vm3, %v9642_v2 }
 0x10a   : > { %7688 = vmatprep.mubr.msk.bf16.mxu1 %vm2160_vm3, %v9661_v10 }
 0x10c   : > { %7545 = vmatmul.mubr.msk.bf16.gmra.mrb[4].mxu0 %vm2160_vm3, %v9358_v6 }
 0x10d   : > { %7548 = vmatprep.mubr.msk.bf16.mxu0 %vm2160_vm3, %v9360_v22 }
 0x111   : > { %7689 = vmatmul.mubr.msk.bf16.gmra.mrb[12].mxu1 %vm2160_vm3, %v9669_v7 }
 0x112   : > { %7692 = vmatprep.mubr.msk.bf16.mxu1 %vm2160_vm3, %v9677_v16 }
 0x114   : > { %7549 = vmatmul.mubr.msk.bf16.gmra.mrb[8].mxu0 %vm2160_vm3, %v9370_v42 }
 0x115   : > { %7552 = vmatprep.mubr.msk.bf16.mxu0 %vm2160_vm3, %v11529_v27 }
 0x119   : > { %7693 = vmatmul.mubr.msk.bf16.gmra.mrb[16].mxu1 %vm2160_vm3, %v9686_v59 }
 0x11a   : > { %7696 = vmatprep.mubr.msk.bf16.mxu1 %vm2160_vm3, %v9705_v4 }
 0x11c   : > { %7553 = vmatmul.mubr.msk.bf16.gmra.mrb[12].mxu0 %vm2160_vm3, %v9391_v44 }
 0x11d   : > { %7556 = vmatprep.mubr.msk.bf16.mxu0 %vm2160_vm3, %v9565_v53 }
 0x121   : > { %7697 = vmatmul.mubr.msk.bf16.gmra.mrb[20].mxu1 %vm2160_vm3, %v9710_v41 }
 0x122   : > { %7700 = vmatprep.mubr.msk.bf16.mxu1 %vm2160_vm3, %v9719_v17 }
 0x124   : > { %7557 = vmatmul.mubr.msk.bf16.gmra.mrb[16].mxu0 %vm2160_vm3, %v9570_v31 }
 0x125   : > { %7560 = vmatprep.mubr.msk.bf16.mxu0 %vm2160_vm3, %v9579_v34 }
 0x129   : > { %7701 = vmatmul.mubr.msk.bf16.gmra.mrb[24].mxu1 %vm2160_vm3, %v9732_v47 }
 0x12a   : > { %7704 = vmatprep.mubr.msk.bf16.mxu1 %vm2160_vm3, %v9764_v32 }
 0x12c   : > { %7561 = vmatmul.mubr.msk.bf16.gmra.mrb[20].mxu0 %vm2160_vm3, %v9581_v46 }
 0x12d   : > { %7564 = vmatprep.mubr.msk.bf16.mxu0 %vm2160_vm3, %v9583_v48 }
 0x131   : > { %7705 = vmatmul.mubr.msk.bf16.gmra.mrb[28].mxu1 %vm2160_vm3, %v9772_v63 }
 0x132   : > { %7846 = vmatprep.mubr.msk.bf16.mxu1 %vm2160_vm3, %v9821_v54  ;;  %v4543_v54 = vsel %vm2209_vm0, %v6912_v13, 0  ;;  %v10051_v13 = vld [vmem:[%s8528_s23 + $0x34] sm:$0xf] }
 0x134   : > { %7565 = vmatmul.mubr.msk.bf16.gmra.mrb[24].mxu0 %vm2160_vm3, %v9786_v40 }
 0x135   : > { %7568 = vmatprep.mubr.msk.bf16.mxu0 %vm2160_vm3, %v9788_v0 }
 0x139   : > { %7847 = vmatmul.mubr.msk.bf16.vlgmr.msra.gmra.mrb[32].mxu1 %vm2160_vm3, %v6849_v9 }
 0x13a   : > { %7879 = vmatpush3.bf16.msra.mxu1 %v5576_v43  ;;  %7850 = vmatprep.mubr.msk.bf16.mxu1 %vm2160_vm3, %v6850_v8  ;;  %v1582_v8 = vshll.u32 %v10028_v24, 16  ;;  %v1570_v43 = vrot.slane %v1568_v20, 5 }
 0x13b   : > { %8378 = vmatprep.subr.msk.bf16.mxu1 %vm2209_vm0, %v7078_v33 }
 0x13c   : > { %7569 = vmatmul.mubr.msk.bf16.gmra.mrb[28].mxu0 %vm2160_vm3, %v9819_v61 }
 0x13d   : > { %7710 = vmatprep.mubr.msk.bf16.mxu0 %vm2160_vm3, %v11526_v25 }
 0x141   : > { %7851 = vmatmul.mubr.msk.bf16.gmra.mrb[36].mxu1 %vm2160_vm3, %v6851_v60  ;;  %v1588_v60 = vrot.slane %v1586_v51, 4 }
 0x142   : > { %7854 = vmatprep.mubr.msk.bf16.mxu1 %vm2160_vm3, %v9633_v39  ;;  %v9998_v39 = vld [vmem:[%s8528_s23 + $0x18] sm:$0xf] }
 0x143   : > { %11530 = vst [vmem:[#allocation12_spill] sm:$0xff] %v9998_v39 }
 0x144   : > { %7711 = vmatmul.mubr.msk.bf16.vlgmr.msra.gmra.mrb[32].mxu0 %vm2160_vm3, %v11527_v19 }
 0x145   : > { %7743 = vmatpush3.bf16.msra.mxu0 %v4543_v54  ;;  %7714 = vmatprep.mubr.msk.bf16.mxu0 %vm2160_vm3, %v11528_v56 }
 0x146   : > { %8374 = vmatprep.subr.msk.bf16.mxu0 %vm2209_vm0, %v6946_v29 }
 0x149   : > { %7855 = vmatmul.mubr.msk.bf16.gmra.mrb[40].mxu1 %vm2160_vm3, %v9642_v2  ;;  %v5742_v2 = vsel %vm2209_vm0, %v7078_v33, 0  ;;  %v10055_v33 = vld [vmem:[%s8528_s23 + $0x3c] sm:$0xf] }
 0x14a   : > { %7858 = vmatprep.mubr.msk.bf16.mxu1 %vm2160_vm3, %v9661_v10  ;;  %v10001_v10 = vld [vmem:[%s8528_s23 + $0x1c] sm:$0xf] }
 0x14b   : > { %11531 = vst [vmem:[#allocation19_spill] sm:$0xff] %v10001_v10 }
 0x14c   : > { %7715 = vmatmul.mubr.msk.bf16.gmra.mrb[36].mxu0 %vm2160_vm3, %v9358_v6 }
 0x14d   : > { %7718 = vmatprep.mubr.msk.bf16.mxu0 %vm2160_vm3, %v9360_v22 }
 0x151   : > { %7859 = vmatmul.mubr.msk.bf16.gmra.mrb[44].mxu1 %vm2160_vm3, %v9669_v7  ;;  %v10004_v7 = vld [vmem:[%s8528_s23 + $0x24] sm:$0xf] }
 0x152   : > { %7862 = vmatprep.mubr.msk.bf16.mxu1 %vm2160_vm3, %v9677_v16  ;;  %11532 = vst [vmem:[#allocation31_spill] sm:$0xff] %v10004_v7  ;;  %v10007_v16 = vld [vmem:[%s8521_s20 + $0x1e] sm:$0x3] }
 0x154   : > { %7719 = vmatmul.mubr.msk.bf16.gmra.mrb[40].mxu0 %vm2160_vm3, %v9370_v42 }
 0x155   : > { %7722 = vmatprep.mubr.msk.bf16.mxu0 %vm2160_vm3, %v11529_v27 }
 0x159   : > { %7863 = vmatmul.mubr.msk.bf16.gmra.mrb[48].mxu1 %vm2160_vm3, %v9686_v59  ;;  %v1549_v59 = vshrl.u32 %v9998_v39, 16 }
 0x15a   : > { %7866 = vmatprep.mubr.msk.bf16.mxu1 %vm2160_vm3, %v9705_v4  ;;  %v1552_v4 = vshll.u32 %v9998_v39, 16  ;;  %v11550_v39 = vld [vmem:[#allocation26_spill] sm:$0xff] }
 0x15b   : > { %v1551_v1 = vrot.slane %v1549_v59, 4  ;;  %v10062_v59 = vld [vmem:[%s8528_s23 + $0x40] sm:$0xf] }
 0x15c   : > { %7723 = vmatmul.mubr.msk.bf16.gmra.mrb[44].mxu0 %vm2160_vm3, %v9391_v44  ;;  %v1554_v14 = vrot.slane %v1552_v4, 5  ;;  %v6602_v4 = vld [vmem:[%s8528_s23 + $0x38] sm:$0x1] }
 0x15d   : > { %7726 = vmatprep.mubr.msk.bf16.mxu0 %vm2160_vm3, %v9565_v53  ;;  %v1616_v51 = vshll.u32 %v6602_v4, 16  ;;  %v10116_v4 = vld [vmem:[%s8528_s23 + $0x48] sm:$0xf] }
 0x15e   : > { %v1555_v58 = vor.u32 %v1554_v14, %v1551_v1  ;;  %v1621_v1 = vshrl.u32 %v10055_v33, 16 }
 0x161   : > { %7867 = vmatmul.mubr.msk.bf16.gmra.mrb[52].mxu1 %vm2160_vm3, %v9710_v41  ;;  %v1558_v41 = vshll.u32 %v10001_v10, 16 }
 0x162   : > { %7870 = vmatprep.mubr.msk.bf16.mxu1 %vm2160_vm3, %v9719_v17  ;;  %v1562_v17 = vshrl.u32 %v10001_v10, 16 }
 0x163   : > { %v10025_v37 = vrot.slane %v1558_v41, 5  ;;  %v1606_v41 = vshll.u32 %v10051_v13, 16 }
 0x164   : > { %7727 = vmatmul.mubr.msk.bf16.gmra.mrb[48].mxu0 %vm2160_vm3, %v9570_v31  ;;  %v1564_v26 = vrot.slane %v1562_v17, 4  ;;  %v1610_v17 = vshrl.u32 %v10051_v13, 16 }
 0x165   : > { %7730 = vmatprep.mubr.msk.bf16.mxu0 %vm2160_vm3, %v9579_v34  ;;  %v10093_v57 = vrot.slane %v1606_v41, 5 }
 0x166   : > { %v1565_v62 = vor.u32 %v1564_v26, %v10025_v37 }
 0x169   : > { %7871 = vmatmul.mubr.msk.bf16.gmra.mrb[56].mxu1 %vm2160_vm3, %v9732_v47  ;;  %v1573_v47 = vshrl.u32 %v10004_v7, 16 }
 0x16a   : > { %7874 = vmatprep.mubr.msk.bf16.mxu1 %vm2160_vm3, %v9764_v32  ;;  %v1576_v32 = vshll.u32 %v10004_v7, 16 }
 0x16b   : > { %v1575_v23 = vrot.slane %v1573_v47, 4  ;;  %v10068_v47 = vld [vmem:[%s8528_s23 + $0x58] sm:$0xf] }
 0x16c   : > { %7731 = vmatmul.mubr.msk.bf16.gmra.mrb[52].mxu0 %vm2160_vm3, %v9581_v46  ;;  %v1578_v9 = vrot.slane %v1576_v32, 5  ;;  %v2033_v14 = vrot.slane %v10068_v47, 5 }
 0x16d   : > { %7734 = vmatprep.mubr.msk.bf16.mxu0 %vm2160_vm3, %v9583_v48 }
 0x16e   : > { %v1579_v50 = vor.u32 %v1578_v9, %v1575_v23  ;;  %v1630_v23 = vshll.u32 %v10062_v59, 16  ;;  %v10087_v9 = vld [vmem:[%s8528_s23 + $0x5c] sm:$0x1] }
 0x170   : > { %v10057_v54 = vrot.slane %v1579_v50, 4  ;;  %v1612_v50 = vrot.slane %v1610_v17, 4 }
 0x171   : > { %7875 = vmatmul.mubr.msk.bf16.gmra.mrb[60].mxu1 %vm2160_vm3, %v9772_v63  ;;  %v11533_v63 = vld [vmem:[#allocation6_spill] sm:$0xff] }
 0x172   : > { %7880 = vmatprep.mubr.msk.bf16.mxu1 %vm2160_vm3, %v11526_v25  ;;  %v11536_v25 = vld [vmem:[#allocation23_spill] sm:$0xff] }
 0x174   : > { %7735 = vmatmul.mubr.msk.bf16.gmra.mrb[56].mxu0 %vm2160_vm3, %v9786_v40 }
 0x175   : > { %7738 = vmatprep.mubr.msk.bf16.mxu0 %vm2160_vm3, %v9788_v0 }
 0x179   : > { %7881 = vmatmul.mubr.msk.bf16.vlgmr.msra.gmra.mrb[32].mxu1 %vm2160_vm3, %v11527_v19  ;;  %v1556_v19 = vrot.slane %v1555_v58, 4  ;;  %v2035_v58 = vrot.slane %v2033_v14, 4 }
 0x17a   : > { %7913 = vmatpush3.bf16.msra.mxu1 %v5742_v2  ;;  %7884 = vmatprep.mubr.msk.bf16.mxu1 %vm2160_vm3, %v11528_v56  ;;  %v1566_v56 = vrot.slane %v1565_v62, 4  ;;  %v11537_v62 = vld [vmem:[#allocation24_spill] sm:$0xff] }
 0x17b   : > { %8379 = vmatprep.subr.msk.bf16.mxu1 %vm2209_vm0, %v10007_v16  ;;  %v1561_v26 = vsel %vm8591_vm7, %v1556_v19, %v10025_v37 }
 0x17c   : > { %7739 = vmatmul.mubr.msk.bf16.gmra.mrb[60].mxu0 %vm2160_vm3, %v9819_v61  ;;  %v1571_v38 = vsel %vm8591_vm7, %v1566_v56, %v1570_v43 }
 0x17d   : > { %7744 = vmatprep.mubr.msk.bf16.mxu0 %vm2160_vm3, %v11533_v63  ;;  %v10073_v63 = vrot.slane %v1592_v3, 5  ;;  %v10100_v3 = vrot.slane %v1621_v1, 4  ;;  %v10120_v17 = vcombine.low %v1561_v26, %v1571_v38  ;;  %v10124_v1 = vrot.slane %v1616_v51, 5  ;;  %v10138_v38 = vld [vmem:[%s8528_s23 + $0x68] sm:$0x1] }
 0x17e   : > { %v1613_v26 = vor.u32 %v1612_v50, %v10093_v57 }
 0x17f   : > { %11541 = vst [vmem:[#allocation14_spill] sm:$0xff] %v10120_v17 }
 0x181   : > { %7885 = vmatmul.mubr.msk.bf16.gmra.mrb[36].mxu1 %vm2160_vm3, %v9358_v6  ;;  %v10044_v6 = vld [vmem:[%s8528_s23 + $0x30] sm:$0xf] }
 0x182   : > { %7888 = vmatprep.mubr.msk.bf16.mxu1 %vm2160_vm3, %v9360_v22  ;;  %v10048_v22 = vrot.slane %v1582_v8, 5  ;;  %v1597_v29 = vshrl.u32 %v10044_v6, 16  ;;  %v1600_v2 = vshll.u32 %v10044_v6, 16  ;;  %v6621_v8 = vld [vmem:[%s8528_s23 + $0x54] sm:$0xe] }
 0x184   : > { %7745 = vmatmul.mubr.msk.bf16.vlgmr.msra.gmra.mrb[32].mxu0 %vm2160_vm3, %v11535_v55  ;;  %v1589_v32 = vor.u32 %v1588_v60, %v10048_v22  ;;  %v1599_v37 = vrot.slane %v1597_v29, 4  ;;  %v1602_v20 = vrot.slane %v1600_v2, 5  ;;  %v10096_v55 = vld [vmem:[%s8528_s23 + $0x44] sm:$0x1]  ;;  %v10112_v29 = vrot.slane %v1630_v23, 5 }
 0x185   : > { %7777 = vmatpush3.bf16.msra.mxu0 %v4821_v28  ;;  %7748 = vmatprep.mubr.msk.bf16.mxu0 %vm2160_vm3, %v11536_v25  ;;  %v6637_v28 = vrot.slane %v6621_v8, 9  ;;  %v11538_v25 = vld [vmem:[#allocation10_spill] sm:$0xff]  ;;  %v1634_v2 = vshrl.u32 %v10062_v59, 16  ;;  %v10134_v8 = vsel %vm2209_vm0, %v6979_v49, 0 }
 0x186   : > { %8375 = vmatprep.subr.msk.bf16.mxu0 %vm2209_vm0, %v6979_v49  ;;  %v1590_v60 = vrot.slane %v1589_v32, 4  ;;  %v10131_v23 = vld [vmem:[%s8528_s23 + $0x64] sm:$0xf]  ;;  %11542 = vst [vmem:[#allocation16_spill] sm:$0xff] %v10134_v8 }
 0x187   : > { %v10104_v19 = vsel %vm8544_vm6, %v6637_v28, %v2033_v14  ;;  %v1603_v28 = vor.u32 %v1602_v20, %v1599_v37  ;;  %v2040_v51 = vrot.slane %v10131_v23, 5  ;;  %v10155_v37 = vld [vmem:[%s8528_s23 + $0x74] sm:$0x1]  ;;  %v6622_v20 = vld [vmem:[%s8528_s23 + $0x60] sm:$0xe]  ;;  %v1636_v8 = vrot.slane %v1634_v2, 4 }
 0x188   : > { %11539 = vst [vmem:[#allocation9_spill] sm:$0xff] %v10104_v19  ;;  %v1595_v49 = vsel %vm8591_vm7, %v1590_v60, %v10073_v63  ;;  %v2050_v14 = vrot.slane %v10155_v37, 5  ;;  %v10170_v19 = vrot.slane %v1613_v26, 4  ;;  %v10219_v2 = vld [vmem:[%s8528_s23 + $0x80] sm:$0x1] }
 0x189   : > { %7889 = vmatmul.mubr.msk.bf16.gmra.mrb[40].mxu1 %vm2160_vm3, %v9370_v42  ;;  %v1624_v42 = vshll.u32 %v10055_v33, 16  ;;  %v2042_v41 = vrot.slane %v2040_v51, 4 }
 0x18a   : > { %7892 = vmatprep.mubr.msk.bf16.mxu1 %vm2160_vm3, %v11529_v27  ;;  %v2036_v27 = vrot.slane %v10087_v9, 5 }
 0x18b   : > { %v10110_v43 = vrot.slane %v1624_v42, 5  ;;  %v10128_v42 = vld [vmem:[%s8528_s23 + $0x4c] sm:$0xf] }
 0x18c   : > { %7749 = vmatmul.mubr.msk.bf16.gmra.mrb[36].mxu0 %vm2160_vm3, %v11537_v62  ;;  %v10108_v56 = vsel %vm8544_vm6, %v2035_v58, %v2036_v27  ;;  %v10141_v58 = vld [vmem:[%s8528_s23 + $0x70] sm:$0xf]  ;;  %v1585_v27 = vsel %vm8591_vm7, %v10057_v54, %v10048_v22  ;;  %v1645_v62 = vshrl.u32 %v10116_v4, 16  ;;  %v2043_v22 = vrot.slane %v10138_v38, 5  ;;  %v6623_v54 = vld [vmem:[%s8528_s23 + $0x6c] sm:$0xe] }
 0x18d   : > { %7752 = vmatprep.mubr.msk.bf16.mxu0 %vm2160_vm3, %v11538_v25  ;;  %11540 = vst [vmem:[#allocation27_spill] sm:$0xff] %v10108_v56  ;;  %v2047_v50 = vrot.slane %v10141_v58, 5  ;;  %v6638_v25 = vrot.slane %v6622_v20, 9  ;;  %v1654_v63 = vshll.u32 %v10128_v42, 16  ;;  %v6639_v60 = vrot.slane %v6623_v54, 9 }
 0x18e   : > { %v10168_v56 = vrot.slane %v1603_v28, 4  ;;  %v10181_v54 = vsel %vm8544_vm6, %v2042_v41, %v2043_v22  ;;  %v10197_v41 = vsel %vm2209_vm0, %v10007_v16, 0  ;;  %v10211_v22 = vld [vmem:[%s8528_s23 + $0x7c] sm:$0xf]  ;;  %v10213_v16 = vcombine.low %v1585_v27, %v1595_v49 }
 0x18f   : > { %v2049_v32 = vrot.slane %v2047_v50, 4  ;;  %v10177_v20 = vsel %vm8544_vm6, %v6638_v25, %v2040_v51  ;;  %11544 = vst [vmem:[#allocation29_spill] sm:$0xff] %v10181_v54  ;;  %v10189_v28 = vsel %vm8544_vm6, %v6639_v60, %v2047_v50  ;;  %v10199_v51 = vrot.slane %v1645_v62, 4  ;;  %v10232_v62 = vld [vmem:[%s8528_s23 + $0x8c] sm:$0x1] }
 0x190   : > { %11543 = vst [vmem:[#allocation28_spill] sm:$0xff] %v10177_v20  ;;  %11545 = vst [vmem:[#allocation15_spill] sm:$0xff] %v10189_v28  ;;  %v10206_v50 = vrot.slane %v1654_v63, 5  ;;  %v1678_v60 = vshll.u32 %v10068_v47, 16  ;;  %v2054_v63 = vrot.slane %v10211_v22, 5  ;;  %v1637_v27 = vor.u32 %v1636_v8, %v10112_v29 }
 0x191   : > { %7893 = vmatmul.mubr.msk.bf16.gmra.mrb[44].mxu1 %vm2160_vm3, %v9391_v44  ;;  %v1648_v44 = vshll.u32 %v10116_v4, 16  ;;  %v10193_v26 = vsel %vm8544_vm6, %v2049_v32, %v2050_v14  ;;  %11547 = vst [vmem:[#allocation17_spill] sm:$0xff] %v10213_v16  ;;  %v1682_v49 = vshrl.u32 %v10068_v47, 16  ;;  %11549 = vst [vmem:[#allocation20_spill] sm:$0xff] %v10232_v62  ;;  %v2064_v10 = vrot.slane %v10232_v62, 5 }
 0x192   : > { %7896 = vmatprep.mubr.msk.bf16.mxu1 %vm2160_vm3, %v9565_v53  ;;  %v10173_v53 = vld [vmem:[%s8528_s23 + $0x54] sm:$0xf]  ;;  %11546 = vst [vmem:[#allocation18_spill] sm:$0xff] %v10193_v26  ;;  %v6624_v26 = vld [vmem:[%s8528_s23 + $0x78] sm:$0xe] }
 0x193   : > { %v10204_v25 = vrot.slane %v1648_v44, 5  ;;  %v1669_v32 = vshrl.u32 %v10173_v53, 16  ;;  %v1672_v14 = vshll.u32 %v10173_v53, 16  ;;  %v10222_v44 = vld [vmem:[%s8528_s23 + $0x88] sm:$0xf]  ;;  %v6640_v20 = vrot.slane %v6624_v26, 9 }
 0x194   : > { %7753 = vmatmul.mubr.msk.bf16.gmra.mrb[40].mxu0 %vm2160_vm3, %v9368_v18  ;;  %11548 = vst [vmem:[#allocation3_spill] sm:$0xff] %v10222_v44  ;;  %v1627_v18 = vor.u32 %v10110_v43, %v10100_v3  ;;  %v2061_v28 = vrot.slane %v10222_v44, 5  ;;  %v2057_v3 = vrot.slane %v10219_v2, 5  ;;  %v6625_v43 = vld [vmem:[%s8528_s23 + $0x84] sm:$0xe] }
 0x195   : > { %7756 = vmatprep.mubr.msk.bf16.mxu0 %vm2160_vm3, %v9376_v12  ;;  %v1658_v12 = vshrl.u32 %v10128_v42, 16  ;;  %v10242_v8 = vrot.slane %v1669_v32, 4  ;;  %v6641_v24 = vrot.slane %v6625_v43, 9  ;;  %v1674_v44 = vrot.slane %v1672_v14, 5  ;;  %v11553_v32 = vld [vmem:[#allocation30_spill] sm:$0xff] }
 0x196   : > { %v2063_v7 = vrot.slane %v2061_v28, 4  ;;  %v10252_v26 = vsel %vm8544_vm6, %v6640_v20, %v2054_v63  ;;  %v1684_v43 = vrot.slane %v1682_v49, 4  ;;  %v10261_v62 = vld [vmem:[%s8528_s23 + $0x60] sm:$0xf]  ;;  %v11556_v49 = vshll.u32 %v10096_v55, 16 }
 0x197   : > { %v10238_v54 = vrot.slane %v1658_v12, 4  ;;  %11551 = vst [vmem:[#allocation5_spill] sm:$0xff] %v10252_v26  ;;  %v10267_v20 = vsel %vm8544_vm6, %v6641_v24, %v2061_v28  ;;  %v1664_v24 = vshll.u32 %v6604_v5, 16  ;;  %v1651_v55 = vor.u32 %v10204_v25, %v10199_v51  ;;  %v10313_v25 = vld [vmem:[%s8528_s23 + $0xa4] sm:$0x1] }
 0x198   : > { %11554 = vst [vmem:[#allocation11_spill] sm:$0xff] %v10267_v20  ;;  %v10271_v14 = vsel %vm8544_vm6, %v2063_v7, %v2064_v10  ;;  %v1619_v10 = vsel %vm8591_vm7, %v10170_v19, %v10124_v1  ;;  %v10289_v7 = vrot.slane %v1637_v27, 4  ;;  %v1693_v28 = vshrl.u32 %v10261_v62, 16  ;;  %v10304_v19 = vld [vmem:[%s8528_s23 + $0xa0] sm:$0xf]  ;;  %11557 = vst [vmem:[#allocation22_spill] sm:$0xff] %v10313_v25 }
 0x199   : > { %7897 = vmatmul.mubr.msk.bf16.gmra.mrb[48].mxu1 %vm2160_vm3, %v9570_v31  ;;  %v2056_v31 = vrot.slane %v2054_v63, 4  ;;  %11555 = vst [vmem:[#allocation21_spill] sm:$0xff] %v10271_v14  ;;  %v10277_v63 = vrot.slane %v1627_v18, 4  ;;  %v1661_v18 = vor.u32 %v10238_v54, %v10206_v50  ;;  %v1675_v5 = vor.u32 %v1674_v44, %v10242_v8  ;;  %v6626_v54 = vld [vmem:[%s8528_s23 + $0x90] sm:$0xe] }
 0x19a   : > { %7900 = vmatprep.mubr.msk.bf16.mxu1 %vm2160_vm3, %v9579_v34  ;;  %v10248_v34 = vrot.slane %v1678_v60, 5  ;;  %v1609_v60 = vsel %vm8591_vm7, %v10168_v56, %v10093_v57  ;;  %v1688_v57 = vshll.u32 %v10087_v9, 16  ;;  %v10293_v56 = vld [vmem:[%s8528_s23 + $0x94] sm:$0xf]  ;;  %v1696_v51 = vshll.u32 %v10261_v62, 16 }
 0x19b   : > { %v10256_v12 = vsel %vm8544_vm6, %v2056_v31, %v2057_v3  ;;  %v10281_v31 = vrot.slane %v11556_v49, 5  ;;  %v2068_v1 = vrot.slane %v10293_v56, 5  ;;  %v2075_v27 = vrot.slane %v10304_v19, 5  ;;  %v6627_v14 = vld [vmem:[%s8528_s23 + $0x9c] sm:$0xe] }
 0x19c   : > { %7757 = vmatmul.mubr.msk.bf16.gmra.mrb[44].mxu0 %vm2160_vm3, %v11550_v39  ;;  %11552 = vst [vmem:[#allocation4_spill] sm:$0xff] %v10256_v12  ;;  %v1685_v9 = vor.u32 %v1684_v43, %v10248_v34  ;;  %v1702_v49 = vshll.u32 %v10131_v23, 16  ;;  %v6642_v3 = vrot.slane %v6626_v54, 9  ;;  %v1706_v44 = vshrl.u32 %v10131_v23, 16 }
 0x19d   : > { %7760 = vmatprep.mubr.msk.bf16.mxu0 %vm2160_vm3, %v11553_v32  ;;  %v10301_v32 = vld [vmem:[%s8528_s23 + $0x98] sm:$0x1]  ;;  %v2070_v39 = vrot.slane %v2068_v1, 4  ;;  %v6643_v8 = vrot.slane %v6627_v14, 9  ;;  %v2077_v43 = vrot.slane %v2075_v27, 4  ;;  %v2078_v20 = vrot.slane %v10313_v25, 5 }
 0x19e   : > { %v10326_v12 = vrot.slane %v1664_v24, 5  ;;  %v10330_v54 = vsel %vm8544_vm6, %v6642_v3, %v2068_v1  ;;  %v1698_v14 = vrot.slane %v1696_v51, 5  ;;  %v10348_v24 = vrot.slane %v1651_v55, 4  ;;  %v10366_v55 = vld [vmem:[%s8528_s23 + $0xac] sm:$0xf] }
 0x19f   : > { %11558 = vst [vmem:[#allocation8_spill] sm:$0xff] %v10330_v54  ;;  %v10346_v3 = vsel %vm8544_vm6, %v2077_v43, %v2078_v20  ;;  %v10359_v51 = vrot.slane %v1675_v5, 4  ;;  %v1708_v20 = vrot.slane %v1706_v44, 4  ;;  %v10374_v43 = vld [vmem:[%s8528_s23 + $0xb0] sm:$0x1]  ;;  %v1726_v54 = vshll.u32 %v10141_v58, 16 }
 0x1a0   : > { %11561 = vst [vmem:[#allocation7_spill] sm:$0xff] %v10346_v3  ;;  %v10377_v5 = vld [vmem:[%s8528_s23 + $0xb8] sm:$0xf]  ;;  %v10386_v25 = vld [vmem:[%s8528_s23 + $0xbc] sm:$0x1] }
 0x1a1   : > { %7901 = vmatmul.mubr.msk.bf16.gmra.mrb[52].mxu1 %vm2160_vm3, %v9581_v46  ;;  %v2071_v46 = vrot.slane %v10301_v32, 5  ;;  %11563 = vst [vmem:[#allocation24_spill] sm:$0xff] %v10386_v25 }
 0x1a2   : > { %7904 = vmatprep.mubr.msk.bf16.mxu1 %vm2160_vm3, %v9583_v48  ;;  %v1695_v48 = vrot.slane %v1693_v28, 4  ;;  %v10352_v28 = vrot.slane %v1688_v57, 5 }
 0x1a3   : > { %v10334_v26 = vsel %vm8544_vm6, %v2070_v39, %v2071_v46  ;;  %v10350_v39 = vrot.slane %v1661_v18, 4  ;;  %v10363_v46 = vrot.slane %v1702_v49, 5  ;;  %v10382_v49 = vcombine.low %v1609_v60, %v1619_v10  ;;  %v6628_v18 = vld [vmem:[%s8528_s23 + $0xa8] sm:$0xe] }
 0x1a4   : > { %7761 = vmatmul.mubr.msk.bf16.gmra.mrb[48].mxu0 %vm2160_vm3, %v9746_v52  ;;  %11559 = vst [vmem:[#allocation25_spill] sm:$0xff] %v10334_v26  ;;  %v10342_v52 = vsel %vm8544_vm6, %v6643_v8, %v2075_v27  ;;  %v10361_v27 = vrot.slane %v1685_v9, 4  ;;  %v1712_v8 = vshll.u32 %v10138_v38, 16  ;;  %v2082_v9 = vrot.slane %v10366_v55, 5 }
 0x1a5   : > { %7764 = vmatprep.mubr.msk.bf16.mxu0 %vm2160_vm3, %v9750_v15  ;;  %11560 = vst [vmem:[#allocation6_spill] sm:$0xff] %v10342_v52  ;;  %v10355_v15 = vld [vmem:[%s8528_s23 + $0x6c] sm:$0xf]  ;;  %11562 = vst [vmem:[#allocation23_spill] sm:$0xff] %v10382_v49  ;;  %v1699_v44 = vor.u32 %v1698_v14, %v1695_v48  ;;  %v2089_v38 = vrot.slane %v10377_v5, 5  ;;  %v6644_v3 = vrot.slane %v6628_v18, 9  ;;  %v1709_v60 = vor.u32 %v1708_v20, %v10363_v46 }
 0x1a6   : > { %v1717_v1 = vshrl.u32 %v10355_v15, 16  ;;  %v1720_v57 = vshll.u32 %v10355_v15, 16  ;;  %v2084_v52 = vrot.slane %v2082_v9, 4  ;;  %v2085_v26 = vrot.slane %v10374_v43, 5 }
 0x1a7   : > { %v2091_v48 = vrot.slane %v2089_v38, 4  ;;  %v2092_v14 = vrot.slane %v10386_v25, 5  ;;  %v10403_v18 = vsel %vm8544_vm6, %v6644_v3, %v2082_v9  ;;  %v10434_v9 = vld [vmem:[%s8528_s23 + $0x78] sm:$0xf] }
 0x1a8   : > { %11564 = vst [vmem:[#allocation10_spill] sm:$0xff] %v10403_v18  ;;  %v10407_v20 = vsel %vm8544_vm6, %v2084_v52, %v2085_v26  ;;  %v1633_v26 = vsel %vm8591_vm7, %v10277_v63, %v10112_v29  ;;  %v1657_v52 = vsel %vm8591_vm7, %v10348_v24, %v10206_v50  ;;  %v1719_v29 = vrot.slane %v1717_v1, 4  ;;  %v10452_v24 = vld [vmem:[%s8528_s23 + $0xc8] sm:$0x1] }
 0x1a9   : > { %7905 = vmatmul.mubr.msk.bf16.gmra.mrb[56].mxu1 %vm2160_vm3, %v9786_v40  ;;  %v6629_v40 = vld [vmem:[%s8528_s23 + $0xb4] sm:$0xe]  ;;  %11565 = vst [vmem:[#allocation26_spill] sm:$0xff] %v10407_v20  ;;  %v10419_v3 = vsel %vm8544_vm6, %v2091_v48, %v2092_v14  ;;  %v1722_v63 = vrot.slane %v1720_v57, 5  ;;  %v10439_v48 = vld [vmem:[%s8528_s23 + $0xc4] sm:$0xf]  ;;  %v1681_v50 = vsel %vm8591_vm7, %v10359_v51, %v10248_v34 }
 0x1aa   : > { %7908 = vmatprep.mubr.msk.bf16.mxu1 %vm2160_vm3, %v9788_v0  ;;  %v6645_v10 = vrot.slane %v6629_v40, 9  ;;  %v1730_v0 = vshrl.u32 %v10141_v58, 16  ;;  %v1700_v40 = vrot.slane %v1699_v44, 4  ;;  %11567 = vst [vmem:[#allocation33_spill] sm:$0xff] %v10419_v3  ;;  %v2096_v1 = vrot.slane %v10439_v48, 5 }
 0x1ab   : > { %v6630_v51 = vld [vmem:[%s8528_s23 + $0xc0] sm:$0xe]  ;;  %v2099_v44 = vrot.slane %v10452_v24, 5  ;;  %v1760_v20 = vshll.u32 %v10219_v2, 16 }
 0x1ac   : > { %7765 = vmatmul.mubr.msk.bf16.gmra.mrb[52].mxu0 %vm2160_vm3, %v9793_v30  ;;  %v10415_v25 = vsel %vm8544_vm6, %v6645_v10, %v2089_v38  ;;  %v1710_v38 = vrot.slane %v1709_v60, 4  ;;  %v1714_v10 = vrot.slane %v1712_v8, 5  ;;  %v10455_v8 = vld [vmem:[%s8528_s23 + $0xd0] sm:$0xf]  ;;  %v1705_v34 = vsel %vm8591_vm7, %v1700_v40, %v10363_v46 }
 0x1ad   : > { %7768 = vmatprep.mubr.msk.bf16.mxu0 %vm2160_vm3, %v9799_v11  ;;  %11566 = vst [vmem:[#allocation30_spill] sm:$0xff] %v10415_v25  ;;  %v1643_v11 = vsel %vm8591_vm7, %v10289_v7, %v10281_v31  ;;  %v1667_v31 = vsel %vm8591_vm7, %v10350_v39, %v10326_v12  ;;  %v10449_v7 = vrot.slane %v1726_v54, 5  ;;  %v1691_v12 = vsel %vm8591_vm7, %v10361_v27, %v10352_v28  ;;  %v10468_v39 = vld [vmem:[%s8528_s23 + $0xd4] sm:$0x1]  ;;  %v6631_v28 = vld [vmem:[%s8528_s23 + $0xcc] sm:$0xe] }
 0x1ae   : > { %v1732_v54 = vrot.slane %v1730_v0, 4  ;;  %v2103_v57 = vrot.slane %v10455_v8, 5  ;;  %v6646_v60 = vrot.slane %v6630_v51, 9  ;;  %v2098_v14 = vrot.slane %v2096_v1, 4 }
 0x1af   : > { %v1741_v27 = vshrl.u32 %v10434_v9, 16  ;;  %v6647_v30 = vrot.slane %v6631_v28, 9  ;;  %v2106_v0 = vrot.slane %v10468_v39, 5  ;;  %v1715_v40 = vsel %vm8591_vm7, %v1710_v38, %v1714_v10 }
 0x1b0   : > { %v2105_v46 = vrot.slane %v2103_v57, 4  ;;  %v10486_v51 = vsel %vm8544_vm6, %v6646_v60, %v2096_v1  ;;  %v10490_v3 = vsel %vm8544_vm6, %v2098_v14, %v2099_v44  ;;  %v1723_v28 = vor.u32 %v1722_v63, %v1719_v29  ;;  %v10529_v29 = vld [vmem:[%s8528_s23 + $0x90] sm:$0xf] }
 0x1b1   : > { %7909 = vmatmul.mubr.msk.bf16.gmra.mrb[60].mxu1 %vm2160_vm3, %v9819_v61  ;;  %v1736_v61 = vshll.u32 %v10155_v37, 16  ;;  %v1744_v37 = vshll.u32 %v10434_v9, 16  ;;  %11568 = vst [vmem:[#allocation34_spill] sm:$0xff] %v10486_v51  ;;  %11569 = vst [vmem:[#allocation35_spill] sm:$0xff] %v10490_v3  ;;  %v10498_v38 = vsel %vm8544_vm6, %v6647_v30, %v2103_v57  ;;  %v1733_v1 = vor.u32 %v1732_v54, %v10449_v7  ;;  %v10535_v54 = vld [vmem:[%s8528_s23 + $0x9c] sm:$0xf] }
 0x1b2   : > { %7914 = vmatprep.mubr.msk.bf16.mxu1 %vm2160_vm3, %v10120_v17  ;;  %11570 = vst [vmem:[#allocation36_spill] sm:$0xff] %v10498_v38  ;;  %v10502_v10 = vsel %vm8544_vm6, %v2105_v46, %v2106_v0  ;;  %v1750_v44 = vshll.u32 %v10211_v22, 16  ;;  %v1754_v60 = vshrl.u32 %v10211_v22, 16  ;;  %v10512_v63 = vcombine.low %v1633_v26, %v1643_v11  ;;  %11572 = vst [vmem:[#allocation38_spill] sm:$0xff] %v10535_v54  ;;  %v11574_v57 = vld [vmem:[#allocation13_spill] sm:$0xff]  ;;  %v11576_v38 = vld [vmem:[#allocation19_spill] sm:$0xff] }
 0x1b3   : > { %11571 = vst [vmem:[#allocation37_spill] sm:$0xff] %v10502_v10  ;;  %v10514_v30 = vcombine.low %v1657_v52, %v1667_v31  ;;  %v10520_v14 = vcombine.low %v1681_v50, %v1691_v12  ;;  %v10522_v46 = vcombine.low %v1705_v34, %v1715_v40  ;;  %v10524_v0 = vrot.slane %v1736_v61, 5  ;;  %v11573_v40 = vld [vmem:[#allocation3_spill] sm:$0xff]  ;;  %v11575_v10 = vld [vmem:[#allocation12_spill] sm:$0xff] }
 0x1b4   : > { %7769 = vmatmul.mubr.msk.bf16.gmra.mrb[56].mxu0 %vm2160_vm3, %v9827_v21  ;;  %v1724_v26 = vrot.slane %v1723_v28, 4  ;;  %v1743_v11 = vrot.slane %v1741_v27, 4  ;;  %v1746_v52 = vrot.slane %v1744_v37, 5  ;;  %v1734_v50 = vrot.slane %v1733_v1, 4 }
 0x1b5   : > { %7772 = vmatprep.mubr.msk.bf16.mxu0 %vm2160_vm3, %v9833_v35  ;;  %v10508_v35 = vld [vmem:[%s8528_s23 + $0x84] sm:$0xf]  ;;  %v10540_v12 = vrot.slane %v1750_v44, 5  ;;  %v1756_v34 = vrot.slane %v1754_v60, 4  ;;  %v1774_v21 = vshll.u32 %v11573_v40, 16  ;;  %v1778_v27 = vshrl.u32 %v11573_v40, 16 }
 0x1b6   : > { %v1765_v31 = vshrl.u32 %v10508_v35, 16  ;;  %v1768_v61 = vshll.u32 %v10508_v35, 16  ;;  %v1789_v37 = vshrl.u32 %v10529_v29, 16  ;;  %v1792_v28 = vshll.u32 %v10529_v29, 16 }
 0x1b7   : > { %v1802_v1 = vshrl.u32 %v10293_v56, 16  ;;  %v1813_v44 = vshrl.u32 %v10535_v54, 16  ;;  %v1816_v60 = vshll.u32 %v10535_v54, 16  ;;  %v11577_v3 = vcombine.low %v11575_v10, %v11576_v38 }
 0x1b8   : > { %v1747_v25 = vor.u32 %v1746_v52, %v1743_v11  ;;  %v1757_v18 = vor.u32 %v1756_v34, %v10540_v12  ;;  %v1826_v17 = vshrl.u32 %v10304_v19, 16  ;;  %v10563_v36 = vrot.slane %v1774_v21, 5 }
 0x1b9   : > { %7915 = vmatmul.mubr.msk.bf16.vlgmr.msra.gmra.mrb[32].mxu1 %vm2160_vm3, %v10213_v16  ;;  %v1822_v16 = vshll.u32 %v10304_v19, 16  ;;  %v1780_v38 = vrot.slane %v1778_v27, 4  ;;  %v1791_v10 = vrot.slane %v1789_v37, 4  ;;  %v1804_v51 = vrot.slane %v1802_v1, 4  ;;  %v11578_v37 = vld [vmem:[#allocation20_spill] sm:$0xff] }
 0x1ba   : > { %7947 = vmatpush3.bf16.msra.mxu1 %v10197_v41  ;;  %7918 = vmatprep.mubr.msk.bf16.mxu1 %vm2160_vm3, %v10382_v49  ;;  %v1798_v41 = vshll.u32 %v10293_v56, 16  ;;  %v1770_v49 = vrot.slane %v1768_v61, 5  ;;  %v1815_v11 = vrot.slane %v1813_v44, 4  ;;  %v1818_v52 = vrot.slane %v1816_v60, 5  ;;  %v10576_v61 = vld [vmem:[%s8528_s23 + $0xa8] sm:$0xf] }
 0x1bb   : > { %v1729_v2 = vsel %vm8591_vm7, %v1724_v26, %v10449_v7  ;;  %v1739_v21 = vsel %vm8591_vm7, %v1734_v50, %v10524_v0  ;;  %v1762_v34 = vrot.slane %v1760_v20, 5  ;;  %v1828_v1 = vrot.slane %v1826_v17, 4  ;;  %v11579_v0 = vld [vmem:[#allocation31_spill] sm:$0xff] }
 0x1bc   : > { %7773 = vmatmul.mubr.msk.bf16.gmra.mrb[60].mxu0 %vm2160_vm3, %v11574_v57  ;;  %v1767_v57 = vrot.slane %v1765_v31, 4  ;;  %v10565_v54 = vrot.slane %v1798_v41, 5  ;;  %v1748_v31 = vrot.slane %v1747_v25, 4  ;;  %v10581_v41 = vrot.slane %v1822_v16, 5  ;;  %v11580_v25 = vld [vmem:[#allocation32_spill] sm:$0xff] }
 0x1bd   : > { %7778 = vmatprep.mubr.msk.bf16.mxu0 %vm2160_vm3, %v11577_v3  ;;  %v1794_v3 = vrot.slane %v1792_v28, 5  ;;  %v1784_v28 = vshll.u32 %v11578_v37, 16  ;;  %v1758_v44 = vrot.slane %v1757_v18, 4  ;;  %v1781_v7 = vor.u32 %v1780_v38, %v10563_v36  ;;  %v11582_v18 = vld [vmem:[#allocation16_spill] sm:$0xff] }
 0x1be   : > { %v1771_v27 = vor.u32 %v1770_v49, %v1767_v57  ;;  %v1808_v60 = vshll.u32 %v10301_v32, 16  ;;  %v11581_v20 = vcombine.low %v11579_v0, %v11580_v25  ;;  %v1805_v50 = vor.u32 %v1804_v51, %v10565_v54  ;;  %v10611_v37 = vld [vmem:[%s8528_s23 + $0xb4] sm:$0xf] }
 0x1bf   : > { %v1795_v26 = vor.u32 %v1794_v3, %v1791_v10  ;;  %v1819_v49 = vor.u32 %v1818_v52, %v1815_v11  ;;  %v1837_v16 = vshrl.u32 %v10576_v61, 16  ;;  %v1840_v17 = vshll.u32 %v10576_v61, 16 }
 0x1c0   : > { %v11583_v57 = vcombine.low %v10044_v6, %v10051_v13  ;;  %v10597_v32 = vcombine.low %v1729_v2, %v1739_v21  ;;  %v1753_v38 = vsel %vm8591_vm7, %v1748_v31, %v10540_v12  ;;  %v1846_v51 = vshll.u32 %v10366_v55, 16  ;;  %v11584_v6 = vld [vmem:[#allocation22_spill] sm:$0xff] }
 0x1c1   : > { %7919 = vmatmul.mubr.msk.bf16.gmra.mrb[36].mxu1 %vm2160_vm3, %v10512_v63  ;;  %v1850_v10 = vshrl.u32 %v10366_v55, 16  ;;  %v10604_v3 = vrot.slane %v1771_v27, 4  ;;  %v10606_v11 = vrot.slane %v1784_v28, 5  ;;  %v1829_v52 = vor.u32 %v1828_v1, %v10581_v41 }
 0x1c2   : > { %7922 = vmatprep.mubr.msk.bf16.mxu1 %vm2160_vm3, %v10514_v30  ;;  %v1832_v13 = vshll.u32 %v11584_v6, 16  ;;  %v1763_v12 = vsel %vm8591_vm7, %v1758_v44, %v1762_v34  ;;  %v10621_v2 = vrot.slane %v1781_v7, 4  ;;  %v10623_v21 = vrot.slane %v1795_v26, 4  ;;  %v10638_v7 = vld [vmem:[%s10617_s26] ss:$0 sm:$0xff] }
 0x1c3   : > { %v10625_v31 = vrot.slane %v1808_v60, 5  ;;  %v10627_v27 = vrot.slane %v1805_v50, 4  ;;  %v10629_v28 = vrot.slane %v1819_v49, 4  ;;  %v1839_v1 = vrot.slane %v1837_v16, 4 }
 0x1c4   : > { %7779 = vmatmul.mubr.msk.bf16.vlgmr.msra.gmra.mrb[32].mxu0 %vm2160_vm3, %v11581_v20  ;;  %v1842_v0 = vrot.slane %v1840_v17, 5  ;;  %v10633_v25 = vrot.slane %v1846_v51, 5  ;;  %v1852_v20 = vrot.slane %v1850_v10, 4  ;;  %v1861_v34 = vshrl.u32 %v10611_v37, 16 }
 0x1c5   : > { %7811 = vmatpush3.bf16.msra.mxu0 %v11582_v18  ;;  %7782 = vmatprep.mubr.msk.bf16.mxu0 %vm2160_vm3, %v11583_v57  ;;  %v1864_v44 = vshll.u32 %v10611_v37, 16  ;;  %v6955_v26 = vcombine.low %v10434_v9, %v10211_v22  ;;  %v1830_v60 = vrot.slane %v1829_v52, 4  ;;  %v1834_v50 = vrot.slane %v1832_v13, 5 }
 0x1c6   : > { %v1856_v49 = vshll.u32 %v10374_v43, 16  ;;  %v10646_v16 = vcombine.low %v1753_v38, %v1763_v12  ;;  %v1777_v17 = vsel %vm8591_vm7, %v10604_v3, %v10563_v36  ;;  %v1787_v18 = vsel %vm8591_vm7, %v10621_v2, %v10606_v11 }
 0x1c7   : > { %v1801_v57 = vsel %vm8591_vm7, %v10623_v21, %v10565_v54  ;;  %v11585_v43 = vcombine.low %v10055_v33, %v10062_v59  ;;  %v1811_v36 = vsel %vm8591_vm7, %v10627_v27, %v10625_v31  ;;  %v1825_v51 = vsel %vm8591_vm7, %v10629_v28, %v10581_v41  ;;  %v10674_v54 = vld [vmem:[%s8528_s23 + $0xc0] sm:$0xf] }
 0x1c8   : > { %v1843_v10 = vor.u32 %v1842_v0, %v1839_v1  ;;  %v1870_v3 = vshll.u32 %v10377_v5, 16  ;;  %v11586_v59 = vcombine.low %v10116_v4, %v10128_v42  ;;  %v1853_v52 = vor.u32 %v1852_v20, %v10633_v25 }
 0x1c9   : > { %7923 = vmatmul.mubr.msk.bf16.gmra.mrb[40].mxu1 %vm2160_vm3, %v10520_v14  ;;  %v1863_v6 = vrot.slane %v1861_v34, 4  ;;  %v1866_v13 = vrot.slane %v1864_v44, 5  ;;  %v1835_v2 = vsel %vm8591_vm7, %v1830_v60, %v1834_v50  ;;  %v10690_v4 = vrot.slane %v1856_v49, 5 }
 0x1ca   : > { %7926 = vmatprep.mubr.msk.bf16.mxu1 %vm2160_vm3, %v10522_v46  ;;  %v1874_v42 = vshrl.u32 %v10377_v5, 16  ;;  %v1885_v28 = vshrl.u32 %v10674_v54, 16  ;;  %v1888_v1 = vshll.u32 %v10674_v54, 16  ;;  %v10697_v34 = vrot.slane %v1843_v10, 4 }
 0x1cb   : > { %v10699_v44 = vrot.slane %v1870_v3, 5  ;;  %v10705_v50 = vrot.slane %v1853_v52, 4  ;;  %v1867_v49 = vor.u32 %v1866_v13, %v1863_v6  ;;  %v1894_v3 = vshll.u32 %v10439_v48, 16 }
 0x1cc   : > { %7783 = vmatmul.mubr.msk.bf16.gmra.mrb[36].mxu0 %vm2160_vm3, %v11585_v43  ;;  %v7678_v38 = vpop.f32.mrb[0].mxu1  ;;  %v11587_v43 = vld [vmem:[#allocation24_spill] sm:$0xff]  ;;  %v1876_v10 = vrot.slane %v1874_v42, 4  ;;  %v6956_v52 = vcombine.low %v10508_v35, %v11573_v40  ;;  %v1887_v6 = vrot.slane %v1885_v28, 4  ;;  %v1890_v13 = vrot.slane %v1888_v1, 5 }
 0x1cd   : > { %v4279_v33 = vadd.f32 %v7678_v38, %v10638_v7  ;;  %7786 = vmatprep.mubr.msk.bf16.mxu0 %vm2160_vm3, %v11586_v59  ;;  %v4118_v11 = vpop.f32.mrb[1].mxu1  ;;  %v1880_v38 = vshll.u32 %v11587_v43, 16  ;;  %v1898_v59 = vshrl.u32 %v10439_v48, 16  ;;  %v10726_v42 = vcombine.low %v1801_v57, %v1811_v36 }
 0x1ce   : > { %v4277_v41 = vadd.f32 %v10638_v7, %v4118_v11  ;;  %v7679_v12 = vpop.f32.mrb[2].mxu1  ;;  %v10716_v11 = vcombine.low %v1777_v17, %v1787_v18  ;;  %v6957_v17 = vcombine.low %v10529_v29, %v10293_v56  ;;  %v1849_v18 = vsel %vm8591_vm7, %v10697_v34, %v10633_v25 }
 0x1cf   : > { %v4311_v21 = vmax.f32 %v4279_v33, 0.0  ;;  %v4280_v31 = vadd.f32 %v7679_v12, %v10638_v7  ;;  %v4121_v27 = vpop.f32.mrb[3].mxu1  ;;  %v1859_v57 = vsel %vm8591_vm7, %v10705_v50, %v10690_v4  ;;  %v10745_v36 = vrot.slane %v1867_v49, 4 }
 0x1d0   : > { %v4309_v0 = vmax.f32 %v4277_v41, 0.0  ;;  %v4278_v20 = vadd.f32 %v10638_v7, %v4121_v27  ;;  %v11588_v41 = vcombine.low %v10173_v53, %v10068_v47  ;;  %v11589_v47 = vcombine.low %v10261_v62, %v10131_v23 }
 0x1d1   : > { %6882 = vst.msk [vmem:[%s10685_s30 + $0x110] sm:$0xff] %vm3324_vm8, %v4311_v21  ;;  %v4312_v60 = vmax.f32 %v4280_v31, 0.0  ;;  %7927 = vmatmul.mubr.msk.bf16.gmra.mrb[44].mxu1 %vm2160_vm3, %v10597_v32  ;;  %v10728_v21 = vcombine.low %v1825_v51, %v1835_v2  ;;  %v10747_v51 = vrot.slane %v1880_v38, 5  ;;  %v10750_v2 = vld [vmem:[%s8528_s23 + $0xcc] sm:$0xf]  ;;  %v1877_v28 = vor.u32 %v1876_v10, %v10699_v44 }
 0x1d2   : > { %6880 = vst.msk [vmem:[%s10685_s30 + $0x100] sm:$0xff] %vm3324_vm8, %v4309_v0  ;;  %v4310_v33 = vmax.f32 %v4278_v20, 0.0  ;;  %7930 = vmatprep.mubr.msk.bf16.mxu1 %vm2160_vm3, %v10646_v16  ;;  %v10754_v23 = vrot.slane %v1894_v3, 5  ;;  %v1900_v62 = vrot.slane %v1898_v59, 4  ;;  %v1891_v34 = vor.u32 %v1890_v13, %v1887_v6 }
 0x1d3   : > { %6883 = vst.msk [vmem:[%s10685_s30 + $0x118] sm:$0xff] %vm3324_vm8, %v4312_v60  ;;  %v1904_v60 = vshll.u32 %v10452_v24, 16  ;;  %v1912_v24 = vshll.u32 %v10750_v2, 16  ;;  %v1918_v6 = vshll.u32 %v10455_v8, 16 }
 0x1d4   : > { %7787 = vmatmul.mubr.msk.bf16.gmra.mrb[40].mxu0 %vm2160_vm3, %v11588_v41  ;;  %6881 = vst.msk [vmem:[%s10685_s30 + $0x108] sm:$0xff] %vm3324_vm8, %v4310_v33  ;;  %v7682_v12 = vpop.f32.mrb[4].mxu1  ;;  %v1909_v33 = vshrl.u32 %v10750_v2, 16 }
 0x1d5   : > { %v4283_v31 = vadd.f32 %v7682_v12, %v10638_v7  ;;  %7790 = vmatprep.mubr.msk.bf16.mxu0 %vm2160_vm3, %v11589_v47  ;;  %v4134_v53 = vpop.f32.mrb[5].mxu1  ;;  %v1922_v47 = vshrl.u32 %v10455_v8, 16 }
 0x1d6   : > { %v4281_v25 = vadd.f32 %v10638_v7, %v4134_v53  ;;  %v7683_v27 = vpop.f32.mrb[6].mxu1 }
 0x1d7   : > { %v7542_v1 = vpop.f32.mrb[0].mxu0  ;;  %v4315_v0 = vmax.f32 %v4283_v31, 0.0  ;;  %v4284_v20 = vadd.f32 %v7683_v27, %v10638_v7  ;;  %v4137_v4 = vpop.f32.mrb[7].mxu1  ;;  %v10777_v27 = vrot.slane %v1877_v28, 4  ;;  %v1873_v28 = vsel %vm8591_vm7, %v10745_v36, %v10699_v44 }
 0x1d8   : > { %v3262_v50 = vadd.f32 %v7542_v1, %v10638_v7  ;;  %v3095_v49 = vpop.f32.mrb[1].mxu0  ;;  %v4313_v43 = vmax.f32 %v4281_v25, 0.0  ;;  %v4282_v38 = vadd.f32 %v10638_v7, %v4137_v4  ;;  %v1901_v1 = vor.u32 %v1900_v62, %v10754_v23 }
 0x1d9   : > { %v3260_v10 = vadd.f32 %v10638_v7, %v3095_v49  ;;  %v7543_v3 = vpop.f32.mrb[2].mxu0  ;;  %6886 = vst.msk [vmem:[%s10685_s30 + $0x130] sm:$0xff] %vm3324_vm8, %v4315_v0  ;;  %v4316_v59 = vmax.f32 %v4284_v20, 0.0  ;;  %7931 = vmatmul.mubr.msk.bf16.gmra.mrb[48].mxu1 %vm2160_vm3, %v10716_v11  ;;  %v11590_v20 = vcombine.low %v10355_v15, %v10141_v58  ;;  %v10794_v62 = vrot.slane %v1891_v34, 4 }
 0x1da   : > { %v3294_v13 = vmax.f32 %v3262_v50, 0.0  ;;  %v3263_v41 = vadd.f32 %v7543_v3, %v10638_v7  ;;  %v3098_v12 = vpop.f32.mrb[3].mxu0  ;;  %6884 = vst.msk [vmem:[%s10685_s30 + $0x120] sm:$0xff] %vm3324_vm8, %v4313_v43  ;;  %v4314_v31 = vmax.f32 %v4282_v38, 0.0  ;;  %7934 = vmatprep.mubr.msk.bf16.mxu1 %vm2160_vm3, %v10726_v42  ;;  %v10788_v50 = vcombine.low %v1849_v18, %v1859_v57 }
 0x1db   : > { %v3292_v53 = vmax.f32 %v3260_v10, 0.0  ;;  %v3261_v25 = vadd.f32 %v10638_v7, %v3098_v12  ;;  %6887 = vst.msk [vmem:[%s10685_s30 + $0x138] sm:$0xff] %vm3324_vm8, %v4316_v59  ;;  %v1911_v18 = vrot.slane %v1909_v33, 4  ;;  %v1914_v57 = vrot.slane %v1912_v24, 5 }
 0x1dc   : > { %3327 = vst.msk [vmem:[%s10685_s30 + $0x10] sm:$0xff] %vm3324_vm8, %v3294_v13  ;;  %v3295_v0 = vmax.f32 %v3263_v41, 0.0  ;;  %7791 = vmatmul.mubr.msk.bf16.gmra.mrb[44].mxu0 %vm2160_vm3, %v11590_v20  ;;  %6885 = vst.msk [vmem:[%s10685_s30 + $0x128] sm:$0xff] %vm3324_vm8, %v4314_v31  ;;  %v7686_v4 = vpop.f32.mrb[8].mxu1  ;;  %v1906_v36 = vrot.slane %v1904_v60, 5  ;;  %v10806_v34 = vrot.slane %v1918_v6, 5  ;;  %v1897_v13 = vsel %vm8591_vm7, %v10794_v62, %v10754_v23 }
 0x1dd   : > { %3325 = vst.msk [vmem:[%s10685_s30] sm:$0xff] %vm3324_vm8, %v3292_v53  ;;  %v3293_v49 = vmax.f32 %v3261_v25, 0.0  ;;  %v4287_v58 = vadd.f32 %v7686_v4, %v10638_v7  ;;  %7794 = vmatprep.mubr.msk.bf16.mxu0 %vm2160_vm3, %v6955_v26  ;;  %v4150_v15 = vpop.f32.mrb[9].mxu1  ;;  %v1924_v38 = vrot.slane %v1922_v47, 4  ;;  %v1883_v26 = vsel %vm8591_vm7, %v10777_v27, %v10747_v51  ;;  %v8441_v62 = vld [vmem:[%s8528_s23 + $0x1c] sm:$0xf] }
 0x1de   : > { %3328 = vst.msk [vmem:[%s10685_s30 + $0x18] sm:$0xff] %vm3324_vm8, %v3295_v0  ;;  %v4285_v43 = vadd.f32 %v10638_v7, %v4150_v15  ;;  %v7687_v44 = vpop.f32.mrb[10].mxu1  ;;  %v1902_v33 = vrot.slane %v1901_v1, 4  ;;  %v1915_v31 = vor.u32 %v1914_v57, %v1911_v18  ;;  %v1928_v47 = vshll.u32 %v10468_v39, 16  ;;  %v6616_v0 = vld [vmem:[%s8528_s23 + $0x18] sm:$0xe] }
 0x1df   : > { %3326 = vst.msk [vmem:[%s10685_s30 + $0x8] sm:$0xff] %vm3324_vm8, %v3293_v49  ;;  %v7546_v10 = vpop.f32.mrb[4].mxu0  ;;  %v4319_v3 = vmax.f32 %v4287_v58, 0.0  ;;  %v4288_v22 = vadd.f32 %v7687_v44, %v10638_v7  ;;  %v4153_v9 = vpop.f32.mrb[11].mxu1  ;;  %v1925_v1 = vor.u32 %v1924_v38, %v10806_v34  ;;  %v1998_v49 = vrot.slane %v8441_v62, 5  ;;  %v11591_v18 = vld [vmem:[#allocation38_spill] sm:$0xff] }
 0x1e0   : > { %v3266_v60 = vadd.f32 %v7546_v10, %v10638_v7  ;;  %v3111_v59 = vpop.f32.mrb[5].mxu0  ;;  %v4317_v24 = vmax.f32 %v4285_v43, 0.0  ;;  %v4286_v6 = vadd.f32 %v10638_v7, %v4153_v9  ;;  %v1907_v39 = vsel %vm8591_vm7, %v1902_v33, %v1906_v36  ;;  %v8442_v9 = vld [vmem:[%s8528_s23 + $0x20] sm:$0x1]  ;;  %v6618_v62 = vld [vmem:[%s8528_s23 + $0x30] sm:$0xe] }
 0x1e1   : > { %v3264_v41 = vadd.f32 %v10638_v7, %v3111_v59  ;;  %v7547_v12 = vpop.f32.mrb[6].mxu0  ;;  %6890 = vst.msk [vmem:[%s10685_s30 + $0x150] sm:$0xff] %vm3324_vm8, %v4319_v3  ;;  %v4320_v51 = vmax.f32 %v4288_v22, 0.0  ;;  %7935 = vmatmul.mubr.msk.bf16.gmra.mrb[52].mxu1 %vm2160_vm3, %v10728_v21  ;;  %v6958_v57 = vcombine.low %v11591_v18, %v10304_v19  ;;  %v10850_v43 = vcombine.low %v1873_v28, %v1883_v26 }
 0x1e2   : > { %v3298_v53 = vmax.f32 %v3266_v60, 0.0  ;;  %v3267_v25 = vadd.f32 %v7547_v12, %v10638_v7  ;;  %v3114_v23 = vpop.f32.mrb[7].mxu0  ;;  %6888 = vst.msk [vmem:[%s10685_s30 + $0x140] sm:$0xff] %vm3324_vm8, %v4317_v24  ;;  %v4318_v27 = vmax.f32 %v4286_v6, 0.0  ;;  %7938 = vmatprep.mubr.msk.bf16.mxu1 %vm2160_vm3, %v10788_v50  ;;  %v6959_v44 = vcombine.low %v10576_v61, %v10366_v55  ;;  %v8443_v6 = vld [vmem:[%s8528_s23 + $0x28] sm:$0xf] }
 0x1e3   : > { %v3296_v20 = vmax.f32 %v3264_v41, 0.0  ;;  %v3265_v4 = vadd.f32 %v10638_v7, %v3114_v23  ;;  %6891 = vst.msk [vmem:[%s10685_s30 + $0x158] sm:$0xff] %vm3324_vm8, %v4320_v51  ;;  %v1916_v40 = vrot.slane %v1915_v31, 4  ;;  %v6632_v19 = vrot.slane %v6616_v0, 9 }
 0x1e4   : > { %3331 = vst.msk [vmem:[%s10685_s30 + $0x30] sm:$0xff] %vm3324_vm8, %v3298_v53  ;;  %v3299_v58 = vmax.f32 %v3267_v25, 0.0  ;;  %7795 = vmatmul.mubr.msk.bf16.gmra.mrb[48].mxu0 %vm2160_vm3, %v6956_v52  ;;  %6889 = vst.msk [vmem:[%s10685_s30 + $0x148] sm:$0xff] %vm3324_vm8, %v4318_v27  ;;  %v7690_v15 = vpop.f32.mrb[12].mxu1  ;;  %v10864_v55 = vcombine.low %v1897_v13, %v1907_v39  ;;  %v1926_v61 = vrot.slane %v1925_v1, 4  ;;  %v1930_v10 = vrot.slane %v1928_v47, 5 }
 0x1e5   : > { %3329 = vst.msk [vmem:[%s10685_s30 + $0x20] sm:$0xff] %vm3324_vm8, %v3296_v20  ;;  %v3297_v36 = vmax.f32 %v3265_v4, 0.0  ;;  %v4291_v38 = vadd.f32 %v7690_v15, %v10638_v7  ;;  %7798 = vmatprep.mubr.msk.bf16.mxu0 %vm2160_vm3, %v6957_v17  ;;  %v4166_v35 = vpop.f32.mrb[13].mxu1  ;;  %v2000_v22 = vrot.slane %v1998_v49, 4  ;;  %v2001_v26 = vrot.slane %v8442_v9, 5 }
 0x1e6   : > { %3332 = vst.msk [vmem:[%s10685_s30 + $0x38] sm:$0xff] %vm3324_vm8, %v3299_v58  ;;  %v4289_v52 = vadd.f32 %v10638_v7, %v4166_v35  ;;  %v7691_v28 = vpop.f32.mrb[14].mxu1  ;;  %v2005_v13 = vrot.slane %v8443_v6, 5  ;;  %v1921_v31 = vsel %vm8591_vm7, %v1916_v40, %v10806_v34  ;;  %v10883_v53 = vsel %vm8544_vm6, %v6632_v19, %v1998_v49  ;;  %v6617_v25 = vld [vmem:[%s8528_s23 + $0x24] sm:$0xe] }
 0x1e7   : > { %3330 = vst.msk [vmem:[%s10685_s30 + $0x28] sm:$0xff] %vm3324_vm8, %v3297_v36  ;;  %v7550_v56 = vpop.f32.mrb[8].mxu0  ;;  %v4323_v29 = vmax.f32 %v4291_v38, 0.0  ;;  %v4292_v17 = vadd.f32 %v7691_v28, %v10638_v7  ;;  %v4169_v3 = vpop.f32.mrb[15].mxu1  ;;  %v1931_v34 = vsel %vm8591_vm7, %v1926_v61, %v1930_v10  ;;  %v2002_v39 = vsel %vm8544_vm6, %v2000_v22, %v2001_v26  ;;  %v8444_v49 = vld [vmem:[%s8528_s23 + $0x34] sm:$0xf] }
 0x1e8   : > { %v3270_v33 = vadd.f32 %v7550_v56, %v10638_v7  ;;  %v3127_v60 = vpop.f32.mrb[9].mxu0  ;;  %v4321_v59 = vmax.f32 %v4289_v52, 0.0  ;;  %v4290_v24 = vadd.f32 %v10638_v7, %v4169_v3  ;;  %v2012_v58 = vrot.slane %v8444_v49, 5  ;;  %v8445_v38 = vld [vmem:[%s8528_s23 + $0x2c] sm:$0x1] }
 0x1e9   : > { %v3268_v41 = vadd.f32 %v10638_v7, %v3127_v60  ;;  %v7551_v12 = vpop.f32.mrb[10].mxu0  ;;  %6894 = vst.msk [vmem:[%s10685_s30 + $0x170] sm:$0xff] %vm3324_vm8, %v4323_v29  ;;  %v4324_v51 = vmax.f32 %v4292_v17, 0.0  ;;  %7939 = vmatmul.mubr.msk.bf16.gmra.mrb[56].mxu1 %vm2160_vm3, %v10850_v43  ;;  %v6960_v18 = vcombine.low %v10611_v37, %v10377_v5  ;;  %v6633_v36 = vrot.slane %v6617_v25, 9  ;;  %v8446_v9 = vld [vmem:[%s8528_s23 + $0x38] sm:$0x1] }
 0x1ea   : > { %v3302_v23 = vmax.f32 %v3270_v33, 0.0  ;;  %v3271_v27 = vadd.f32 %v7551_v12, %v10638_v7  ;;  %v3130_v1 = vpop.f32.mrb[11].mxu0  ;;  %6892 = vst.msk [vmem:[%s10685_s30 + $0x160] sm:$0xff] %vm3324_vm8, %v4321_v59  ;;  %v4322_v0 = vmax.f32 %v4290_v24, 0.0  ;;  %7942 = vmatprep.mubr.msk.bf16.mxu1 %vm2160_vm3, %v10864_v55  ;;  %v2008_v35 = vrot.slane %v8445_v38, 5 }
 0x1eb   : > { %v3300_v20 = vmax.f32 %v3268_v41, 0.0  ;;  %v3269_v4 = vadd.f32 %v10638_v7, %v3130_v1  ;;  %6895 = vst.msk [vmem:[%s10685_s30 + $0x178] sm:$0xff] %vm3324_vm8, %v4324_v51  ;;  %v2007_v28 = vrot.slane %v2005_v13, 4  ;;  %v6961_v61 = vcombine.low %v10674_v54, %v10439_v48  ;;  %v8447_v51 = vld [vmem:[%s8528_s23 + $0x40] sm:$0xf] }
 0x1ec   : > { %3335 = vst.msk [vmem:[%s10685_s30 + $0x50] sm:$0xff] %vm3324_vm8, %v3302_v23  ;;  %v3303_v15 = vmax.f32 %v3271_v27, 0.0  ;;  %7799 = vmatmul.mubr.msk.bf16.gmra.mrb[52].mxu0 %vm2160_vm3, %v6958_v57  ;;  %6893 = vst.msk [vmem:[%s10685_s30 + $0x168] sm:$0xff] %vm3324_vm8, %v4322_v0  ;;  %v7694_v45 = vpop.f32.mrb[16].mxu1  ;;  %v10912_v57 = vcombine.low %v1921_v31, %v1931_v34  ;;  %v7096_v10 = vcombine.low %v10883_v53, %v2002_v39  ;;  %v6634_v56 = vrot.slane %v6618_v62, 9 }
 0x1ed   : > { %3333 = vst.msk [vmem:[%s10685_s30 + $0x40] sm:$0xff] %vm3324_vm8, %v3300_v20  ;;  %v3301_v40 = vmax.f32 %v3269_v4, 0.0  ;;  %v4295_v19 = vadd.f32 %v7694_v45, %v10638_v7  ;;  %7802 = vmatprep.mubr.msk.bf16.mxu0 %vm2160_vm3, %v6959_v44  ;;  %v4182_v52 = vpop.f32.mrb[17].mxu1  ;;  %v2014_v22 = vrot.slane %v2012_v58, 4  ;;  %v2015_v26 = vrot.slane %v8446_v9, 5 }
 0x1ee   : > { %3336 = vst.msk [vmem:[%s10685_s30 + $0x58] sm:$0xff] %vm3324_vm8, %v3303_v15  ;;  %v4293_v5 = vadd.f32 %v10638_v7, %v4182_v52  ;;  %v7695_v37 = vpop.f32.mrb[18].mxu1  ;;  %v2006_v59 = vsel %vm8544_vm6, %v6633_v36, %v2005_v13  ;;  %v2009_v12 = vsel %vm8544_vm6, %v2007_v28, %v2008_v35  ;;  %v2019_v31 = vrot.slane %v8447_v51, 5  ;;  %v6619_v1 = vld [vmem:[%s8528_s23 + $0x3c] sm:$0xe] }
 0x1ef   : > { %3334 = vst.msk [vmem:[%s10685_s30 + $0x48] sm:$0xff] %vm3324_vm8, %v3301_v40  ;;  %v7554_v44 = vpop.f32.mrb[12].mxu0  ;;  %v4327_v29 = vmax.f32 %v4295_v19, 0.0  ;;  %v4296_v17 = vadd.f32 %v7695_v37, %v10638_v7  ;;  %v4185_v3 = vpop.f32.mrb[19].mxu1  ;;  %v2013_v27 = vsel %vm8544_vm6, %v6634_v56, %v2012_v58  ;;  %v2016_v20 = vsel %vm8544_vm6, %v2014_v22, %v2015_v26  ;;  %v6620_v4 = vld [vmem:[%s8528_s23 + $0x48] sm:$0xe] }
 0x1f0   : > { %v3274_v33 = vadd.f32 %v7554_v44, %v10638_v7  ;;  %v3143_v60 = vpop.f32.mrb[13].mxu0  ;;  %v4325_v48 = vmax.f32 %v4293_v5, 0.0  ;;  %v4294_v54 = vadd.f32 %v10638_v7, %v4185_v3  ;;  %v8448_v39 = vld [vmem:[%s8528_s23 + $0x4c] sm:$0xf]  ;;  %v7097_v15 = vcombine.low %v2006_v59, %v2009_v12  ;;  %v8449_v28 = vld [vmem:[%s8528_s23 + $0x44] sm:$0x1] }
 0x1f1   : > { %v3272_v24 = vadd.f32 %v10638_v7, %v3143_v60  ;;  %v7555_v6 = vpop.f32.mrb[14].mxu0  ;;  %6898 = vst.msk [vmem:[%s10685_s30 + $0x190] sm:$0xff] %vm3324_vm8, %v4327_v29  ;;  %v4328_v41 = vmax.f32 %v4296_v17, 0.0  ;;  %7943 = vmatmul.mubr.msk.bf16.gmra.mrb[60].mxu1 %vm2160_vm3, %v10912_v57  ;;  %v2026_v62 = vrot.slane %v8448_v39, 5  ;;  %v6635_v35 = vrot.slane %v6619_v1, 9 }
 0x1f2   : > { %v3306_v13 = vmax.f32 %v3274_v33, 0.0  ;;  %v3275_v53 = vadd.f32 %v7555_v6, %v10638_v7  ;;  %v3146_v25 = vpop.f32.mrb[15].mxu0  ;;  %6896 = vst.msk [vmem:[%s10685_s30 + $0x180] sm:$0xff] %vm3324_vm8, %v4325_v48  ;;  %v4326_v23 = vmax.f32 %v4294_v54, 0.0  ;;  %7948 = vmatprep.mubr.msk.bf16.mxu1 %vm2160_vm3, %v7096_v10  ;;  %v2021_v40 = vrot.slane %v2019_v31, 4 }
 0x1f3   : > { %v3304_v0 = vmax.f32 %v3272_v24, 0.0  ;;  %v3273_v34 = vadd.f32 %v10638_v7, %v3146_v25  ;;  %6899 = vst.msk [vmem:[%s10685_s30 + $0x198] sm:$0xff] %vm3324_vm8, %v4328_v41  ;;  %v7098_v52 = vcombine.low %v2013_v27, %v2016_v20  ;;  %v2022_v5 = vrot.slane %v8449_v28, 5  ;;  %v8450_v17 = vld [vmem:[%s8528_s23 + $0x50] sm:$0x1] }
 0x1f4   : > { %3339 = vst.msk [vmem:[%s10685_s30 + $0x70] sm:$0xff] %vm3324_vm8, %v3306_v13  ;;  %v3307_v49 = vmax.f32 %v3275_v53, 0.0  ;;  %7803 = vmatmul.mubr.msk.bf16.gmra.mrb[56].mxu0 %vm2160_vm3, %v6960_v18  ;;  %6897 = vst.msk [vmem:[%s10685_s30 + $0x188] sm:$0xff] %vm3324_vm8, %v4326_v23  ;;  %v7698_v58 = vpop.f32.mrb[20].mxu1  ;;  %v6636_v37 = vrot.slane %v6620_v4, 9  ;;  %v2028_v29 = vrot.slane %v2026_v62, 4  ;;  %v6962_v33 = vcombine.low %v10750_v2, %v10455_v8 }
 0x1f5   : > { %3337 = vst.msk [vmem:[%s10685_s30 + $0x60] sm:$0xff] %vm3324_vm8, %v3304_v0  ;;  %v3305_v45 = vmax.f32 %v3273_v34, 0.0  ;;  %v4299_v36 = vadd.f32 %v7698_v58, %v10638_v7  ;;  %7806 = vmatprep.mubr.msk.bf16.mxu0 %vm2160_vm3, %v6961_v61  ;;  %v4198_v38 = vpop.f32.mrb[21].mxu1  ;;  %v2029_v3 = vrot.slane %v8450_v17, 5  ;;  %v2020_v24 = vsel %vm8544_vm6, %v6635_v35, %v2019_v31  ;;  %v11593_v0 = vld [vmem:[#allocation14_spill] sm:$0xff] }
 0x1f6   : > { %3340 = vst.msk [vmem:[%s10685_s30 + $0x78] sm:$0xff] %vm3324_vm8, %v3307_v49  ;;  %v4297_v18 = vadd.f32 %v10638_v7, %v4198_v38  ;;  %v7699_v19 = vpop.f32.mrb[22].mxu1  ;;  %v2023_v12 = vsel %vm8544_vm6, %v2021_v40, %v2022_v5  ;;  %v2027_v31 = vsel %vm8544_vm6, %v6636_v37, %v2026_v62 }
 0x1f7   : > { %3338 = vst.msk [vmem:[%s10685_s30 + $0x68] sm:$0xff] %vm3324_vm8, %v3305_v45  ;;  %v7558_v10 = vpop.f32.mrb[16].mxu0  ;;  %v4331_v56 = vmax.f32 %v4299_v36, 0.0  ;;  %v4300_v61 = vadd.f32 %v7699_v19, %v10638_v7  ;;  %v4201_v44 = vpop.f32.mrb[23].mxu1  ;;  %v2030_v53 = vsel %vm8544_vm6, %v2028_v29, %v2029_v3  ;;  %v7099_v47 = vcombine.low %v2020_v24, %v2023_v12 }
 0x1f8   : > { %v3278_v22 = vadd.f32 %v7558_v10, %v10638_v7  ;;  %v3159_v9 = vpop.f32.mrb[17].mxu0  ;;  %v4329_v26 = vmax.f32 %v4297_v18, 0.0  ;;  %v4298_v60 = vadd.f32 %v10638_v7, %v4201_v44  ;;  %v7100_v39 = vcombine.low %v2027_v31, %v2030_v53  ;;  %v11594_v44 = vld [vmem:[#allocation17_spill] sm:$0xff]  ;;  %v11597_v31 = vld [vmem:[#allocation27_spill] sm:$0xff] }
 0x1f9   : > { %v3276_v48 = vadd.f32 %v10638_v7, %v3159_v9  ;;  %v7559_v54 = vpop.f32.mrb[18].mxu0  ;;  %6902 = vst.msk [vmem:[%s10685_s30 + $0x1b0] sm:$0xff] %vm3324_vm8, %v4331_v56  ;;  %v4332_v59 = vmax.f32 %v4300_v61, 0.0  ;;  %7949 = vmatmul.mubr.msk.bf16.vlgmr.msra.gmra.mrb[32].mxu1 %vm2160_vm3, %v7097_v15 }
 0x1fa   : > { %v3310_v6 = vmax.f32 %v3278_v22, 0.0  ;;  %v3279_v41 = vadd.f32 %v7559_v54, %v10638_v7  ;;  %v3162_v8 = vpop.f32.mrb[19].mxu0  ;;  %6900 = vst.msk [vmem:[%s10685_s30 + $0x1a0] sm:$0xff] %vm3324_vm8, %v4329_v26  ;;  %v4330_v2 = vmax.f32 %v4298_v60, 0.0  ;;  %7952 = vmatprep.mubr.msk.bf16.mxu1 %vm2160_vm3, %v7098_v52  ;;  %v11595_v22 = vld [vmem:[#allocation23_spill] sm:$0xff] }
 0x1fb   : > { %v3308_v51 = vmax.f32 %v3276_v48, 0.0  ;;  %v3277_v13 = vadd.f32 %v10638_v7, %v3162_v8  ;;  %6903 = vst.msk [vmem:[%s10685_s30 + $0x1b8] sm:$0xff] %vm3324_vm8, %v4332_v59 }
 0x1fc   : > { %3343 = vst.msk [vmem:[%s10685_s30 + $0x90] sm:$0xff] %vm3324_vm8, %v3310_v6  ;;  %v3311_v25 = vmax.f32 %v3279_v41, 0.0  ;;  %7807 = vmatmul.mubr.msk.bf16.gmra.mrb[60].mxu0 %vm2160_vm3, %v6962_v33  ;;  %6901 = vst.msk [vmem:[%s10685_s30 + $0x1a8] sm:$0xff] %vm3324_vm8, %v4330_v2  ;;  %v7702_v23 = vpop.f32.mrb[24].mxu1 }
 0x1fd   : > { %3341 = vst.msk [vmem:[%s10685_s30 + $0x80] sm:$0xff] %vm3324_vm8, %v3308_v51  ;;  %v3309_v27 = vmax.f32 %v3277_v13, 0.0  ;;  %v4303_v1 = vadd.f32 %v7702_v23, %v10638_v7  ;;  %7812 = vmatprep.mubr.msk.bf16.mxu0 %vm2160_vm3, %v11593_v0  ;;  %v4214_v34 = vpop.f32.mrb[25].mxu1  ;;  %v11596_v13 = vld [vmem:[#allocation9_spill] sm:$0xff]  ;;  %v11599_v0 = vld [vmem:[#allocation28_spill] sm:$0xff] }
 0x1fe   : > { %3344 = vst.msk [vmem:[%s10685_s30 + $0x98] sm:$0xff] %vm3324_vm8, %v3311_v25  ;;  %v4301_v20 = vadd.f32 %v10638_v7, %v4214_v34  ;;  %v7703_v4 = vpop.f32.mrb[26].mxu1  ;;  %v11598_v53 = vcombine.low %v11596_v13, %v11597_v31  ;;  %v11600_v34 = vld [vmem:[#allocation29_spill] sm:$0xff] }
 0x1ff   : > { %3342 = vst.msk [vmem:[%s10685_s30 + $0x88] sm:$0xff] %vm3324_vm8, %v3309_v27  ;;  %v7562_v62 = vpop.f32.mrb[20].mxu0  ;;  %v4335_v49 = vmax.f32 %v4303_v1, 0.0  ;;  %v4304_v58 = vadd.f32 %v7703_v4, %v10638_v7  ;;  %v4217_v15 = vpop.f32.mrb[27].mxu1 }
 0x200   : > { %v3282_v45 = vadd.f32 %v7562_v62, %v10638_v7  ;;  %v3175_v36 = vpop.f32.mrb[21].mxu0  ;;  %v4333_v38 = vmax.f32 %v4301_v20, 0.0  ;;  %v4302_v35 = vadd.f32 %v10638_v7, %v4217_v15 }
 0x201   : > { %v3280_v40 = vadd.f32 %v10638_v7, %v3175_v36  ;;  %v7563_v18 = vpop.f32.mrb[22].mxu0  ;;  %6906 = vst.msk [vmem:[%s10685_s30 + $0x1d0] sm:$0xff] %vm3324_vm8, %v4335_v49  ;;  %v4336_v19 = vmax.f32 %v4304_v58, 0.0  ;;  %7953 = vmatmul.mubr.msk.bf16.gmra.mrb[36].mxu1 %vm2160_vm3, %v7099_v47  ;;  %v11601_v47 = vcombine.low %v11599_v0, %v11600_v34  ;;  %v11602_v36 = vld [vmem:[#allocation15_spill] sm:$0xff] }
 0x202   : > { %v3314_v52 = vmax.f32 %v3282_v45, 0.0  ;;  %v3283_v28 = vadd.f32 %v7563_v18, %v10638_v7  ;;  %v3178_v5 = vpop.f32.mrb[23].mxu0  ;;  %6904 = vst.msk [vmem:[%s10685_s30 + $0x1c0] sm:$0xff] %vm3324_vm8, %v4333_v38  ;;  %v4334_v37 = vmax.f32 %v4302_v35, 0.0  ;;  %7956 = vmatprep.mubr.msk.bf16.mxu1 %vm2160_vm3, %v7100_v39  ;;  %v11603_v38 = vld [vmem:[#allocation18_spill] sm:$0xff] }
 0x203   : > { %v3312_v10 = vmax.f32 %v3280_v40, 0.0  ;;  %v3281_v56 = vadd.f32 %v10638_v7, %v3178_v5  ;;  %6907 = vst.msk [vmem:[%s10685_s30 + $0x1d8] sm:$0xff] %vm3324_vm8, %v4336_v19  ;;  %v11604_v35 = vcombine.low %v11602_v36, %v11603_v38  ;;  %v11605_v19 = vld [vmem:[#allocation5_spill] sm:$0xff] }
 0x204   : > { %3347 = vst.msk [vmem:[%s10685_s30 + $0xb0] sm:$0xff] %vm3324_vm8, %v3314_v52  ;;  %v3315_v61 = vmax.f32 %v3283_v28, 0.0  ;;  %7813 = vmatmul.mubr.msk.bf16.vlgmr.msra.gmra.mrb[32].mxu0 %vm2160_vm3, %v11594_v44  ;;  %6905 = vst.msk [vmem:[%s10685_s30 + $0x1c8] sm:$0xff] %vm3324_vm8, %v4334_v37  ;;  %v7706_v29 = vpop.f32.mrb[28].mxu1  ;;  %v11606_v52 = vld [vmem:[#allocation4_spill] sm:$0xff]  ;;  %v11609_v44 = vld [vmem:[#allocation21_spill] sm:$0xff] }
 0x205   : > { %3345 = vst.msk [vmem:[%s10685_s30 + $0xa0] sm:$0xff] %vm3324_vm8, %v3312_v10  ;;  %v3313_v17 = vmax.f32 %v3281_v56, 0.0  ;;  %v4307_v3 = vadd.f32 %v7706_v29, %v10638_v7  ;;  %7816 = vmatprep.mubr.msk.bf16.mxu0 %vm2160_vm3, %v11595_v22  ;;  %v4230_v9 = vpop.f32.mrb[29].mxu1  ;;  %v11607_v28 = vcombine.low %v11605_v19, %v11606_v52 }
 0x206   : > { %3348 = vst.msk [vmem:[%s10685_s30 + $0xb8] sm:$0xff] %vm3324_vm8, %v3315_v61  ;;  %v4305_v26 = vadd.f32 %v10638_v7, %v4230_v9  ;;  %v7707_v33 = vpop.f32.mrb[30].mxu1  ;;  %v11608_v61 = vld [vmem:[#allocation11_spill] sm:$0xff] }
 0x207   : > { %3346 = vst.msk [vmem:[%s10685_s30 + $0xa8] sm:$0xff] %vm3324_vm8, %v3313_v17  ;;  %v7566_v60 = vpop.f32.mrb[24].mxu0  ;;  %v4339_v48 = vmax.f32 %v4307_v3, 0.0  ;;  %v4308_v54 = vadd.f32 %v7707_v33, %v10638_v7  ;;  %v4233_v59 = vpop.f32.mrb[31].mxu1  ;;  %v11610_v29 = vcombine.low %v11608_v61, %v11609_v44  ;;  %v11611_v17 = vld [vmem:[#allocation8_spill] sm:$0xff]  ;;  %v11612_v3 = vld [vmem:[#allocation25_spill] sm:$0xff] }
 0x208   : > { %v3286_v24 = vadd.f32 %v7566_v60, %v10638_v7  ;;  %v3191_v6 = vpop.f32.mrb[25].mxu0  ;;  %v4337_v41 = vmax.f32 %v4305_v26, 0.0  ;;  %v4306_v8 = vadd.f32 %v10638_v7, %v4233_v59  ;;  %v11613_v22 = vcombine.low %v11611_v17, %v11612_v3  ;;  %v11617_v26 = vld [vmem:[#allocation10_spill] sm:$0xff]  ;;  %v11624_v59 = vld [vmem:[#allocation35_spill] sm:$0xff] }
 0x209   : > { %v3284_v2 = vadd.f32 %v10638_v7, %v3191_v6  ;;  %v7567_v12 = vpop.f32.mrb[26].mxu0  ;;  %6910 = vst.msk [vmem:[%s10685_s30 + $0x1f0] sm:$0xff] %vm3324_vm8, %v4339_v48  ;;  %v4340_v51 = vmax.f32 %v4308_v54, 0.0  ;;  %7957 = vmatmul.mubr.msk.bf16.gmra.mrb[40].mxu1 %vm2160_vm3, %v11598_v53  ;;  %v11618_v33 = vld [vmem:[#allocation26_spill] sm:$0xff]  ;;  %v11621_v48 = vld [vmem:[#allocation33_spill] sm:$0xff] }
 0x20a   : > { %v3318_v25 = vmax.f32 %v3286_v24, 0.0  ;;  %v3287_v23 = vadd.f32 %v7567_v12, %v10638_v7  ;;  %v3194_v27 = vpop.f32.mrb[27].mxu0  ;;  %6908 = vst.msk [vmem:[%s10685_s30 + $0x1e0] sm:$0xff] %vm3324_vm8, %v4337_v41  ;;  %v4338_v1 = vmax.f32 %v4306_v8, 0.0  ;;  %7960 = vmatprep.mubr.msk.bf16.mxu1 %vm2160_vm3, %v11601_v47  ;;  %v11619_v60 = vcombine.low %v11617_v26, %v11618_v33  ;;  %v11627_v6 = vld [vmem:[#allocation37_spill] sm:$0xff] }
 0x20b   : > { %v3316_v20 = vmax.f32 %v3284_v2, 0.0  ;;  %v3285_v4 = vadd.f32 %v10638_v7, %v3194_v27  ;;  %6911 = vst.msk [vmem:[%s10685_s30 + $0x1f8] sm:$0xff] %vm3324_vm8, %v4340_v51 }
 0x20c   : > { %3351 = vst.msk [vmem:[%s10685_s30 + $0xd0] sm:$0xff] %vm3324_vm8, %v3318_v25  ;;  %v3319_v39 = vmax.f32 %v3287_v23, 0.0  ;;  %7817 = vmatmul.mubr.msk.bf16.gmra.mrb[36].mxu0 %vm2160_vm3, %v10512_v63  ;;  %6909 = vst.msk [vmem:[%s10685_s30 + $0x1e8] sm:$0xff] %vm3324_vm8, %v4338_v1 }
 0x20d   : > { %3349 = vst.msk [vmem:[%s10685_s30 + $0xc0] sm:$0xff] %vm3324_vm8, %v3316_v20  ;;  %v3317_v62 = vmax.f32 %v3285_v4, 0.0  ;;  %7820 = vmatprep.mubr.msk.bf16.mxu0 %vm2160_vm3, %v10514_v30 }
 0x20e   : > { %3352 = vst.msk [vmem:[%s10685_s30 + $0xd8] sm:$0xff] %vm3324_vm8, %v3319_v39 }
 0x20f   : > { %3350 = vst.msk [vmem:[%s10685_s30 + $0xc8] sm:$0xff] %vm3324_vm8, %v3317_v62  ;;  %v7570_v49 = vpop.f32.mrb[28].mxu0 }
 0x210   : > { %v3290_v58 = vadd.f32 %v7570_v49, %v10638_v7  ;;  %v3207_v15 = vpop.f32.mrb[29].mxu0 }
 0x211   : > { %v3288_v63 = vadd.f32 %v10638_v7, %v3207_v15  ;;  %v7571_v45 = vpop.f32.mrb[30].mxu0  ;;  %7961 = vmatmul.mubr.msk.bf16.gmra.mrb[44].mxu1 %vm2160_vm3, %v11604_v35 }
 0x212   : > { %v3322_v30 = vmax.f32 %v3290_v58, 0.0  ;;  %v3291_v40 = vadd.f32 %v7571_v45, %v10638_v7  ;;  %v3210_v18 = vpop.f32.mrb[31].mxu0  ;;  %7964 = vmatprep.mubr.msk.bf16.mxu1 %vm2160_vm3, %v11607_v28 }
 0x213   : > { %v3320_v5 = vmax.f32 %v3288_v63, 0.0  ;;  %v3289_v37 = vadd.f32 %v10638_v7, %v3210_v18 }
 0x214   : > { %3355 = vst.msk [vmem:[%s10685_s30 + $0xf0] sm:$0xff] %vm3324_vm8, %v3322_v30  ;;  %v3323_v10 = vmax.f32 %v3291_v40, 0.0  ;;  %7821 = vmatmul.mubr.msk.bf16.gmra.mrb[40].mxu0 %vm2160_vm3, %v10520_v14  ;;  %v11614_v14 = vld [vmem:[#allocation6_spill] sm:$0xff] }
 0x215   : > { %3353 = vst.msk [vmem:[%s10685_s30 + $0xe0] sm:$0xff] %vm3324_vm8, %v3320_v5  ;;  %v3321_v56 = vmax.f32 %v3289_v37, 0.0  ;;  %7824 = vmatprep.mubr.msk.bf16.mxu0 %vm2160_vm3, %v10522_v46  ;;  %v11615_v46 = vld [vmem:[#allocation7_spill] sm:$0xff] }
 0x216   : > { %3356 = vst.msk [vmem:[%s10685_s30 + $0xf8] sm:$0xff] %vm3324_vm8, %v3323_v10  ;;  %v11616_v9 = vcombine.low %v11614_v14, %v11615_v46 }
 0x217   : > { %3354 = vst.msk [vmem:[%s10685_s30 + $0xe8] sm:$0xff] %vm3324_vm8, %v3321_v56 }
 0x219   : > { %7965 = vmatmul.mubr.msk.bf16.gmra.mrb[48].mxu1 %vm2160_vm3, %v11610_v29 }
 0x21a   : > { %7968 = vmatprep.mubr.msk.bf16.mxu1 %vm2160_vm3, %v11613_v22 }
 0x21c   : > { %7825 = vmatmul.mubr.msk.bf16.gmra.mrb[44].mxu0 %vm2160_vm3, %v10597_v32  ;;  %v11620_v32 = vld [vmem:[#allocation30_spill] sm:$0xff] }
 0x21d   : > { %7828 = vmatprep.mubr.msk.bf16.mxu0 %vm2160_vm3, %v10646_v16  ;;  %v11622_v54 = vcombine.low %v11620_v32, %v11621_v48  ;;  %v11623_v16 = vld [vmem:[#allocation34_spill] sm:$0xff] }
 0x21e   : > { %v11625_v24 = vcombine.low %v11623_v16, %v11624_v59 }
 0x221   : > { %7969 = vmatmul.mubr.msk.bf16.gmra.mrb[52].mxu1 %vm2160_vm3, %v11616_v9 }
 0x222   : > { %7972 = vmatprep.mubr.msk.bf16.mxu1 %vm2160_vm3, %v11619_v60 }
 0x224   : > { %7829 = vmatmul.mubr.msk.bf16.gmra.mrb[48].mxu0 %vm2160_vm3, %v10716_v11  ;;  %v11626_v11 = vld [vmem:[#allocation36_spill] sm:$0xff] }
 0x225   : > { %7832 = vmatprep.mubr.msk.bf16.mxu0 %vm2160_vm3, %v10726_v42  ;;  %v11628_v42 = vcombine.low %v11626_v11, %v11627_v6  ;;  %v11196_v6 = vld [vmem:[%s10617_s26] ss:$0 sm:$0xff] }
 0x229   : > { %7973 = vmatmul.mubr.msk.bf16.gmra.mrb[56].mxu1 %vm2160_vm3, %v11622_v54 }
 0x22a   : > { %7976 = vmatprep.mubr.msk.bf16.mxu1 %vm2160_vm3, %v11625_v24 }
 0x22c   : > { %7833 = vmatmul.mubr.msk.bf16.gmra.mrb[52].mxu0 %vm2160_vm3, %v10728_v21 }
 0x22d   : > { %7836 = vmatprep.mubr.msk.bf16.mxu0 %vm2160_vm3, %v10788_v50 }
 0x231   : > { %7977 = vmatmul.mubr.msk.bf16.gmra.mrb[60].mxu1 %vm2160_vm3, %v11628_v42 }
 0x234   : > { %7837 = vmatmul.mubr.msk.bf16.gmra.mrb[56].mxu0 %vm2160_vm3, %v10850_v43 }
 0x235   : > { %7840 = vmatprep.mubr.msk.bf16.mxu0 %vm2160_vm3, %v10864_v55 }
 0x23c   : > { %7841 = vmatmul.mubr.msk.bf16.gmra.mrb[60].mxu0 %vm2160_vm3, %v10912_v57 }
 0x2cc   : > { %v7950_v21 = vpop.f32.mrb[32].mxu1 }
 0x2cd   : > { %v6233_v50 = vadd.f32 %v7950_v21, %v10638_v7  ;;  %v6072_v41 = vpop.f32.mrb[33].mxu1 }
 0x2ce   : > { %v6231_v8 = vadd.f32 %v10638_v7, %v6072_v41  ;;  %v7951_v2 = vpop.f32.mrb[34].mxu1 }
 0x2cf   : > { %v6265_v12 = vmax.f32 %v6233_v50, 0.0  ;;  %v6234_v51 = vadd.f32 %v7951_v2, %v10638_v7  ;;  %v6075_v13 = vpop.f32.mrb[35].mxu1 }
 0x2d0   : > { %v6263_v43 = vmax.f32 %v6231_v8, 0.0  ;;  %v6232_v31 = vadd.f32 %v10638_v7, %v6075_v13 }
 0x2d1   : > { %7130 = vst.msk [vmem:[%s10685_s30 + $0x310] sm:$0xff] %vm3324_vm8, %v6265_v12  ;;  %v6266_v55 = vmax.f32 %v6234_v51, 0.0 }
 0x2d2   : > { %7128 = vst.msk [vmem:[%s10685_s30 + $0x300] sm:$0xff] %vm3324_vm8, %v6263_v43  ;;  %v6264_v57 = vmax.f32 %v6232_v31, 0.0 }
 0x2d3   : > { %7131 = vst.msk [vmem:[%s10685_s30 + $0x318] sm:$0xff] %vm3324_vm8, %v6266_v55 }
 0x2d4   : > { %7129 = vst.msk [vmem:[%s10685_s30 + $0x308] sm:$0xff] %vm3324_vm8, %v6264_v57  ;;  %v7954_v53 = vpop.f32.mrb[36].mxu1 }
 0x2d5   : > { %v6237_v25 = vadd.f32 %v7954_v53, %v10638_v7  ;;  %v6088_v23 = vpop.f32.mrb[37].mxu1 }
 0x2d6   : > { %v6235_v27 = vadd.f32 %v10638_v7, %v6088_v23  ;;  %v7955_v1 = vpop.f32.mrb[38].mxu1 }
 0x2d7   : > { %v7814_v0 = vpop.f32.mrb[32].mxu0  ;;  %v6269_v34 = vmax.f32 %v6237_v25, 0.0  ;;  %v6238_v47 = vadd.f32 %v7955_v1, %v10638_v7  ;;  %v6091_v20 = vpop.f32.mrb[39].mxu1 }
 0x2d8   : > { %v5312_v4 = vadd.f32 %v7814_v0, %v10638_v7  ;;  %v5151_v39 = vpop.f32.mrb[33].mxu0  ;;  %v6267_v62 = vmax.f32 %v6235_v27, 0.0  ;;  %v6236_v49 = vadd.f32 %v10638_v7, %v6091_v20 }
 0x2d9   : > { %v5310_v58 = vadd.f32 %v10638_v7, %v5151_v39  ;;  %v7815_v15 = vpop.f32.mrb[34].mxu0  ;;  %7134 = vst.msk [vmem:[%s10685_s30 + $0x330] sm:$0xff] %vm3324_vm8, %v6269_v34  ;;  %v6270_v63 = vmax.f32 %v6238_v47, 0.0 }
 0x2da   : > { %v5344_v45 = vmax.f32 %v5312_v4, 0.0  ;;  %v5313_v36 = vadd.f32 %v7815_v15, %v10638_v7  ;;  %v5154_v38 = vpop.f32.mrb[35].mxu0  ;;  %7132 = vst.msk [vmem:[%s10685_s30 + $0x320] sm:$0xff] %vm3324_vm8, %v6267_v62  ;;  %v6268_v35 = vmax.f32 %v6236_v49, 0.0 }
 0x2db   : > { %v5342_v30 = vmax.f32 %v5310_v58, 0.0  ;;  %v5311_v40 = vadd.f32 %v10638_v7, %v5154_v38  ;;  %7135 = vst.msk [vmem:[%s10685_s30 + $0x338] sm:$0xff] %vm3324_vm8, %v6270_v63 }
 0x2dc   : > { %7014 = vst.msk [vmem:[%s10685_s30 + $0x210] sm:$0xff] %vm3324_vm8, %v5344_v45  ;;  %v5345_v18 = vmax.f32 %v5313_v36, 0.0  ;;  %7133 = vst.msk [vmem:[%s10685_s30 + $0x328] sm:$0xff] %vm3324_vm8, %v6268_v35  ;;  %v7958_v19 = vpop.f32.mrb[40].mxu1 }
 0x2dd   : > { %7012 = vst.msk [vmem:[%s10685_s30 + $0x200] sm:$0xff] %vm3324_vm8, %v5342_v30  ;;  %v5343_v52 = vmax.f32 %v5311_v40, 0.0  ;;  %v6241_v28 = vadd.f32 %v7958_v19, %v10638_v7  ;;  %v6104_v5 = vpop.f32.mrb[41].mxu1 }
 0x2de   : > { %7015 = vst.msk [vmem:[%s10685_s30 + $0x218] sm:$0xff] %vm3324_vm8, %v5345_v18  ;;  %v6239_v37 = vadd.f32 %v10638_v7, %v6104_v5  ;;  %v7959_v10 = vpop.f32.mrb[42].mxu1 }
 0x2df   : > { %7013 = vst.msk [vmem:[%s10685_s30 + $0x208] sm:$0xff] %vm3324_vm8, %v5343_v52  ;;  %v7818_v56 = vpop.f32.mrb[36].mxu0  ;;  %v6273_v61 = vmax.f32 %v6241_v28, 0.0  ;;  %v6242_v44 = vadd.f32 %v7959_v10, %v10638_v7  ;;  %v6107_v29 = vpop.f32.mrb[43].mxu1 }
 0x2e0   : > { %v5316_v17 = vadd.f32 %v7818_v56, %v10638_v7  ;;  %v5167_v3 = vpop.f32.mrb[37].mxu0  ;;  %v6271_v22 = vmax.f32 %v6239_v37, 0.0  ;;  %v6240_v14 = vadd.f32 %v10638_v7, %v6107_v29 }
 0x2e1   : > { %v5314_v46 = vadd.f32 %v10638_v7, %v5167_v3  ;;  %v7819_v9 = vpop.f32.mrb[38].mxu0  ;;  %7138 = vst.msk [vmem:[%s10685_s30 + $0x350] sm:$0xff] %vm3324_vm8, %v6273_v61  ;;  %v6274_v26 = vmax.f32 %v6242_v44, 0.0 }
 0x2e2   : > { %v5348_v33 = vmax.f32 %v5316_v17, 0.0  ;;  %v5317_v60 = vadd.f32 %v7819_v9, %v10638_v7  ;;  %v5170_v32 = vpop.f32.mrb[39].mxu0  ;;  %7136 = vst.msk [vmem:[%s10685_s30 + $0x340] sm:$0xff] %vm3324_vm8, %v6271_v22  ;;  %v6272_v48 = vmax.f32 %v6240_v14, 0.0 }
 0x2e3   : > { %v5346_v54 = vmax.f32 %v5314_v46, 0.0  ;;  %v5315_v16 = vadd.f32 %v10638_v7, %v5170_v32  ;;  %7139 = vst.msk [vmem:[%s10685_s30 + $0x358] sm:$0xff] %vm3324_vm8, %v6274_v26 }
 0x2e4   : > { %7018 = vst.msk [vmem:[%s10685_s30 + $0x230] sm:$0xff] %vm3324_vm8, %v5348_v33  ;;  %v5349_v59 = vmax.f32 %v5317_v60, 0.0  ;;  %7137 = vst.msk [vmem:[%s10685_s30 + $0x348] sm:$0xff] %vm3324_vm8, %v6272_v48  ;;  %v7962_v24 = vpop.f32.mrb[44].mxu1 }
 0x2e5   : > { %7016 = vst.msk [vmem:[%s10685_s30 + $0x220] sm:$0xff] %vm3324_vm8, %v5346_v54  ;;  %v5347_v11 = vmax.f32 %v5315_v16, 0.0  ;;  %v6245_v42 = vadd.f32 %v11196_v6, %v7962_v24  ;;  %v6120_v21 = vpop.f32.mrb[45].mxu1 }
 0x2e6   : > { %7019 = vst.msk [vmem:[%s10685_s30 + $0x238] sm:$0xff] %vm3324_vm8, %v5349_v59  ;;  %v6243_v7 = vadd.f32 %v11196_v6, %v6120_v21  ;;  %v7963_v50 = vpop.f32.mrb[46].mxu1 }
 0x2e7   : > { %7017 = vst.msk [vmem:[%s10685_s30 + $0x228] sm:$0xff] %vm3324_vm8, %v5347_v11  ;;  %v7822_v41 = vpop.f32.mrb[40].mxu0  ;;  %v6277_v8 = vmax.f32 %v6245_v42, 0.0  ;;  %v6246_v2 = vadd.f32 %v11196_v6, %v7963_v50  ;;  %v6123_v12 = vpop.f32.mrb[47].mxu1 }
 0x2e8   : > { %v5320_v51 = vadd.f32 %v11196_v6, %v7822_v41  ;;  %v5183_v13 = vpop.f32.mrb[41].mxu0  ;;  %v6275_v43 = vmax.f32 %v6243_v7, 0.0  ;;  %v6244_v31 = vadd.f32 %v11196_v6, %v6123_v12 }
 0x2e9   : > { %v5318_v55 = vadd.f32 %v11196_v6, %v5183_v13  ;;  %v7823_v57 = vpop.f32.mrb[42].mxu0  ;;  %7142 = vst.msk [vmem:[%s10685_s30 + $0x370] sm:$0xff] %vm3324_vm8, %v6277_v8  ;;  %v6278_v53 = vmax.f32 %v6246_v2, 0.0 }
 0x2ea   : > { %v5352_v25 = vmax.f32 %v5320_v51, 0.0  ;;  %v5321_v23 = vadd.f32 %v11196_v6, %v7823_v57  ;;  %v5186_v27 = vpop.f32.mrb[43].mxu0  ;;  %7140 = vst.msk [vmem:[%s10685_s30 + $0x360] sm:$0xff] %vm3324_vm8, %v6275_v43  ;;  %v6276_v1 = vmax.f32 %v6244_v31, 0.0 }
 0x2eb   : > { %v5350_v0 = vmax.f32 %v5318_v55, 0.0  ;;  %v5319_v34 = vadd.f32 %v11196_v6, %v5186_v27  ;;  %7143 = vst.msk [vmem:[%s10685_s30 + $0x378] sm:$0xff] %vm3324_vm8, %v6278_v53 }
 0x2ec   : > { %7022 = vst.msk [vmem:[%s10685_s30 + $0x250] sm:$0xff] %vm3324_vm8, %v5352_v25  ;;  %v5353_v47 = vmax.f32 %v5321_v23, 0.0  ;;  %7141 = vst.msk [vmem:[%s10685_s30 + $0x368] sm:$0xff] %vm3324_vm8, %v6276_v1  ;;  %v7966_v20 = vpop.f32.mrb[48].mxu1 }
 0x2ed   : > { %7020 = vst.msk [vmem:[%s10685_s30 + $0x240] sm:$0xff] %vm3324_vm8, %v5350_v0  ;;  %v5351_v4 = vmax.f32 %v5319_v34, 0.0  ;;  %v6249_v39 = vadd.f32 %v11196_v6, %v7966_v20  ;;  %v6136_v62 = vpop.f32.mrb[49].mxu1 }
 0x2ee   : > { %7023 = vst.msk [vmem:[%s10685_s30 + $0x258] sm:$0xff] %vm3324_vm8, %v5353_v47  ;;  %v6247_v49 = vadd.f32 %v11196_v6, %v6136_v62  ;;  %v7967_v58 = vpop.f32.mrb[50].mxu1 }
 0x2ef   : > { %7021 = vst.msk [vmem:[%s10685_s30 + $0x248] sm:$0xff] %vm3324_vm8, %v5351_v4  ;;  %v7826_v15 = vpop.f32.mrb[44].mxu0  ;;  %v6281_v63 = vmax.f32 %v6249_v39, 0.0  ;;  %v6250_v45 = vadd.f32 %v11196_v6, %v7967_v58  ;;  %v6139_v36 = vpop.f32.mrb[51].mxu1 }
 0x2f0   : > { %v5324_v38 = vadd.f32 %v11196_v6, %v7826_v15  ;;  %v5199_v35 = vpop.f32.mrb[45].mxu0  ;;  %v6279_v30 = vmax.f32 %v6247_v49, 0.0  ;;  %v6248_v40 = vadd.f32 %v11196_v6, %v6139_v36 }
 0x2f1   : > { %v5322_v18 = vadd.f32 %v11196_v6, %v5199_v35  ;;  %v7827_v19 = vpop.f32.mrb[46].mxu0  ;;  %7146 = vst.msk [vmem:[%s10685_s30 + $0x390] sm:$0xff] %vm3324_vm8, %v6281_v63  ;;  %v6282_v52 = vmax.f32 %v6250_v45, 0.0 }
 0x2f2   : > { %v5356_v28 = vmax.f32 %v5324_v38, 0.0  ;;  %v5325_v5 = vadd.f32 %v11196_v6, %v7827_v19  ;;  %v5202_v37 = vpop.f32.mrb[47].mxu0  ;;  %7144 = vst.msk [vmem:[%s10685_s30 + $0x380] sm:$0xff] %vm3324_vm8, %v6279_v30  ;;  %v6280_v10 = vmax.f32 %v6248_v40, 0.0 }
 0x2f3   : > { %v5354_v56 = vmax.f32 %v5322_v18, 0.0  ;;  %v5323_v61 = vadd.f32 %v11196_v6, %v5202_v37  ;;  %7147 = vst.msk [vmem:[%s10685_s30 + $0x398] sm:$0xff] %vm3324_vm8, %v6282_v52 }
 0x2f4   : > { %7026 = vst.msk [vmem:[%s10685_s30 + $0x270] sm:$0xff] %vm3324_vm8, %v5356_v28  ;;  %v5357_v44 = vmax.f32 %v5325_v5, 0.0  ;;  %7145 = vst.msk [vmem:[%s10685_s30 + $0x388] sm:$0xff] %vm3324_vm8, %v6280_v10  ;;  %v7970_v29 = vpop.f32.mrb[52].mxu1 }
 0x2f5   : > { %7024 = vst.msk [vmem:[%s10685_s30 + $0x260] sm:$0xff] %vm3324_vm8, %v5354_v56  ;;  %v5355_v17 = vmax.f32 %v5323_v61, 0.0  ;;  %v6253_v3 = vadd.f32 %v11196_v6, %v7970_v29  ;;  %v6152_v22 = vpop.f32.mrb[53].mxu1 }
 0x2f6   : > { %7027 = vst.msk [vmem:[%s10685_s30 + $0x278] sm:$0xff] %vm3324_vm8, %v5357_v44  ;;  %v6251_v14 = vadd.f32 %v11196_v6, %v6152_v22  ;;  %v7971_v46 = vpop.f32.mrb[54].mxu1 }
 0x2f7   : > { %7025 = vst.msk [vmem:[%s10685_s30 + $0x268] sm:$0xff] %vm3324_vm8, %v5355_v17  ;;  %v7830_v9 = vpop.f32.mrb[48].mxu0  ;;  %v6285_v26 = vmax.f32 %v6253_v3, 0.0  ;;  %v6254_v33 = vadd.f32 %v11196_v6, %v7971_v46  ;;  %v6155_v60 = vpop.f32.mrb[55].mxu1 }
 0x2f8   : > { %v5328_v32 = vadd.f32 %v11196_v6, %v7830_v9  ;;  %v5215_v48 = vpop.f32.mrb[49].mxu0  ;;  %v6283_v54 = vmax.f32 %v6251_v14, 0.0  ;;  %v6252_v16 = vadd.f32 %v11196_v6, %v6155_v60 }
 0x2f9   : > { %v5326_v59 = vadd.f32 %v11196_v6, %v5215_v48  ;;  %v7831_v24 = vpop.f32.mrb[50].mxu0  ;;  %7150 = vst.msk [vmem:[%s10685_s30 + $0x3b0] sm:$0xff] %vm3324_vm8, %v6285_v26  ;;  %v6286_v11 = vmax.f32 %v6254_v33, 0.0 }
 0x2fa   : > { %v5360_v42 = vmax.f32 %v5328_v32, 0.0  ;;  %v5329_v21 = vadd.f32 %v11196_v6, %v7831_v24  ;;  %v5218_v7 = vpop.f32.mrb[51].mxu0  ;;  %7148 = vst.msk [vmem:[%s10685_s30 + $0x3a0] sm:$0xff] %vm3324_vm8, %v6283_v54  ;;  %v6284_v50 = vmax.f32 %v6252_v16, 0.0 }
 0x2fb   : > { %v5358_v41 = vmax.f32 %v5326_v59, 0.0  ;;  %v5327_v8 = vadd.f32 %v11196_v6, %v5218_v7  ;;  %7151 = vst.msk [vmem:[%s10685_s30 + $0x3b8] sm:$0xff] %vm3324_vm8, %v6286_v11 }
 0x2fc   : > { %7030 = vst.msk [vmem:[%s10685_s30 + $0x290] sm:$0xff] %vm3324_vm8, %v5360_v42  ;;  %v5361_v2 = vmax.f32 %v5329_v21, 0.0  ;;  %7149 = vst.msk [vmem:[%s10685_s30 + $0x3a8] sm:$0xff] %vm3324_vm8, %v6284_v50  ;;  %v7974_v12 = vpop.f32.mrb[56].mxu1 }
 0x2fd   : > { %7028 = vst.msk [vmem:[%s10685_s30 + $0x280] sm:$0xff] %vm3324_vm8, %v5358_v41  ;;  %v5359_v51 = vmax.f32 %v5327_v8, 0.0  ;;  %v6257_v13 = vadd.f32 %v11196_v6, %v7974_v12  ;;  %v6168_v43 = vpop.f32.mrb[57].mxu1 }
 0x2fe   : > { %7031 = vst.msk [vmem:[%s10685_s30 + $0x298] sm:$0xff] %vm3324_vm8, %v5361_v2  ;;  %v6255_v31 = vadd.f32 %v11196_v6, %v6168_v43  ;;  %v7975_v55 = vpop.f32.mrb[58].mxu1 }
 0x2ff   : > { %7029 = vst.msk [vmem:[%s10685_s30 + $0x288] sm:$0xff] %vm3324_vm8, %v5359_v51  ;;  %v7834_v57 = vpop.f32.mrb[52].mxu0  ;;  %v6289_v53 = vmax.f32 %v6257_v13, 0.0  ;;  %v6258_v25 = vadd.f32 %v11196_v6, %v7975_v55  ;;  %v6171_v23 = vpop.f32.mrb[59].mxu1 }
 0x300   : > { %v5332_v27 = vadd.f32 %v11196_v6, %v7834_v57  ;;  %v5231_v1 = vpop.f32.mrb[53].mxu0  ;;  %v6287_v0 = vmax.f32 %v6255_v31, 0.0  ;;  %v6256_v34 = vadd.f32 %v11196_v6, %v6171_v23 }
 0x301   : > { %v5330_v47 = vadd.f32 %v11196_v6, %v5231_v1  ;;  %v7835_v20 = vpop.f32.mrb[54].mxu0  ;;  %7154 = vst.msk [vmem:[%s10685_s30 + $0x3d0] sm:$0xff] %vm3324_vm8, %v6289_v53  ;;  %v6290_v4 = vmax.f32 %v6258_v25, 0.0 }
 0x302   : > { %v5364_v39 = vmax.f32 %v5332_v27, 0.0  ;;  %v5333_v62 = vadd.f32 %v11196_v6, %v7835_v20  ;;  %v5234_v49 = vpop.f32.mrb[55].mxu0  ;;  %7152 = vst.msk [vmem:[%s10685_s30 + $0x3c0] sm:$0xff] %vm3324_vm8, %v6287_v0  ;;  %v6288_v58 = vmax.f32 %v6256_v34, 0.0 }
 0x303   : > { %v5362_v15 = vmax.f32 %v5330_v47, 0.0  ;;  %v5331_v63 = vadd.f32 %v11196_v6, %v5234_v49  ;;  %7155 = vst.msk [vmem:[%s10685_s30 + $0x3d8] sm:$0xff] %vm3324_vm8, %v6290_v4 }
 0x304   : > { %7034 = vst.msk [vmem:[%s10685_s30 + $0x2b0] sm:$0xff] %vm3324_vm8, %v5364_v39  ;;  %v5365_v45 = vmax.f32 %v5333_v62, 0.0  ;;  %7153 = vst.msk [vmem:[%s10685_s30 + $0x3c8] sm:$0xff] %vm3324_vm8, %v6288_v58  ;;  %v7978_v36 = vpop.f32.mrb[60].mxu1 }
 0x305   : > { %7032 = vst.msk [vmem:[%s10685_s30 + $0x2a0] sm:$0xff] %vm3324_vm8, %v5362_v15  ;;  %v5363_v38 = vmax.f32 %v5331_v63, 0.0  ;;  %v6261_v35 = vadd.f32 %v11196_v6, %v7978_v36  ;;  %v6184_v30 = vpop.f32.mrb[61].mxu1 }
 0x306   : > { %7035 = vst.msk [vmem:[%s10685_s30 + $0x2b8] sm:$0xff] %vm3324_vm8, %v5365_v45  ;;  %v6259_v40 = vadd.f32 %v11196_v6, %v6184_v30  ;;  %v7979_v18 = vpop.f32.mrb[62].mxu1 }
 0x307   : > { %7033 = vst.msk [vmem:[%s10685_s30 + $0x2a8] sm:$0xff] %vm3324_vm8, %v5363_v38  ;;  %v7838_v19 = vpop.f32.mrb[56].mxu0  ;;  %v6293_v52 = vmax.f32 %v6261_v35, 0.0  ;;  %v6262_v28 = vadd.f32 %v11196_v6, %v7979_v18  ;;  %v6187_v5 = vpop.f32.mrb[63].mxu1 }
 0x308   : > { %v5336_v37 = vadd.f32 %v11196_v6, %v7838_v19  ;;  %v5247_v10 = vpop.f32.mrb[57].mxu0  ;;  %v6291_v56 = vmax.f32 %v6259_v40, 0.0  ;;  %v6260_v61 = vadd.f32 %v11196_v6, %v6187_v5 }
 0x309   : > { %v5334_v44 = vadd.f32 %v11196_v6, %v5247_v10  ;;  %v7839_v29 = vpop.f32.mrb[58].mxu0  ;;  %7158 = vst.msk [vmem:[%s10685_s30 + $0x3f0] sm:$0xff] %vm3324_vm8, %v6293_v52  ;;  %v6294_v17 = vmax.f32 %v6262_v28, 0.0 }
 0x30a   : > { %v5368_v3 = vmax.f32 %v5336_v37, 0.0  ;;  %v5337_v22 = vadd.f32 %v11196_v6, %v7839_v29  ;;  %v5250_v14 = vpop.f32.mrb[59].mxu0  ;;  %7156 = vst.msk [vmem:[%s10685_s30 + $0x3e0] sm:$0xff] %vm3324_vm8, %v6291_v56  ;;  %v6292_v46 = vmax.f32 %v6260_v61, 0.0 }
 0x30b   : > { %v5366_v9 = vmax.f32 %v5334_v44, 0.0  ;;  %v5335_v26 = vadd.f32 %v11196_v6, %v5250_v14  ;;  %7159 = vst.msk [vmem:[%s10685_s30 + $0x3f8] sm:$0xff] %vm3324_vm8, %v6294_v17 }
 0x30c   : > { %7038 = vst.msk [vmem:[%s10685_s30 + $0x2d0] sm:$0xff] %vm3324_vm8, %v5368_v3  ;;  %v5369_v33 = vmax.f32 %v5337_v22, 0.0  ;;  %7157 = vst.msk [vmem:[%s10685_s30 + $0x3e8] sm:$0xff] %vm3324_vm8, %v6292_v46 }
 0x30d   : > { %7036 = vst.msk [vmem:[%s10685_s30 + $0x2c0] sm:$0xff] %vm3324_vm8, %v5366_v9  ;;  %v5367_v60 = vmax.f32 %v5335_v26, 0.0 }
 0x30e   : > { %7039 = vst.msk [vmem:[%s10685_s30 + $0x2d8] sm:$0xff] %vm3324_vm8, %v5369_v33 }
 0x30f   : > { %7037 = vst.msk [vmem:[%s10685_s30 + $0x2c8] sm:$0xff] %vm3324_vm8, %v5367_v60  ;;  %v7842_v32 = vpop.f32.mrb[60].mxu0 }
 0x310   : > { %v5340_v48 = vadd.f32 %v11196_v6, %v7842_v32  ;;  %v5263_v54 = vpop.f32.mrb[61].mxu0 }
 0x311   : > { %v5338_v16 = vadd.f32 %v11196_v6, %v5263_v54  ;;  %v7843_v59 = vpop.f32.mrb[62].mxu0 }
 0x312   : > { %v5372_v24 = vmax.f32 %v5340_v48, 0.0  ;;  %v5341_v11 = vadd.f32 %v11196_v6, %v7843_v59  ;;  %v5266_v42 = vpop.f32.mrb[63].mxu0 }
 0x313   : > { %v5370_v21 = vmax.f32 %v5338_v16, 0.0  ;;  %v5339_v7 = vadd.f32 %v11196_v6, %v5266_v42 }
 0x314   : > { %7042 = vst.msk [vmem:[%s10685_s30 + $0x2f0] sm:$0xff] %vm3324_vm8, %v5372_v24  ;;  %v5373_v50 = vmax.f32 %v5341_v11, 0.0 }
 0x315   : > { %7040 = vst.msk [vmem:[%s10685_s30 + $0x2e0] sm:$0xff] %vm3324_vm8, %v5370_v21  ;;  %v5371_v41 = vmax.f32 %v5339_v7, 0.0 }
 0x316   : > { %7043 = vst.msk [vmem:[%s10685_s30 + $0x2f8] sm:$0xff] %vm3324_vm8, %v5373_v50 }
 0x317   : > { %7041 = vst.msk [vmem:[%s10685_s30 + $0x2e8] sm:$0xff] %vm3324_vm8, %v5371_v41 }
 0x318 PF: > { %s13_s14 = sadd.s32 1, %s8474_s14   ;;  %s11629_s12 = smov %s8470_s13 }
 0x319   : > { %p10_p5 = scmp.ge.s32.totalorder %s13_s14, 4   ;;  %s11630_s13 = smov %s11632_s15 }
 0x31b   :  { %12 = sbr.rel (!%p10_p5) target bundleno = 2 (0x2), region = 89 }

</bundles_post_ra>
